<compile_context>
chip_gen: v6e
topology: v6e:2x2x1
jax: 0.10.0
libtpu: 0.0.40
codegen_flags: <defaults>
</compile_context>

<pallas_src>
import functools

import numpy as np
import jax
import jax.numpy as jnp
from jax.experimental import pallas as pl
from jax.experimental.pallas import tpu as pltpu

# ---- static model dimensions (from the PyTorch __init__) -------------------
H_IN, W_IN, C_IN = 5, 5, 2          # conv_output_size = 4*4*4 => input is 5x5x2
C_OUT, KH, KW = 4, 2, 2
H_OUT, W_OUT = H_IN - KH + 1, W_IN - KW + 1          # 4, 4
IMG_FLAT = C_IN * H_IN * W_IN                        # 50
CONV_FLAT = C_OUT * H_OUT * W_OUT                    # 64
N_ACT = 4
EXTRA = N_ACT + 2                                    # one-hot action + reward + done
AUX_W = 8                                            # aux matrix lane width (padded)
LSTM_IN = CONV_FLAT + EXTRA                          # 70
HID = 256
GW = 4 * HID                                         # 1024 gate width
HEAD_W = 8                                           # fused [pi(4) | v(1) | pad(3)]


# ---- Pallas kernel ----------------------------------------------------------
def actor_critic_kernel(
    T, B,
    # inputs (all batch-major: row = b*T + t)
    x_ref,        # (B*T, 50)  f32   NHWC-flattened image
    act_ref,      # (B*T, 1)   i32   previous action
    rew_ref,      # (B*T, 1)   f32   previous reward
    done_ref,     # (B*T, 1)   f32   previous done flag
    hid_ref,      # (B, 512)   f32   [h | c]
    wconv_ref,    # (50, 64)   bf16  conv as dense matmul (NHWC row order)
    bconv_ref,    # (1, 64)    f32
    wihc_ref,     # (64, 1024) bf16  W_ih^T rows for conv features
    wihaux_ref,   # (8, 1024)  bf16  W_ih^T rows for [one-hot | rew | done | 0 | 0]
    blstm_ref,    # (1, 1024)  f32   b_ih + b_hh
    whh_ref,      # (256,1024) bf16  W_hh^T
    whead_ref,    # (256, 8)   bf16  [W_pi^T | W_v^T | 0]
    bhead_ref,    # (1, 8)     f32   [b_pi | b_v | 0]
    # outputs (batch-major)
    feat_ref,     # (B*T, 256)
    hidden_ref,   # (B, 512)
    head_ref,     # (B*T, 8)   [probs(4) | value(1) | 0(3)]
    # scratch
    gx_ref,       # (B*T, 1024) f32  per-row input-side gate pre-activations
):
    BT = B * T
    bf16 = jnp.bfloat16
    f32 = jnp.float32

    # conv2d (as dense matmul, bf16 operands / f32 accumulate) + ReLU
    conv = jnp.dot(x_ref[...].astype(bf16), wconv_ref[...],
                   preferred_element_type=f32)
    conv = jnp.maximum(conv + bconv_ref[...], 0.0)                   # (BT, 64) f32

    # aux = [one_hot(prev_action) | prev_reward | prev_done | 0 | 0]  (BT, 8)
    ids = jax.lax.broadcasted_iota(jnp.int32, (BT, AUX_W), 1)
    aux = (ids == act_ref[...]).astype(f32)
    aux = jnp.where(ids == N_ACT, rew_ref[...], aux)
    aux = jnp.where(ids == N_ACT + 1, done_ref[...], aux)

    # input-side LSTM pre-activations for every (b, t) row at once
    gates_x = (
        jnp.dot(conv.astype(bf16), wihc_ref[...], preferred_element_type=f32)
        + jnp.dot(aux.astype(bf16), wihaux_ref[...], preferred_element_type=f32)
        + blstm_ref[...]
    )                                                                # (BT, 1024)
    gx_ref[...] = gates_x          # park in VMEM scratch (avoids vreg spill churn)

    h = hid_ref[:, 0:HID]          # (B, 256) f32
    c = hid_ref[:, HID:2 * HID]
    whh = whh_ref[...]             # (256, 1024) bf16, hoisted out of the loop

    # sequential LSTMCell recurrence (PyTorch gate order: i, f, g, o)
    for t in range(T):
        # gather this step's input-gate rows (batch-major layout: row = b*T + t)
        rows = [gx_ref[b * T + t:b * T + t + 1, :] for b in range(B)]
        g_x = rows[0] if B == 1 else jnp.concatenate(rows, axis=0)   # (B, 1024)
        gates = g_x + jnp.dot(h.astype(bf16), whh, preferred_element_type=f32)
        i_g = jax.nn.sigmoid(gates[:, 0:HID])
        f_g = jax.nn.sigmoid(gates[:, HID:2 * HID])
        g_g = jnp.tanh(gates[:, 2 * HID:3 * HID])
        o_g = jax.nn.sigmoid(gates[:, 3 * HID:4 * HID])
        c = f_g * c + i_g * g_g
        h = o_g * jnp.tanh(c)
        # write features directly into the batch-major output layout
        for b in range(B):
            feat_ref[b * T + t:b * T + t + 1, :] = h[b:b + 1, :]

    hidden_ref[:, 0:HID] = h
    hidden_ref[:, HID:2 * HID] = c

    # fused policy + value heads: single matmul, single output slab
    feats = feat_ref[...]                                            # (BT, 256)
    head = jnp.dot(feats.astype(bf16), whead_ref[...],
                   preferred_element_type=f32) + bhead_ref[...]      # (BT, 8)
    logits = head[:, 0:N_ACT]
    m = jnp.max(logits, axis=-1, keepdims=True)
    e = jnp.exp(logits - m)
    inv = pl.reciprocal(jnp.sum(e, axis=-1, keepdims=True), approx=True)
    head_ref[...] = jnp.concatenate([e * inv, head[:, N_ACT:HEAD_W]], axis=-1)


# ---- wrapper ----------------------------------------------------------------
def actor_critic_pallas(params, x, hidden, prev_action, prev_reward, prev_done):
    """x: (B, T, 5, 5, 2) f32; hidden: (B, 512); prev_*: (B, T).
    Returns features (B, T, 256), hidden (B, 512), probs (B, T, 4), value (B, T, 1)."""
    B, T = x.shape[0], x.shape[1]
    BT = B * T

    # glue: pure reshapes, no transposes (batch-major rows, NHWC image flatten)
    x_flat = x.reshape(BT, IMG_FLAT).astype(jnp.float32)
    act = prev_action.reshape(BT, 1).astype(jnp.int32)
    rew = prev_reward.reshape(BT, 1).astype(jnp.float32)
    done = prev_done.reshape(BT, 1).astype(jnp.float32)

    vmem = pl.BlockSpec(memory_space=pltpu.MemorySpace.VMEM)

    out_shape = (
        jax.ShapeDtypeStruct((BT, HID), jnp.float32),       # features (batch-major)
        jax.ShapeDtypeStruct((B, 2 * HID), jnp.float32),    # hidden [h|c]
        jax.ShapeDtypeStruct((BT, HEAD_W), jnp.float32),    # [probs | value | pad]
    )

    feat, hid_out, head = pl.pallas_call(
        functools.partial(actor_critic_kernel, T, B),
        out_shape=out_shape,
        in_specs=[vmem] * 13,
        out_specs=(vmem, vmem, vmem),
        scratch_shapes=[pltpu.VMEM((BT, GW), jnp.float32)],
    )(
        x_flat, act, rew, done, hidden,
        params["wconv"], params["bconv"],
        params["wih_conv"], params["wih_aux"], params["b_lstm"], params["whh"],
        params["whead"], params["bhead"],
    )

    features = feat.reshape(B, T, HID)
    probs = head[:, 0:N_ACT].reshape(B, T, N_ACT)
    value = head[:, N_ACT:N_ACT + 1].reshape(B, T, 1)
    return features, hid_out, probs, value


# ---- deterministic parameter construction -----------------------------------
def make_params(key):
    ks = jax.random.split(key, 10)
    u = lambda k, shape, bound: jax.random.uniform(k, shape, jnp.float32, -bound, bound)
    # weights are quantized to the bf16 grid (kernel stores them as bf16;
    # the f32 reference uses the identical quantized values)
    q = lambda w: w.astype(jnp.bfloat16).astype(jnp.float32)

    # conv1: Conv2d(2, 4, kernel_size=2)
    cb = 1.0 / np.sqrt(C_IN * KH * KW)
    conv_w = q(u(ks[0], (C_OUT, C_IN, KH, KW), cb))
    conv_b = u(ks[1], (C_OUT,), cb)

    # LSTMCell(70, 256)
    lb = 1.0 / np.sqrt(HID)
    w_ih = q(u(ks[2], (4 * HID, LSTM_IN), lb))
    w_hh = q(u(ks[3], (4 * HID, HID), lb))
    b_ih = u(ks[4], (4 * HID,), lb)
    b_hh = u(ks[5], (4 * HID,), lb)

    # fc_pi: Linear(256, 4); fc_v: Linear(256, 1)
    w_pi = q(u(ks[6], (N_ACT, HID), lb))
    b_pi = u(ks[7], (N_ACT,), lb)
    w_v = q(u(ks[8], (1, HID), lb))
    b_v = u(ks[9], (1,), lb)

    # ---- kernel-side (pre-lowered) forms ----
    # conv as a (50, 64) dense matrix acting on the NHWC-flattened image
    # (rows ordered h*W*C + w*C + c so no wrapper permute is needed);
    # output columns follow the PyTorch NCHW flatten order (c_out, h_out, w_out).
    conv_w_np = np.asarray(conv_w)
    conv_b_np = np.asarray(conv_b)
    wconv = np.zeros((IMG_FLAT, CONV_FLAT), np.float32)
    bconv = np.zeros((1, CONV_FLAT), np.float32)
    for co in range(C_OUT):
        for oi in range(H_OUT):
            for oj in range(W_OUT):
                col = co * (H_OUT * W_OUT) + oi * W_OUT + oj
                bconv[0, col] = conv_b_np[co]
                for ci in range(C_IN):
                    for ki in range(KH):
                        for kj in range(KW):
                            row = (oi + ki) * (W_IN * C_IN) + (oj + kj) * C_IN + ci
                            wconv[row, col] += conv_w_np[co, ci, ki, kj]

    w_ih_t = jnp.asarray(w_ih).T                      # (70, 1024)
    wih_aux = jnp.zeros((AUX_W, GW), jnp.float32)
    wih_aux = wih_aux.at[0:EXTRA, :].set(w_ih_t[CONV_FLAT:CONV_FLAT + EXTRA, :])

    whead = jnp.zeros((HID, HEAD_W), jnp.float32)
    whead = whead.at[:, 0:N_ACT].set(jnp.asarray(w_pi).T)
    whead = whead.at[:, N_ACT:N_ACT + 1].set(jnp.asarray(w_v).T)
    bhead = jnp.zeros((1, HEAD_W), jnp.float32)
    bhead = bhead.at[0, 0:N_ACT].set(b_pi)
    bhead = bhead.at[0, N_ACT].set(b_v[0])

    params = {
        # reference-side (f32, bf16-quantized values)
        "conv_w": conv_w, "conv_b": conv_b,
        "w_ih": w_ih, "w_hh": w_hh, "b_ih": b_ih, "b_hh": b_hh,
        "w_pi": w_pi, "b_pi": b_pi, "w_v": w_v, "b_v": b_v,
        # kernel-side (bf16 matmul operands, f32 biases)
        "wconv": jnp.asarray(wconv).astype(jnp.bfloat16),
        "bconv": jnp.asarray(bconv),
        "wih_conv": w_ih_t[0:CONV_FLAT, :].astype(jnp.bfloat16),
        "wih_aux": wih_aux.astype(jnp.bfloat16),
        "b_lstm": (b_ih + b_hh).reshape(1, GW),
        "whh": jnp.asarray(w_hh).T.astype(jnp.bfloat16),
        "whead": whead.astype(jnp.bfloat16),
        "bhead": bhead,
    }
    return params


# ---- pure-JAX reference (mirrors the PyTorch forward / pi / v) --------------
def reference(params, x, hidden, prev_action, prev_reward, prev_done):
    B, T = x.shape[0], x.shape[1]
    xf = x.reshape(B * T, H_IN, W_IN, C_IN).transpose(0, 3, 1, 2)   # NCHW
    out = jax.lax.conv_general_dilated(
        xf, params["conv_w"], (1, 1), "VALID",
        dimension_numbers=("NCHW", "OIHW", "NCHW"))
    out = out + params["conv_b"][None, :, None, None]
    conv = jax.nn.relu(out).reshape(B * T, -1)
    onehot = jax.nn.one_hot(prev_action.reshape(B * T), N_ACT, dtype=jnp.float32)
    feat_in = jnp.concatenate(
        [conv, onehot, prev_reward.reshape(B * T, 1), prev_done.reshape(B * T, 1)], -1)
    feat_in = feat_in.reshape(B, T, -1)
    h, c = hidden[:, :HID], hidden[:, HID:]
    feats = []
    for t in range(T):
        gates = (feat_in[:, t] @ params["w_ih"].T + params["b_ih"]
                 + h @ params["w_hh"].T + params["b_hh"])
        i = jax.nn.sigmoid(gates[:, :HID])
        f = jax.nn.sigmoid(gates[:, HID:2 * HID])
        g = jnp.tanh(gates[:, 2 * HID:3 * HID])
        o = jax.nn.sigmoid(gates[:, 3 * HID:])
        c = f * c + i * g
        h = o * jnp.tanh(c)
        feats.append(h)
    features = jnp.stack(feats, axis=1)
    hidden_out = jnp.concatenate([h, c], -1)
    logits = features @ params["w_pi"].T + params["b_pi"]
    probs = jax.nn.softmax(logits, -1)
    value = features @ params["w_v"].T + params["b_v"]
    return features, hidden_out, probs, value


if __name__ == "__main__":
    B, T = 2, 8
    key = jax.random.PRNGKey(0)
    kx, ka, kr, kd, kh, kp = jax.random.split(key, 6)

    params = make_params(kp)

    x = jax.random.uniform(kx, (B, T, H_IN, W_IN, C_IN), jnp.float32)
    prev_action = jax.random.randint(ka, (B, T), 0, N_ACT, jnp.int32)
    prev_reward = jax.random.normal(kr, (B, T), jnp.float32)
    prev_done = (jax.random.uniform(kd, (B, T)) > 0.5).astype(jnp.float32)
    hidden = 0.1 * jax.random.normal(kh, (B, 2 * HID), jnp.float32)

    fwd = jax.jit(actor_critic_pallas)
    feats, hid_out, probs, value = fwd(
        params, x, hidden, prev_action, prev_reward, prev_done)
    jax.block_until_ready((feats, hid_out, probs, value))

    # sanity check against pure-JAX f32 reference (tol covers bf16 operands)
    rf, rh, rp, rv = reference(params, x, hidden, prev_action, prev_reward, prev_done)
    np.testing.assert_allclose(np.asarray(feats), np.asarray(rf), rtol=2e-2, atol=2e-2)
    np.testing.assert_allclose(np.asarray(hid_out), np.asarray(rh), rtol=2e-2, atol=2e-2)
    np.testing.assert_allclose(np.asarray(probs), np.asarray(rp), rtol=2e-2, atol=2e-2)
    np.testing.assert_allclose(np.asarray(value), np.asarray(rv), rtol=2e-2, atol=2e-2)

    print("KERNEL_OK")
</pallas_src>

<mosaic_0001>
module attributes {stable_mosaic.version = 11 : i64} {
  func.func @actor_critic_kernel(%arg0: memref<16x50xf32, #tpu.memory_space<vmem>>, %arg1: memref<16x1xi32, #tpu.memory_space<vmem>>, %arg2: memref<16x1xf32, #tpu.memory_space<vmem>>, %arg3: memref<16x1xf32, #tpu.memory_space<vmem>>, %arg4: memref<2x512xf32, #tpu.memory_space<vmem>>, %arg5: memref<50x64xbf16, #tpu.memory_space<vmem>>, %arg6: memref<1x64xf32, #tpu.memory_space<vmem>>, %arg7: memref<64x1024xbf16, #tpu.memory_space<vmem>>, %arg8: memref<8x1024xbf16, #tpu.memory_space<vmem>>, %arg9: memref<1x1024xf32, #tpu.memory_space<vmem>>, %arg10: memref<256x1024xbf16, #tpu.memory_space<vmem>>, %arg11: memref<256x8xbf16, #tpu.memory_space<vmem>>, %arg12: memref<1x8xf32, #tpu.memory_space<vmem>>, %arg13: memref<16x256xf32, #tpu.memory_space<vmem>>, %arg14: memref<2x512xf32, #tpu.memory_space<vmem>>, %arg15: memref<16x8xf32, #tpu.memory_space<vmem>>, %arg16: memref<16x1024xf32, #tpu.memory_space<vmem>>) attributes {dimension_semantics = [], scalar_prefetch = 0 : i64, scratch_operands = 1 : i64, tpu.core_type = #tpu.core_type<tc>} {
    %c0 = arith.constant 0 : index
    %c0_0 = arith.constant 0 : index
    %0 = vector.load %arg0[%c0, %c0_0] : memref<16x50xf32, #tpu.memory_space<vmem>>, vector<16x50xf32>
    %1 = arith.truncf %0 : vector<16x50xf32> to vector<16x50xbf16>
    %c0_1 = arith.constant 0 : index
    %c0_2 = arith.constant 0 : index
    %2 = vector.load %arg5[%c0_1, %c0_2] : memref<50x64xbf16, #tpu.memory_space<vmem>>, vector<50x64xbf16>
    %cst = arith.constant dense<0.000000e+00> : vector<16x64xf32>
    %3 = tpu.matmul %1, %2, %cst {dimension_numbers = #tpu.dot_dimension_numbers<[1], [0], [0], [1], [0, 0, 1, 1], [], []>} : vector<16x50xbf16>, vector<50x64xbf16>, vector<16x64xf32> -> vector<16x64xf32>
    %c0_3 = arith.constant 0 : index
    %c0_4 = arith.constant 0 : index
    %4 = vector.load %arg6[%c0_3, %c0_4] : memref<1x64xf32, #tpu.memory_space<vmem>>, vector<1x64xf32>
    %5 = vector.broadcast %4 : vector<1x64xf32> to vector<16x64xf32>
    %6 = arith.addf %3, %5 : vector<16x64xf32>
    %cst_5 = arith.constant 0.000000e+00 : f32
    %7 = vector.broadcast %cst_5 : f32 to vector<16x64xf32>
    %8 = arith.maximumf %6, %7 : vector<16x64xf32>
    %9 = tpu.iota {dimensions = array<i32: 1>} : vector<16x8xi32>
    %c0_6 = arith.constant 0 : index
    %c0_7 = arith.constant 0 : index
    %10 = vector.load %arg1[%c0_6, %c0_7] : memref<16x1xi32, #tpu.memory_space<vmem>>, vector<16x1xi32>
    %11 = vector.broadcast %10 : vector<16x1xi32> to vector<16x8xi32>
    %12 = arith.cmpi eq, %9, %11 : vector<16x8xi32>
    %13 = arith.extui %12 : vector<16x8xi1> to vector<16x8xi32>
    %14 = arith.sitofp %13 : vector<16x8xi32> to vector<16x8xf32>
    %c4_i32 = arith.constant 4 : i32
    %15 = vector.broadcast %c4_i32 : i32 to vector<16x8xi32>
    %16 = arith.cmpi eq, %9, %15 : vector<16x8xi32>
    %c0_8 = arith.constant 0 : index
    %c0_9 = arith.constant 0 : index
    %17 = vector.load %arg2[%c0_8, %c0_9] : memref<16x1xf32, #tpu.memory_space<vmem>>, vector<16x1xf32>
    %18 = vector.shape_cast %17 : vector<16x1xf32> to vector<16x1xf32>
    %19 = vector.broadcast %18 : vector<16x1xf32> to vector<16x8xf32>
    %20 = arith.select %16, %19, %14 : vector<16x8xi1>, vector<16x8xf32>
    %c5_i32 = arith.constant 5 : i32
    %21 = vector.broadcast %c5_i32 : i32 to vector<16x8xi32>
    %22 = arith.cmpi eq, %9, %21 : vector<16x8xi32>
    %c0_10 = arith.constant 0 : index
    %c0_11 = arith.constant 0 : index
    %23 = vector.load %arg3[%c0_10, %c0_11] : memref<16x1xf32, #tpu.memory_space<vmem>>, vector<16x1xf32>
    %24 = vector.shape_cast %23 : vector<16x1xf32> to vector<16x1xf32>
    %25 = vector.broadcast %24 : vector<16x1xf32> to vector<16x8xf32>
    %26 = arith.select %22, %25, %20 : vector<16x8xi1>, vector<16x8xf32>
    %27 = arith.truncf %8 : vector<16x64xf32> to vector<16x64xbf16>
    %c0_12 = arith.constant 0 : index
    %c0_13 = arith.constant 0 : index
    %28 = vector.load %arg7[%c0_12, %c0_13] : memref<64x1024xbf16, #tpu.memory_space<vmem>>, vector<64x1024xbf16>
    %cst_14 = arith.constant dense<0.000000e+00> : vector<16x1024xf32>
    %29 = tpu.matmul %27, %28, %cst_14 {dimension_numbers = #tpu.dot_dimension_numbers<[1], [0], [0], [1], [0, 0, 1, 1], [], []>} : vector<16x64xbf16>, vector<64x1024xbf16>, vector<16x1024xf32> -> vector<16x1024xf32>
    %30 = arith.truncf %26 : vector<16x8xf32> to vector<16x8xbf16>
    %c0_15 = arith.constant 0 : index
    %c0_16 = arith.constant 0 : index
    %31 = vector.load %arg8[%c0_15, %c0_16] : memref<8x1024xbf16, #tpu.memory_space<vmem>>, vector<8x1024xbf16>
    %cst_17 = arith.constant dense<0.000000e+00> : vector<16x1024xf32>
    %32 = tpu.matmul %30, %31, %cst_17 {dimension_numbers = #tpu.dot_dimension_numbers<[1], [0], [0], [1], [0, 0, 1, 1], [], []>} : vector<16x8xbf16>, vector<8x1024xbf16>, vector<16x1024xf32> -> vector<16x1024xf32>
    %33 = arith.addf %29, %32 : vector<16x1024xf32>
    %c0_18 = arith.constant 0 : index
    %c0_19 = arith.constant 0 : index
    %34 = vector.load %arg9[%c0_18, %c0_19] : memref<1x1024xf32, #tpu.memory_space<vmem>>, vector<1x1024xf32>
    %35 = vector.broadcast %34 : vector<1x1024xf32> to vector<16x1024xf32>
    %36 = arith.addf %33, %35 : vector<16x1024xf32>
    %c0_20 = arith.constant 0 : index
    %c0_21 = arith.constant 0 : index
    %37 = vector.load %arg16[%c0_20, %c0_21] : memref<16x1024xf32, #tpu.memory_space<vmem>>, vector<16x1024xf32>
    tpu.vector_store %arg16[%c0_20, %c0_21], %36 {strides = array<i32>} : memref<16x1024xf32, #tpu.memory_space<vmem>>, vector<16x1024xf32>,
    %c0_22 = arith.constant 0 : index
    %c0_23 = arith.constant 0 : index
    %38 = vector.load %arg4[%c0_22, %c0_23] : memref<2x512xf32, #tpu.memory_space<vmem>>, vector<2x256xf32>
    %c0_24 = arith.constant 0 : index
    %c256 = arith.constant 256 : index
    %39 = vector.load %arg4[%c0_24, %c256] : memref<2x512xf32, #tpu.memory_space<vmem>>, vector<2x256xf32>
    %c0_25 = arith.constant 0 : index
    %c0_26 = arith.constant 0 : index
    %40 = vector.load %arg10[%c0_25, %c0_26] : memref<256x1024xbf16, #tpu.memory_space<vmem>>, vector<256x1024xbf16>
    %c0_27 = arith.constant 0 : index
    %c0_28 = arith.constant 0 : index
    %41 = vector.load %arg16[%c0_27, %c0_28] : memref<16x1024xf32, #tpu.memory_space<vmem>>, vector<1x1024xf32>
    %c8 = arith.constant 8 : index
    %c0_29 = arith.constant 0 : index
    %42 = vector.load %arg16[%c8, %c0_29] : memref<16x1024xf32, #tpu.memory_space<vmem>>, vector<1x1024xf32>
    %43 = tpu.concatenate %41, %42 in 0 : vector<1x1024xf32>, vector<1x1024xf32> -> vector<2x1024xf32>
    %44 = arith.truncf %38 : vector<2x256xf32> to vector<2x256xbf16>
    %cst_30 = arith.constant dense<0.000000e+00> : vector<2x1024xf32>
    %45 = tpu.matmul %44, %40, %cst_30 {dimension_numbers = #tpu.dot_dimension_numbers<[1], [0], [0], [1], [0, 0, 1, 1], [], []>} : vector<2x256xbf16>, vector<256x1024xbf16>, vector<2x1024xf32> -> vector<2x1024xf32>
    %46 = arith.addf %43, %45 : vector<2x1024xf32>
    %47 = vector.extract_strided_slice %46 {offsets = [0, 0], sizes = [2, 256], strides = [1, 1]} : vector<2x1024xf32> to vector<2x256xf32>
    %48 = arith.negf %47 : vector<2x256xf32>
    %49 = math.exp %48 : vector<2x256xf32>
    %cst_31 = arith.constant 1.000000e+00 : f32
    %50 = vector.broadcast %cst_31 : f32 to vector<2x256xf32>
    %51 = arith.addf %50, %49 : vector<2x256xf32>
    %52 = arith.divf %50, %51 : vector<2x256xf32>
    %53 = vector.extract_strided_slice %46 {offsets = [0, 256], sizes = [2, 256], strides = [1, 1]} : vector<2x1024xf32> to vector<2x256xf32>
    %54 = arith.negf %53 : vector<2x256xf32>
    %55 = math.exp %54 : vector<2x256xf32>
    %cst_32 = arith.constant 1.000000e+00 : f32
    %56 = vector.broadcast %cst_32 : f32 to vector<2x256xf32>
    %57 = arith.addf %56, %55 : vector<2x256xf32>
    %58 = arith.divf %56, %57 : vector<2x256xf32>
    %59 = vector.extract_strided_slice %46 {offsets = [0, 512], sizes = [2, 256], strides = [1, 1]} : vector<2x1024xf32> to vector<2x256xf32>
    %60 = math.tanh %59 : vector<2x256xf32>
    %61 = vector.extract_strided_slice %46 {offsets = [0, 768], sizes = [2, 256], strides = [1, 1]} : vector<2x1024xf32> to vector<2x256xf32>
    %62 = arith.negf %61 : vector<2x256xf32>
    %63 = math.exp %62 : vector<2x256xf32>
    %cst_33 = arith.constant 1.000000e+00 : f32
    %64 = vector.broadcast %cst_33 : f32 to vector<2x256xf32>
    %65 = arith.addf %64, %63 : vector<2x256xf32>
    %66 = arith.divf %64, %65 : vector<2x256xf32>
    %67 = arith.mulf %58, %39 : vector<2x256xf32>
    %68 = arith.mulf %52, %60 : vector<2x256xf32>
    %69 = arith.addf %67, %68 : vector<2x256xf32>
    %70 = math.tanh %69 : vector<2x256xf32>
    %71 = arith.mulf %66, %70 : vector<2x256xf32>
    %72 = vector.extract_strided_slice %71 {offsets = [0, 0], sizes = [1, 256], strides = [1, 1]} : vector<2x256xf32> to vector<1x256xf32>
    %c0_34 = arith.constant 0 : index
    %c0_35 = arith.constant 0 : index
    %73 = vector.load %arg13[%c0_34, %c0_35] : memref<16x256xf32, #tpu.memory_space<vmem>>, vector<1x256xf32>
    tpu.vector_store %arg13[%c0_34, %c0_35], %72 {strides = array<i32>} : memref<16x256xf32, #tpu.memory_space<vmem>>, vector<1x256xf32>,
    %74 = vector.extract_strided_slice %71 {offsets = [1, 0], sizes = [1, 256], strides = [1, 1]} : vector<2x256xf32> to vector<1x256xf32>
    %c8_36 = arith.constant 8 : index
    %c0_37 = arith.constant 0 : index
    %75 = vector.load %arg13[%c8_36, %c0_37] : memref<16x256xf32, #tpu.memory_space<vmem>>, vector<1x256xf32>
    tpu.vector_store %arg13[%c8_36, %c0_37], %74 {strides = array<i32>} : memref<16x256xf32, #tpu.memory_space<vmem>>, vector<1x256xf32>,
    %c1 = arith.constant 1 : index
    %c0_38 = arith.constant 0 : index
    %76 = vector.load %arg16[%c1, %c0_38] : memref<16x1024xf32, #tpu.memory_space<vmem>>, vector<1x1024xf32>
    %c9 = arith.constant 9 : index
    %c0_39 = arith.constant 0 : index
    %77 = vector.load %arg16[%c9, %c0_39] : memref<16x1024xf32, #tpu.memory_space<vmem>>, vector<1x1024xf32>
    %78 = tpu.concatenate %76, %77 in 0 : vector<1x1024xf32>, vector<1x1024xf32> -> vector<2x1024xf32>
    %79 = arith.truncf %71 : vector<2x256xf32> to vector<2x256xbf16>
    %cst_40 = arith.constant dense<0.000000e+00> : vector<2x1024xf32>
    %80 = tpu.matmul %79, %40, %cst_40 {dimension_numbers = #tpu.dot_dimension_numbers<[1], [0], [0], [1], [0, 0, 1, 1], [], []>} : vector<2x256xbf16>, vector<256x1024xbf16>, vector<2x1024xf32> -> vector<2x1024xf32>
    %81 = arith.addf %78, %80 : vector<2x1024xf32>
    %82 = vector.extract_strided_slice %81 {offsets = [0, 0], sizes = [2, 256], strides = [1, 1]} : vector<2x1024xf32> to vector<2x256xf32>
    %83 = arith.negf %82 : vector<2x256xf32>
    %84 = math.exp %83 : vector<2x256xf32>
    %cst_41 = arith.constant 1.000000e+00 : f32
    %85 = vector.broadcast %cst_41 : f32 to vector<2x256xf32>
    %86 = arith.addf %85, %84 : vector<2x256xf32>
    %87 = arith.divf %85, %86 : vector<2x256xf32>
    %88 = vector.extract_strided_slice %81 {offsets = [0, 256], sizes = [2, 256], strides = [1, 1]} : vector<2x1024xf32> to vector<2x256xf32>
    %89 = arith.negf %88 : vector<2x256xf32>
    %90 = math.exp %89 : vector<2x256xf32>
    %cst_42 = arith.constant 1.000000e+00 : f32
    %91 = vector.broadcast %cst_42 : f32 to vector<2x256xf32>
    %92 = arith.addf %91, %90 : vector<2x256xf32>
    %93 = arith.divf %91, %92 : vector<2x256xf32>
    %94 = vector.extract_strided_slice %81 {offsets = [0, 512], sizes = [2, 256], strides = [1, 1]} : vector<2x1024xf32> to vector<2x256xf32>
    %95 = math.tanh %94 : vector<2x256xf32>
    %96 = vector.extract_strided_slice %81 {offsets = [0, 768], sizes = [2, 256], strides = [1, 1]} : vector<2x1024xf32> to vector<2x256xf32>
    %97 = arith.negf %96 : vector<2x256xf32>
    %98 = math.exp %97 : vector<2x256xf32>
    %cst_43 = arith.constant 1.000000e+00 : f32
    %99 = vector.broadcast %cst_43 : f32 to vector<2x256xf32>
    %100 = arith.addf %99, %98 : vector<2x256xf32>
    %101 = arith.divf %99, %100 : vector<2x256xf32>
    %102 = arith.mulf %93, %69 : vector<2x256xf32>
    %103 = arith.mulf %87, %95 : vector<2x256xf32>
    %104 = arith.addf %102, %103 : vector<2x256xf32>
    %105 = math.tanh %104 : vector<2x256xf32>
    %106 = arith.mulf %101, %105 : vector<2x256xf32>
    %107 = vector.extract_strided_slice %106 {offsets = [0, 0], sizes = [1, 256], strides = [1, 1]} : vector<2x256xf32> to vector<1x256xf32>
    %c1_44 = arith.constant 1 : index
    %c0_45 = arith.constant 0 : index
    %108 = vector.load %arg13[%c1_44, %c0_45] : memref<16x256xf32, #tpu.memory_space<vmem>>, vector<1x256xf32>
    tpu.vector_store %arg13[%c1_44, %c0_45], %107 {strides = array<i32>} : memref<16x256xf32, #tpu.memory_space<vmem>>, vector<1x256xf32>,
    %109 = vector.extract_strided_slice %106 {offsets = [1, 0], sizes = [1, 256], strides = [1, 1]} : vector<2x256xf32> to vector<1x256xf32>
    %c9_46 = arith.constant 9 : index
    %c0_47 = arith.constant 0 : index
    %110 = vector.load %arg13[%c9_46, %c0_47] : memref<16x256xf32, #tpu.memory_space<vmem>>, vector<1x256xf32>
    tpu.vector_store %arg13[%c9_46, %c0_47], %109 {strides = array<i32>} : memref<16x256xf32, #tpu.memory_space<vmem>>, vector<1x256xf32>,
    %c2 = arith.constant 2 : index
    %c0_48 = arith.constant 0 : index
    %111 = vector.load %arg16[%c2, %c0_48] : memref<16x1024xf32, #tpu.memory_space<vmem>>, vector<1x1024xf32>
    %c10 = arith.constant 10 : index
    %c0_49 = arith.constant 0 : index
    %112 = vector.load %arg16[%c10, %c0_49] : memref<16x1024xf32, #tpu.memory_space<vmem>>, vector<1x1024xf32>
    %113 = tpu.concatenate %111, %112 in 0 : vector<1x1024xf32>, vector<1x1024xf32> -> vector<2x1024xf32>
    %114 = arith.truncf %106 : vector<2x256xf32> to vector<2x256xbf16>
    %cst_50 = arith.constant dense<0.000000e+00> : vector<2x1024xf32>
    %115 = tpu.matmul %114, %40, %cst_50 {dimension_numbers = #tpu.dot_dimension_numbers<[1], [0], [0], [1], [0, 0, 1, 1], [], []>} : vector<2x256xbf16>, vector<256x1024xbf16>, vector<2x1024xf32> -> vector<2x1024xf32>
    %116 = arith.addf %113, %115 : vector<2x1024xf32>
    %117 = vector.extract_strided_slice %116 {offsets = [0, 0], sizes = [2, 256], strides = [1, 1]} : vector<2x1024xf32> to vector<2x256xf32>
    %118 = arith.negf %117 : vector<2x256xf32>
    %119 = math.exp %118 : vector<2x256xf32>
    %cst_51 = arith.constant 1.000000e+00 : f32
    %120 = vector.broadcast %cst_51 : f32 to vector<2x256xf32>
    %121 = arith.addf %120, %119 : vector<2x256xf32>
    %122 = arith.divf %120, %121 : vector<2x256xf32>
    %123 = vector.extract_strided_slice %116 {offsets = [0, 256], sizes = [2, 256], strides = [1, 1]} : vector<2x1024xf32> to vector<2x256xf32>
    %124 = arith.negf %123 : vector<2x256xf32>
    %125 = math.exp %124 : vector<2x256xf32>
    %cst_52 = arith.constant 1.000000e+00 : f32
    %126 = vector.broadcast %cst_52 : f32 to vector<2x256xf32>
    %127 = arith.addf %126, %125 : vector<2x256xf32>
    %128 = arith.divf %126, %127 : vector<2x256xf32>
    %129 = vector.extract_strided_slice %116 {offsets = [0, 512], sizes = [2, 256], strides = [1, 1]} : vector<2x1024xf32> to vector<2x256xf32>
    %130 = math.tanh %129 : vector<2x256xf32>
    %131 = vector.extract_strided_slice %116 {offsets = [0, 768], sizes = [2, 256], strides = [1, 1]} : vector<2x1024xf32> to vector<2x256xf32>
    %132 = arith.negf %131 : vector<2x256xf32>
    %133 = math.exp %132 : vector<2x256xf32>
    %cst_53 = arith.constant 1.000000e+00 : f32
    %134 = vector.broadcast %cst_53 : f32 to vector<2x256xf32>
    %135 = arith.addf %134, %133 : vector<2x256xf32>
    %136 = arith.divf %134, %135 : vector<2x256xf32>
    %137 = arith.mulf %128, %104 : vector<2x256xf32>
    %138 = arith.mulf %122, %130 : vector<2x256xf32>
    %139 = arith.addf %137, %138 : vector<2x256xf32>
    %140 = math.tanh %139 : vector<2x256xf32>
    %141 = arith.mulf %136, %140 : vector<2x256xf32>
    %142 = vector.extract_strided_slice %141 {offsets = [0, 0], sizes = [1, 256], strides = [1, 1]} : vector<2x256xf32> to vector<1x256xf32>
    %c2_54 = arith.constant 2 : index
    %c0_55 = arith.constant 0 : index
    %143 = vector.load %arg13[%c2_54, %c0_55] : memref<16x256xf32, #tpu.memory_space<vmem>>, vector<1x256xf32>
    tpu.vector_store %arg13[%c2_54, %c0_55], %142 {strides = array<i32>} : memref<16x256xf32, #tpu.memory_space<vmem>>, vector<1x256xf32>,
    %144 = vector.extract_strided_slice %141 {offsets = [1, 0], sizes = [1, 256], strides = [1, 1]} : vector<2x256xf32> to vector<1x256xf32>
    %c10_56 = arith.constant 10 : index
    %c0_57 = arith.constant 0 : index
    %145 = vector.load %arg13[%c10_56, %c0_57] : memref<16x256xf32, #tpu.memory_space<vmem>>, vector<1x256xf32>
    tpu.vector_store %arg13[%c10_56, %c0_57], %144 {strides = array<i32>} : memref<16x256xf32, #tpu.memory_space<vmem>>, vector<1x256xf32>,
    %c3 = arith.constant 3 : index
    %c0_58 = arith.constant 0 : index
    %146 = vector.load %arg16[%c3, %c0_58] : memref<16x1024xf32, #tpu.memory_space<vmem>>, vector<1x1024xf32>
    %c11 = arith.constant 11 : index
    %c0_59 = arith.constant 0 : index
    %147 = vector.load %arg16[%c11, %c0_59] : memref<16x1024xf32, #tpu.memory_space<vmem>>, vector<1x1024xf32>
    %148 = tpu.concatenate %146, %147 in 0 : vector<1x1024xf32>, vector<1x1024xf32> -> vector<2x1024xf32>
    %149 = arith.truncf %141 : vector<2x256xf32> to vector<2x256xbf16>
    %cst_60 = arith.constant dense<0.000000e+00> : vector<2x1024xf32>
    %150 = tpu.matmul %149, %40, %cst_60 {dimension_numbers = #tpu.dot_dimension_numbers<[1], [0], [0], [1], [0, 0, 1, 1], [], []>} : vector<2x256xbf16>, vector<256x1024xbf16>, vector<2x1024xf32> -> vector<2x1024xf32>
    %151 = arith.addf %148, %150 : vector<2x1024xf32>
    %152 = vector.extract_strided_slice %151 {offsets = [0, 0], sizes = [2, 256], strides = [1, 1]} : vector<2x1024xf32> to vector<2x256xf32>
    %153 = arith.negf %152 : vector<2x256xf32>
    %154 = math.exp %153 : vector<2x256xf32>
    %cst_61 = arith.constant 1.000000e+00 : f32
    %155 = vector.broadcast %cst_61 : f32 to vector<2x256xf32>
    %156 = arith.addf %155, %154 : vector<2x256xf32>
    %157 = arith.divf %155, %156 : vector<2x256xf32>
    %158 = vector.extract_strided_slice %151 {offsets = [0, 256], sizes = [2, 256], strides = [1, 1]} : vector<2x1024xf32> to vector<2x256xf32>
    %159 = arith.negf %158 : vector<2x256xf32>
    %160 = math.exp %159 : vector<2x256xf32>
    %cst_62 = arith.constant 1.000000e+00 : f32
    %161 = vector.broadcast %cst_62 : f32 to vector<2x256xf32>
    %162 = arith.addf %161, %160 : vector<2x256xf32>
    %163 = arith.divf %161, %162 : vector<2x256xf32>
    %164 = vector.extract_strided_slice %151 {offsets = [0, 512], sizes = [2, 256], strides = [1, 1]} : vector<2x1024xf32> to vector<2x256xf32>
    %165 = math.tanh %164 : vector<2x256xf32>
    %166 = vector.extract_strided_slice %151 {offsets = [0, 768], sizes = [2, 256], strides = [1, 1]} : vector<2x1024xf32> to vector<2x256xf32>
    %167 = arith.negf %166 : vector<2x256xf32>
    %168 = math.exp %167 : vector<2x256xf32>
    %cst_63 = arith.constant 1.000000e+00 : f32
    %169 = vector.broadcast %cst_63 : f32 to vector<2x256xf32>
    %170 = arith.addf %169, %168 : vector<2x256xf32>
    %171 = arith.divf %169, %170 : vector<2x256xf32>
    %172 = arith.mulf %163, %139 : vector<2x256xf32>
    %173 = arith.mulf %157, %165 : vector<2x256xf32>
    %174 = arith.addf %172, %173 : vector<2x256xf32>
    %175 = math.tanh %174 : vector<2x256xf32>
    %176 = arith.mulf %171, %175 : vector<2x256xf32>
    %177 = vector.extract_strided_slice %176 {offsets = [0, 0], sizes = [1, 256], strides = [1, 1]} : vector<2x256xf32> to vector<1x256xf32>
    %c3_64 = arith.constant 3 : index
    %c0_65 = arith.constant 0 : index
    %178 = vector.load %arg13[%c3_64, %c0_65] : memref<16x256xf32, #tpu.memory_space<vmem>>, vector<1x256xf32>
    tpu.vector_store %arg13[%c3_64, %c0_65], %177 {strides = array<i32>} : memref<16x256xf32, #tpu.memory_space<vmem>>, vector<1x256xf32>,
    %179 = vector.extract_strided_slice %176 {offsets = [1, 0], sizes = [1, 256], strides = [1, 1]} : vector<2x256xf32> to vector<1x256xf32>
    %c11_66 = arith.constant 11 : index
    %c0_67 = arith.constant 0 : index
    %180 = vector.load %arg13[%c11_66, %c0_67] : memref<16x256xf32, #tpu.memory_space<vmem>>, vector<1x256xf32>
    tpu.vector_store %arg13[%c11_66, %c0_67], %179 {strides = array<i32>} : memref<16x256xf32, #tpu.memory_space<vmem>>, vector<1x256xf32>,
    %c4 = arith.constant 4 : index
    %c0_68 = arith.constant 0 : index
    %181 = vector.load %arg16[%c4, %c0_68] : memref<16x1024xf32, #tpu.memory_space<vmem>>, vector<1x1024xf32>
    %c12 = arith.constant 12 : index
    %c0_69 = arith.constant 0 : index
    %182 = vector.load %arg16[%c12, %c0_69] : memref<16x1024xf32, #tpu.memory_space<vmem>>, vector<1x1024xf32>
    %183 = tpu.concatenate %181, %182 in 0 : vector<1x1024xf32>, vector<1x1024xf32> -> vector<2x1024xf32>
    %184 = arith.truncf %176 : vector<2x256xf32> to vector<2x256xbf16>
    %cst_70 = arith.constant dense<0.000000e+00> : vector<2x1024xf32>
    %185 = tpu.matmul %184, %40, %cst_70 {dimension_numbers = #tpu.dot_dimension_numbers<[1], [0], [0], [1], [0, 0, 1, 1], [], []>} : vector<2x256xbf16>, vector<256x1024xbf16>, vector<2x1024xf32> -> vector<2x1024xf32>
    %186 = arith.addf %183, %185 : vector<2x1024xf32>
    %187 = vector.extract_strided_slice %186 {offsets = [0, 0], sizes = [2, 256], strides = [1, 1]} : vector<2x1024xf32> to vector<2x256xf32>
    %188 = arith.negf %187 : vector<2x256xf32>
    %189 = math.exp %188 : vector<2x256xf32>
    %cst_71 = arith.constant 1.000000e+00 : f32
    %190 = vector.broadcast %cst_71 : f32 to vector<2x256xf32>
    %191 = arith.addf %190, %189 : vector<2x256xf32>
    %192 = arith.divf %190, %191 : vector<2x256xf32>
    %193 = vector.extract_strided_slice %186 {offsets = [0, 256], sizes = [2, 256], strides = [1, 1]} : vector<2x1024xf32> to vector<2x256xf32>
    %194 = arith.negf %193 : vector<2x256xf32>
    %195 = math.exp %194 : vector<2x256xf32>
    %cst_72 = arith.constant 1.000000e+00 : f32
    %196 = vector.broadcast %cst_72 : f32 to vector<2x256xf32>
    %197 = arith.addf %196, %195 : vector<2x256xf32>
    %198 = arith.divf %196, %197 : vector<2x256xf32>
    %199 = vector.extract_strided_slice %186 {offsets = [0, 512], sizes = [2, 256], strides = [1, 1]} : vector<2x1024xf32> to vector<2x256xf32>
    %200 = math.tanh %199 : vector<2x256xf32>
    %201 = vector.extract_strided_slice %186 {offsets = [0, 768], sizes = [2, 256], strides = [1, 1]} : vector<2x1024xf32> to vector<2x256xf32>
    %202 = arith.negf %201 : vector<2x256xf32>
    %203 = math.exp %202 : vector<2x256xf32>
    %cst_73 = arith.constant 1.000000e+00 : f32
    %204 = vector.broadcast %cst_73 : f32 to vector<2x256xf32>
    %205 = arith.addf %204, %203 : vector<2x256xf32>
    %206 = arith.divf %204, %205 : vector<2x256xf32>
    %207 = arith.mulf %198, %174 : vector<2x256xf32>
    %208 = arith.mulf %192, %200 : vector<2x256xf32>
    %209 = arith.addf %207, %208 : vector<2x256xf32>
    %210 = math.tanh %209 : vector<2x256xf32>
    %211 = arith.mulf %206, %210 : vector<2x256xf32>
    %212 = vector.extract_strided_slice %211 {offsets = [0, 0], sizes = [1, 256], strides = [1, 1]} : vector<2x256xf32> to vector<1x256xf32>
    %c4_74 = arith.constant 4 : index
    %c0_75 = arith.constant 0 : index
    %213 = vector.load %arg13[%c4_74, %c0_75] : memref<16x256xf32, #tpu.memory_space<vmem>>, vector<1x256xf32>
    tpu.vector_store %arg13[%c4_74, %c0_75], %212 {strides = array<i32>} : memref<16x256xf32, #tpu.memory_space<vmem>>, vector<1x256xf32>,
    %214 = vector.extract_strided_slice %211 {offsets = [1, 0], sizes = [1, 256], strides = [1, 1]} : vector<2x256xf32> to vector<1x256xf32>
    %c12_76 = arith.constant 12 : index
    %c0_77 = arith.constant 0 : index
    %215 = vector.load %arg13[%c12_76, %c0_77] : memref<16x256xf32, #tpu.memory_space<vmem>>, vector<1x256xf32>
    tpu.vector_store %arg13[%c12_76, %c0_77], %214 {strides = array<i32>} : memref<16x256xf32, #tpu.memory_space<vmem>>, vector<1x256xf32>,
    %c5 = arith.constant 5 : index
    %c0_78 = arith.constant 0 : index
    %216 = vector.load %arg16[%c5, %c0_78] : memref<16x1024xf32, #tpu.memory_space<vmem>>, vector<1x1024xf32>
    %c13 = arith.constant 13 : index
    %c0_79 = arith.constant 0 : index
    %217 = vector.load %arg16[%c13, %c0_79] : memref<16x1024xf32, #tpu.memory_space<vmem>>, vector<1x1024xf32>
    %218 = tpu.concatenate %216, %217 in 0 : vector<1x1024xf32>, vector<1x1024xf32> -> vector<2x1024xf32>
    %219 = arith.truncf %211 : vector<2x256xf32> to vector<2x256xbf16>
    %cst_80 = arith.constant dense<0.000000e+00> : vector<2x1024xf32>
    %220 = tpu.matmul %219, %40, %cst_80 {dimension_numbers = #tpu.dot_dimension_numbers<[1], [0], [0], [1], [0, 0, 1, 1], [], []>} : vector<2x256xbf16>, vector<256x1024xbf16>, vector<2x1024xf32> -> vector<2x1024xf32>
    %221 = arith.addf %218, %220 : vector<2x1024xf32>
    %222 = vector.extract_strided_slice %221 {offsets = [0, 0], sizes = [2, 256], strides = [1, 1]} : vector<2x1024xf32> to vector<2x256xf32>
    %223 = arith.negf %222 : vector<2x256xf32>
    %224 = math.exp %223 : vector<2x256xf32>
    %cst_81 = arith.constant 1.000000e+00 : f32
    %225 = vector.broadcast %cst_81 : f32 to vector<2x256xf32>
    %226 = arith.addf %225, %224 : vector<2x256xf32>
    %227 = arith.divf %225, %226 : vector<2x256xf32>
    %228 = vector.extract_strided_slice %221 {offsets = [0, 256], sizes = [2, 256], strides = [1, 1]} : vector<2x1024xf32> to vector<2x256xf32>
    %229 = arith.negf %228 : vector<2x256xf32>
    %230 = math.exp %229 : vector<2x256xf32>
    %cst_82 = arith.constant 1.000000e+00 : f32
    %231 = vector.broadcast %cst_82 : f32 to vector<2x256xf32>
    %232 = arith.addf %231, %230 : vector<2x256xf32>
    %233 = arith.divf %231, %232 : vector<2x256xf32>
    %234 = vector.extract_strided_slice %221 {offsets = [0, 512], sizes = [2, 256], strides = [1, 1]} : vector<2x1024xf32> to vector<2x256xf32>
    %235 = math.tanh %234 : vector<2x256xf32>
    %236 = vector.extract_strided_slice %221 {offsets = [0, 768], sizes = [2, 256], strides = [1, 1]} : vector<2x1024xf32> to vector<2x256xf32>
    %237 = arith.negf %236 : vector<2x256xf32>
    %238 = math.exp %237 : vector<2x256xf32>
    %cst_83 = arith.constant 1.000000e+00 : f32
    %239 = vector.broadcast %cst_83 : f32 to vector<2x256xf32>
    %240 = arith.addf %239, %238 : vector<2x256xf32>
    %241 = arith.divf %239, %240 : vector<2x256xf32>
    %242 = arith.mulf %233, %209 : vector<2x256xf32>
    %243 = arith.mulf %227, %235 : vector<2x256xf32>
    %244 = arith.addf %242, %243 : vector<2x256xf32>
    %245 = math.tanh %244 : vector<2x256xf32>
    %246 = arith.mulf %241, %245 : vector<2x256xf32>
    %247 = vector.extract_strided_slice %246 {offsets = [0, 0], sizes = [1, 256], strides = [1, 1]} : vector<2x256xf32> to vector<1x256xf32>
    %c5_84 = arith.constant 5 : index
    %c0_85 = arith.constant 0 : index
    %248 = vector.load %arg13[%c5_84, %c0_85] : memref<16x256xf32, #tpu.memory_space<vmem>>, vector<1x256xf32>
    tpu.vector_store %arg13[%c5_84, %c0_85], %247 {strides = array<i32>} : memref<16x256xf32, #tpu.memory_space<vmem>>, vector<1x256xf32>,
    %249 = vector.extract_strided_slice %246 {offsets = [1, 0], sizes = [1, 256], strides = [1, 1]} : vector<2x256xf32> to vector<1x256xf32>
    %c13_86 = arith.constant 13 : index
    %c0_87 = arith.constant 0 : index
    %250 = vector.load %arg13[%c13_86, %c0_87] : memref<16x256xf32, #tpu.memory_space<vmem>>, vector<1x256xf32>
    tpu.vector_store %arg13[%c13_86, %c0_87], %249 {strides = array<i32>} : memref<16x256xf32, #tpu.memory_space<vmem>>, vector<1x256xf32>,
    %c6 = arith.constant 6 : index
    %c0_88 = arith.constant 0 : index
    %251 = vector.load %arg16[%c6, %c0_88] : memref<16x1024xf32, #tpu.memory_space<vmem>>, vector<1x1024xf32>
    %c14 = arith.constant 14 : index
    %c0_89 = arith.constant 0 : index
    %252 = vector.load %arg16[%c14, %c0_89] : memref<16x1024xf32, #tpu.memory_space<vmem>>, vector<1x1024xf32>
    %253 = tpu.concatenate %251, %252 in 0 : vector<1x1024xf32>, vector<1x1024xf32> -> vector<2x1024xf32>
    %254 = arith.truncf %246 : vector<2x256xf32> to vector<2x256xbf16>
    %cst_90 = arith.constant dense<0.000000e+00> : vector<2x1024xf32>
    %255 = tpu.matmul %254, %40, %cst_90 {dimension_numbers = #tpu.dot_dimension_numbers<[1], [0], [0], [1], [0, 0, 1, 1], [], []>} : vector<2x256xbf16>, vector<256x1024xbf16>, vector<2x1024xf32> -> vector<2x1024xf32>
    %256 = arith.addf %253, %255 : vector<2x1024xf32>
    %257 = vector.extract_strided_slice %256 {offsets = [0, 0], sizes = [2, 256], strides = [1, 1]} : vector<2x1024xf32> to vector<2x256xf32>
    %258 = arith.negf %257 : vector<2x256xf32>
    %259 = math.exp %258 : vector<2x256xf32>
    %cst_91 = arith.constant 1.000000e+00 : f32
    %260 = vector.broadcast %cst_91 : f32 to vector<2x256xf32>
    %261 = arith.addf %260, %259 : vector<2x256xf32>
    %262 = arith.divf %260, %261 : vector<2x256xf32>
    %263 = vector.extract_strided_slice %256 {offsets = [0, 256], sizes = [2, 256], strides = [1, 1]} : vector<2x1024xf32> to vector<2x256xf32>
    %264 = arith.negf %263 : vector<2x256xf32>
    %265 = math.exp %264 : vector<2x256xf32>
    %cst_92 = arith.constant 1.000000e+00 : f32
    %266 = vector.broadcast %cst_92 : f32 to vector<2x256xf32>
    %267 = arith.addf %266, %265 : vector<2x256xf32>
    %268 = arith.divf %266, %267 : vector<2x256xf32>
    %269 = vector.extract_strided_slice %256 {offsets = [0, 512], sizes = [2, 256], strides = [1, 1]} : vector<2x1024xf32> to vector<2x256xf32>
    %270 = math.tanh %269 : vector<2x256xf32>
    %271 = vector.extract_strided_slice %256 {offsets = [0, 768], sizes = [2, 256], strides = [1, 1]} : vector<2x1024xf32> to vector<2x256xf32>
    %272 = arith.negf %271 : vector<2x256xf32>
    %273 = math.exp %272 : vector<2x256xf32>
    %cst_93 = arith.constant 1.000000e+00 : f32
    %274 = vector.broadcast %cst_93 : f32 to vector<2x256xf32>
    %275 = arith.addf %274, %273 : vector<2x256xf32>
    %276 = arith.divf %274, %275 : vector<2x256xf32>
    %277 = arith.mulf %268, %244 : vector<2x256xf32>
    %278 = arith.mulf %262, %270 : vector<2x256xf32>
    %279 = arith.addf %277, %278 : vector<2x256xf32>
    %280 = math.tanh %279 : vector<2x256xf32>
    %281 = arith.mulf %276, %280 : vector<2x256xf32>
    %282 = vector.extract_strided_slice %281 {offsets = [0, 0], sizes = [1, 256], strides = [1, 1]} : vector<2x256xf32> to vector<1x256xf32>
    %c6_94 = arith.constant 6 : index
    %c0_95 = arith.constant 0 : index
    %283 = vector.load %arg13[%c6_94, %c0_95] : memref<16x256xf32, #tpu.memory_space<vmem>>, vector<1x256xf32>
    tpu.vector_store %arg13[%c6_94, %c0_95], %282 {strides = array<i32>} : memref<16x256xf32, #tpu.memory_space<vmem>>, vector<1x256xf32>,
    %284 = vector.extract_strided_slice %281 {offsets = [1, 0], sizes = [1, 256], strides = [1, 1]} : vector<2x256xf32> to vector<1x256xf32>
    %c14_96 = arith.constant 14 : index
    %c0_97 = arith.constant 0 : index
    %285 = vector.load %arg13[%c14_96, %c0_97] : memref<16x256xf32, #tpu.memory_space<vmem>>, vector<1x256xf32>
    tpu.vector_store %arg13[%c14_96, %c0_97], %284 {strides = array<i32>} : memref<16x256xf32, #tpu.memory_space<vmem>>, vector<1x256xf32>,
    %c7 = arith.constant 7 : index
    %c0_98 = arith.constant 0 : index
    %286 = vector.load %arg16[%c7, %c0_98] : memref<16x1024xf32, #tpu.memory_space<vmem>>, vector<1x1024xf32>
    %c15 = arith.constant 15 : index
    %c0_99 = arith.constant 0 : index
    %287 = vector.load %arg16[%c15, %c0_99] : memref<16x1024xf32, #tpu.memory_space<vmem>>, vector<1x1024xf32>
    %288 = tpu.concatenate %286, %287 in 0 : vector<1x1024xf32>, vector<1x1024xf32> -> vector<2x1024xf32>
    %289 = arith.truncf %281 : vector<2x256xf32> to vector<2x256xbf16>
    %cst_100 = arith.constant dense<0.000000e+00> : vector<2x1024xf32>
    %290 = tpu.matmul %289, %40, %cst_100 {dimension_numbers = #tpu.dot_dimension_numbers<[1], [0], [0], [1], [0, 0, 1, 1], [], []>} : vector<2x256xbf16>, vector<256x1024xbf16>, vector<2x1024xf32> -> vector<2x1024xf32>
    %291 = arith.addf %288, %290 : vector<2x1024xf32>
    %292 = vector.extract_strided_slice %291 {offsets = [0, 0], sizes = [2, 256], strides = [1, 1]} : vector<2x1024xf32> to vector<2x256xf32>
    %293 = arith.negf %292 : vector<2x256xf32>
    %294 = math.exp %293 : vector<2x256xf32>
    %cst_101 = arith.constant 1.000000e+00 : f32
    %295 = vector.broadcast %cst_101 : f32 to vector<2x256xf32>
    %296 = arith.addf %295, %294 : vector<2x256xf32>
    %297 = arith.divf %295, %296 : vector<2x256xf32>
    %298 = vector.extract_strided_slice %291 {offsets = [0, 256], sizes = [2, 256], strides = [1, 1]} : vector<2x1024xf32> to vector<2x256xf32>
    %299 = arith.negf %298 : vector<2x256xf32>
    %300 = math.exp %299 : vector<2x256xf32>
    %cst_102 = arith.constant 1.000000e+00 : f32
    %301 = vector.broadcast %cst_102 : f32 to vector<2x256xf32>
    %302 = arith.addf %301, %300 : vector<2x256xf32>
    %303 = arith.divf %301, %302 : vector<2x256xf32>
    %304 = vector.extract_strided_slice %291 {offsets = [0, 512], sizes = [2, 256], strides = [1, 1]} : vector<2x1024xf32> to vector<2x256xf32>
    %305 = math.tanh %304 : vector<2x256xf32>
    %306 = vector.extract_strided_slice %291 {offsets = [0, 768], sizes = [2, 256], strides = [1, 1]} : vector<2x1024xf32> to vector<2x256xf32>
    %307 = arith.negf %306 : vector<2x256xf32>
    %308 = math.exp %307 : vector<2x256xf32>
    %cst_103 = arith.constant 1.000000e+00 : f32
    %309 = vector.broadcast %cst_103 : f32 to vector<2x256xf32>
    %310 = arith.addf %309, %308 : vector<2x256xf32>
    %311 = arith.divf %309, %310 : vector<2x256xf32>
    %312 = arith.mulf %303, %279 : vector<2x256xf32>
    %313 = arith.mulf %297, %305 : vector<2x256xf32>
    %314 = arith.addf %312, %313 : vector<2x256xf32>
    %315 = math.tanh %314 : vector<2x256xf32>
    %316 = arith.mulf %311, %315 : vector<2x256xf32>
    %317 = vector.extract_strided_slice %316 {offsets = [0, 0], sizes = [1, 256], strides = [1, 1]} : vector<2x256xf32> to vector<1x256xf32>
    %c7_104 = arith.constant 7 : index
    %c0_105 = arith.constant 0 : index
    %318 = vector.load %arg13[%c7_104, %c0_105] : memref<16x256xf32, #tpu.memory_space<vmem>>, vector<1x256xf32>
    tpu.vector_store %arg13[%c7_104, %c0_105], %317 {strides = array<i32>} : memref<16x256xf32, #tpu.memory_space<vmem>>, vector<1x256xf32>,
    %319 = vector.extract_strided_slice %316 {offsets = [1, 0], sizes = [1, 256], strides = [1, 1]} : vector<2x256xf32> to vector<1x256xf32>
    %c15_106 = arith.constant 15 : index
    %c0_107 = arith.constant 0 : index
    %320 = vector.load %arg13[%c15_106, %c0_107] : memref<16x256xf32, #tpu.memory_space<vmem>>, vector<1x256xf32>
    tpu.vector_store %arg13[%c15_106, %c0_107], %319 {strides = array<i32>} : memref<16x256xf32, #tpu.memory_space<vmem>>, vector<1x256xf32>,
    %c0_108 = arith.constant 0 : index
    %c0_109 = arith.constant 0 : index
    %321 = vector.load %arg14[%c0_108, %c0_109] : memref<2x512xf32, #tpu.memory_space<vmem>>, vector<2x256xf32>
    tpu.vector_store %arg14[%c0_108, %c0_109], %316 {strides = array<i32>} : memref<2x512xf32, #tpu.memory_space<vmem>>, vector<2x256xf32>,
    %c0_110 = arith.constant 0 : index
    %c256_111 = arith.constant 256 : index
    %322 = vector.load %arg14[%c0_110, %c256_111] : memref<2x512xf32, #tpu.memory_space<vmem>>, vector<2x256xf32>
    tpu.vector_store %arg14[%c0_110, %c256_111], %314 {strides = array<i32>} : memref<2x512xf32, #tpu.memory_space<vmem>>, vector<2x256xf32>,
    %c0_112 = arith.constant 0 : index
    %c0_113 = arith.constant 0 : index
    %323 = vector.load %arg13[%c0_112, %c0_113] : memref<16x256xf32, #tpu.memory_space<vmem>>, vector<16x256xf32>
    %324 = arith.truncf %323 : vector<16x256xf32> to vector<16x256xbf16>
    %c0_114 = arith.constant 0 : index
    %c0_115 = arith.constant 0 : index
    %325 = vector.load %arg11[%c0_114, %c0_115] : memref<256x8xbf16, #tpu.memory_space<vmem>>, vector<256x8xbf16>
    %cst_116 = arith.constant dense<0.000000e+00> : vector<16x8xf32>
    %326 = tpu.matmul %324, %325, %cst_116 {dimension_numbers = #tpu.dot_dimension_numbers<[1], [0], [0], [1], [0, 0, 1, 1], [], []>} : vector<16x256xbf16>, vector<256x8xbf16>, vector<16x8xf32> -> vector<16x8xf32>
    %c0_117 = arith.constant 0 : index
    %c0_118 = arith.constant 0 : index
    %327 = vector.load %arg12[%c0_117, %c0_118] : memref<1x8xf32, #tpu.memory_space<vmem>>, vector<1x8xf32>
    %328 = vector.broadcast %327 : vector<1x8xf32> to vector<16x8xf32>
    %329 = arith.addf %326, %328 : vector<16x8xf32>
    %330 = vector.extract_strided_slice %329 {offsets = [0, 0], sizes = [16, 4], strides = [1, 1]} : vector<16x8xf32> to vector<16x4xf32>
    %cst_119 = arith.constant dense<0xFF800000> : vector<16xf32>
    %331 = vector.multi_reduction <maximumf>, %330, %cst_119 [1] : vector<16x4xf32> to vector<16xf32>
    %332 = vector.shape_cast %331 : vector<16xf32> to vector<16x1xf32>
    %333 = vector.broadcast %332 : vector<16x1xf32> to vector<16x4xf32>
    %334 = arith.subf %330, %333 : vector<16x4xf32>
    %335 = math.exp %334 : vector<16x4xf32>
    %cst_120 = arith.constant dense<0.000000e+00> : vector<16xf32>
    %336 = vector.multi_reduction <add>, %335, %cst_120 [1] : vector<16x4xf32> to vector<16xf32>
    %337 = vector.shape_cast %336 : vector<16xf32> to vector<16x1xf32>
    %338 = tpu.reciprocal %337 {approx = true} : vector<16x1xf32> -> vector<16x1xf32>
    %339 = vector.broadcast %338 : vector<16x1xf32> to vector<16x4xf32>
    %340 = arith.mulf %335, %339 : vector<16x4xf32>
    %341 = vector.extract_strided_slice %329 {offsets = [0, 4], sizes = [16, 4], strides = [1, 1]} : vector<16x8xf32> to vector<16x4xf32>
    %342 = tpu.concatenate %340, %341 in 1 : vector<16x4xf32>, vector<16x4xf32> -> vector<16x8xf32>
    %c0_121 = arith.constant 0 : index
    %c0_122 = arith.constant 0 : index
    %343 = vector.load %arg15[%c0_121, %c0_122] : memref<16x8xf32, #tpu.memory_space<vmem>>, vector<16x8xf32>
    tpu.vector_store %arg15[%c0_121, %c0_122], %342 {strides = array<i32>} : memref<16x8xf32, #tpu.memory_space<vmem>>, vector<16x8xf32>,
    return
  }
}

</mosaic_0001>

<bundles_post_ra>
// kernel: actor_critic_pallas.1
= control target key start
LH: loop header
LB: loop body
LE: loop exit
PB: predicated region body
PF: predicated region fallthrough
CT: control target
= control target key end

     0   :  { %21 = vsyncpa [#allocation4], 0  ;;  %s7534_s0 = inlined_call_operand.vmem [shape: f32[16,50], index: 0, kind: input, shape index: {}]   ;;  %s7535_s1 = inlined_call_operand.vmem [shape: s32[16,1], index: 1, kind: input, shape index: {}]   ;;  %s7536_s2 = inlined_call_operand.vmem [shape: f32[16,1], index: 2, kind: input, shape index: {}]   ;;  %s7537_s3 = inlined_call_operand.vmem [shape: f32[16,1], index: 3, kind: input, shape index: {}]   ;;  %s7538_s4 = inlined_call_operand.vmem [shape: f32[2,512], index: 4, kind: input, shape index: {}]   ;;  %s7539_s5 = inlined_call_operand.vmem [shape: bf16[50,64], index: 5, kind: input, shape index: {}]   ;;  %s7540_s6 = inlined_call_operand.vmem [shape: f32[1,64], index: 6, kind: input, shape index: {}]   ;;  %s7541_s7 = inlined_call_operand.vmem [shape: bf16[64,1024], index: 7, kind: input, shape index: {}]   ;;  %s7542_s8 = inlined_call_operand.vmem [shape: bf16[8,1024], index: 8, kind: input, shape index: {}]   ;;  %s7543_s9 = inlined_call_operand.vmem [shape: f32[1,1024], index: 9, kind: input, shape index: {}]   ;;  %s7544_s10 = inlined_call_operand.hbm [shape: bf16[256,1024], index: 10, kind: input, shape index: {}]   ;;  %s7545_s11 = inlined_call_operand.vmem [shape: bf16[256,8], index: 11, kind: input, shape index: {}]   ;;  %s7546_s12 = inlined_call_operand.vmem [shape: f32[1,8], index: 12, kind: input, shape index: {}]   ;;  %s7547_s13 = inlined_call_operand.hbm [shape: f32[16,256], index: 13, kind: output, shape index: {0}]   ;;  %s7548_s14 = inlined_call_operand.hbm [shape: f32[2,512], index: 14, kind: output, shape index: {1}]   ;;  %s7549_s15 = inlined_call_operand.vmem [shape: f32[16,8], index: 15, kind: output, shape index: {2}]  }
   0x1   :  { %22 = vsyncpa [#allocation5], 0 }
   0x2   :  { %23 = vsyncpa [#allocation8], 0  ;;  %s5428_s18 = smov [#allocation3]  }
   0x3   :  { %s49_s19 = sshll.u32 %s5428_s18, 4  ;;  %s50_s19 = int_to_ptr.vmem [resolvable:$true] %s49_s19 }
   0x4   :  { %s5370_s20 = scalar_lea.vmem %s50_s19, 16384  ;;  %p5375_p1 = scmp.lt.s32.totalorder %s50_s19, %s50_s19 }
   0x5   :  { %p5371_p0 = scmp.ne.s32.totalorder %s50_s19, %s5370_s20  ;;  %p5376_p2 = scmp.lt.s32.totalorder %s5370_s20, %s5370_s20 }
   0x7   :  { %p5377_p3 = por %p5376_p2, %p5375_p1 }
   0x9   :  { %p5378_p4 = pnand %p5377_p3, %p5371_p0 }
   0xb   :  { %5381 = shalt.err (!%p5378_p4)
}
   0xc   :  { %s5429_s21 = smov 512   ;;  %s5430_s22 = smov 32  }
   0xd   :  { %55 = dma.hbm_to_vmem [thread:$0]  %s7544_s10, 16384, %s50_s19, [#allocation4], %s5429_s21, %s5429_s21, %s5430_s22  }
   0xe   :  { %5422 = dma.done.wait [#allocation4], 16384  }
   0xf   :  { %5423 = vsyncadd [#allocation4], 4294950912  ;;  %v5431_v0 = vmov 0.0   ;;  %vm5432_vm0 = vmmov 0   ;;  %v5433_v1 = vmov 0   ;;  %vm106_vm1 = vcmask 1040384  }
  0x10   :  { %5035 = vmatprep.subr.bf16.mxu0 %v5431_v0  ;;  %5043 = vmatprep.mubr.msk.bf16.mxu0 %vm5432_vm0, %v5431_v0  ;;  %v5070_v2 = vld [vmem:[%s7539_s5 + $0x18] ss:$0 sps:$4 sm:$0x11]   ;;  %v5071_v4 = vld [vmem:[%s7539_s5 + $0x10] sm:$0xff]   ;;  %v155_v5 = vld [vmem:[%s7535_s1] sm:$0xff]  ;;  %vm261_vm2 = vcmask 1043456   ;;  %v7550_v35 = vlaneseq }
  0x11   :  { %5058 = vset.pattern.permute.xlu0 %v5433_v1  ;;  %5059 = vset.pattern.permute.xlu1 %v5433_v1  ;;  %v108_v3 = vsel %vm106_vm1, %v5070_v2, 0  ;;  %v170_v6 = vld [vmem:[%s7536_s2] sm:$0xff]  ;;  %v171_v7 = vld [vmem:[%s7536_s2 + $0x8] sm:$0xff]  ;;  %vm102_vm3 = vcmask 408576   ;;  %v236_v24 = vld [vmem:[%s7542_s8 + $0x18] sm:$0xff]  ;;  %vm257_vm8 = vcmask 64512  }
  0x12   :  { %318 = vmatprep.mubr.bf16.mxu1 %v5433_v1  ;;  %5036 = vmatpush3.bf16.msra.mxu0 %v108_v3  ;;  %v156_v8 = vld [vmem:[%s7535_s1 + $0x8] sm:$0xff]  ;;  %v185_v9 = vld [vmem:[%s7537_s3] sm:$0xff]  ;;  %v5060_v10 = vpack.i.bf16 %v171_v7, %v170_v6  ;;  %v4766_v25 = vcombine.high %v236_v24, %v236_v24  ;;  %v4765_v26 = vcombine.low %v236_v24, %v236_v24  ;;  %v154_v36 = vand.u32 127, %v7550_v35  ;;  %v235_v50 = vld [vmem:[%s7542_s8 + $0x10] sm:$0xff] }
  0x13   :  { %5037 = vmatprep.subr.bf16.mxu0 %v5431_v0  ;;  %158 = vperm.xlu0 %5058, %v155_v5   ;;  %v186_v11 = vld [vmem:[%s7537_s3 + $0x8] sm:$0xff]  ;;  %v5073_v14 = vld [vmem:[%s7539_s5] sm:$0xff]   ;;  %v4764_v57 = vcombine.high %v235_v50, %v235_v50  ;;  %v4763_v61 = vcombine.low %v235_v50, %v235_v50  ;;  %v226_v63 = vld [vmem:[%s7541_s7 + $0xd0] sm:$0xff]  ;;  %vm618_vm9 = vcmask 523264   ;;  %vm4689_vm11 = vcmask 31744  }
  0x14   :  { %v5072_v12 = vld [vmem:[%s7539_s5 + $0x8] sm:$0xff]   ;;  %5061 = vperm.xlu1 %5059, %v5060_v10   ;;  %v5065_v13 = vpack.i.bf16 %v186_v11, %v185_v9  ;;  %v64_v15 = vld [vmem:[%s7534_s0] sm:$0xff]  ;;  %v281_v27 = vsel %vm261_vm2, %v4765_v26, 0  ;;  %vm169_vm5 = vcmp.eq.s32.totalorder %v154_v36, 4  ;;  %vm184_vm7 = vcmp.eq.s32.totalorder %v154_v36, 5  ;;  %v218_v10 = vld [vmem:[%s7541_s7 + $0x90] sm:$0xff] }
  0x15   :  { %v65_v16 = vld [vmem:[%s7534_s0 + $0x8] sm:$0xff]  ;;  %v233_v17 = vld [vmem:[%s7542_s8] sm:$0xff]  ;;  %v275_v5 = vsel %vm261_vm2, %v4763_v61, 0  ;;  %v222_v11 = vld [vmem:[%s7541_s7 + $0xb0] sm:$0xff] }
  0x16   :  { %5038 = vmatpush3.bf16.msra.mxu0 %v5071_v4  ;;  %v4760_v18 = vcombine.high %v233_v17, %v233_v17  ;;  %v4759_v19 = vcombine.low %v233_v17, %v233_v17  ;;  %v234_v20 = vld [vmem:[%s7542_s8 + $0x8] sm:$0xff]  ;;  %v66_v21 = vpack.c.bf16 %v65_v16, %v64_v15  ;;  %v224_v28 = vld [vmem:[%s7541_s7 + $0xc0] sm:$0xff]  ;;  %v210_v15 = vld [vmem:[%s7541_s7 + $0x50] sm:$0xff]  ;;  %v4795_v17 = vcombine.low %v218_v10, %v222_v11 }
  0x17   :  { %5039 = vmatprep.subr.bf16.mxu0 %v5431_v0  ;;  %161 = vperm.xlu0 %5058, %v156_v8   ;;  %v4762_v23 = vcombine.high %v234_v20, %v234_v20  ;;  %v228_v29 = vld [vmem:[%s7541_s7 + $0xe0] sm:$0xff]  ;;  %v5591_v32 = vld [vmem:[%s7541_s7 + $0xc8] sm:$0xff]  ;;  %v4761_v47 = vcombine.low %v234_v20, %v234_v20  ;;  %v214_v16 = vld [vmem:[%s7541_s7 + $0x70] sm:$0xff] }
  0x18   :  { %5066 = vperm.xlu1 %5059, %v5065_v13   ;;  %4767 = vmatprep.subr.msk.bf16.mxu1 %vm261_vm2, %v4760_v18  ;;  %v263_v22 = vsel %vm261_vm2, %v4759_v19, 0  ;;  %v4799_v30 = vcombine.low %v224_v28, %v228_v29  ;;  %v4800_v31 = vcombine.high %v224_v28, %v228_v29  ;;  %v5596_v33 = vld [vmem:[%s7541_s7 + $0xe8] sm:$0xff]  ;;  %v216_v51 = vld [vmem:[%s7541_s7 + $0x80] sm:$0xff]  ;;  %v4788_v18 = vcombine.high %v210_v15, %v214_v16  ;;  %v202_v19 = vld [vmem:[%s7541_s7 + $0x10] sm:$0xff] }
  0x19   :  { %301 = vmatpush1.bf16.msra.mxu1 %v263_v22  ;;  %v4801_v34 = vcombine.low %v5591_v32, %v5596_v33  ;;  %v220_v52 = vld [vmem:[%s7541_s7 + $0xa0] sm:$0xff]  ;;  %v269_v56 = vsel %vm261_vm2, %v4761_v47, 0  ;;  %v206_v20 = vld [vmem:[%s7541_s7 + $0x30] sm:$0xff]  ;;  %v209_v50 = vld [vmem:[%s7541_s7 + $0x48] sm:$0xff] }
  0x1a   :  { %5040 = vmatpush3.bf16.msra.mxu0 %v5072_v12  ;;  %4769 = vmatprep.subr.msk.bf16.mxu1 %vm261_vm2, %v4762_v23  ;;  %v4792_v58 = vcombine.high %v216_v51, %v220_v52  ;;  %v208_v59 = vld [vmem:[%s7541_s7 + $0x40] sm:$0xff]  ;;  %v4791_v62 = vcombine.low %v216_v51, %v220_v52  ;;  %v4802_v12 = vcombine.high %v5591_v32, %v5596_v33  ;;  %v213_v51 = vld [vmem:[%s7541_s7 + $0x68] sm:$0xff]  ;;  %v924_v35 = vld [vmem:[#allocation3 + $0x1b0] sm:$0xff] }
  0x1b   :  { %5041 = vmatprep.subr.bf16.mxu0 %v5431_v0  ;;  %v212_v60 = vld [vmem:[%s7541_s7 + $0x60] sm:$0xff]  ;;  %v4780_v22 = vcombine.high %v202_v19, %v206_v20  ;;  %v205_v32 = vld [vmem:[%s7541_s7 + $0x28] sm:$0xff] }
  0x1c   :  { %v4784_v2 = vcombine.high %v208_v59, %v212_v60  ;;  %v200_v3 = vld [vmem:[%s7541_s7] sm:$0xff]  ;;  %v4783_v7 = vcombine.low %v208_v59, %v212_v60  ;;  %v201_v59 = vld [vmem:[%s7541_s7 + $0x8] sm:$0xff]  ;;  %v4785_v60 = vcombine.low %v209_v50, %v213_v51 }
  0x1d   :  { %v204_v4 = vld [vmem:[%s7541_s7 + $0x20] sm:$0xff] }
  0x1e   :  { %5042 = vmatpush3.bf16.msra.mxu0 %v5073_v14  ;;  %v4776_v8 = vcombine.high %v200_v3, %v204_v4  ;;  %v4775_v9 = vcombine.low %v200_v3, %v204_v4  ;;  %v4796_v14 = vcombine.high %v218_v10, %v222_v11  ;;  %v926_v23 = vld [vmem:[#allocation3 + $0x1c0] sm:$0xff]  ;;  %v223_v10 = vld [vmem:[%s7541_s7 + $0xb8] sm:$0xff] }
  0x1f   :  { %4773 = vmatprep.subr.msk.bf16.mxu0 %vm261_vm2, %v4766_v25  ;;  %v930_v24 = vld [vmem:[#allocation3 + $0x1e0] sm:$0xff]  ;;  %v4779_v25 = vcombine.low %v202_v19, %v206_v20 }
  0x20   :  { %v5661_v26 = vcombine.high %v926_v23, %v930_v24  ;;  %v910_v52 = vld [vmem:[#allocation3 + $0x140] sm:$0xff] }
  0x21   :  { %5044 = vmatmul.mubr.msk.bf16.vlgmr.msra.gmra.mxu0 %vm102_vm3, %v66_v21  ;;  %v4787_v21 = vcombine.low %v210_v15, %v214_v16  ;;  %v902_v33 = vld [vmem:[#allocation3 + $0x100] sm:$0xff] }
  0x22   :  { %447 = vmatprep.mubr.bf16.mxu0 %v5433_v1  ;;  %430 = vmatpush1.bf16.msra.mxu0 %v281_v27  ;;  %7835 = vst [vmem:[#allocation12_spill] sm:$0xff] %v5661_v26  ;;  %v4751_v27 = vld [vmem:[%s7540_s6] ss:$0 sm:$0xff] }
  0x23   :  { %630 = vmatprep.subr.bf16.mxu0 %v4800_v31  ;;  %v5670_v31 = vld.sshfl [vmem:[%s7538_s4] sm:$0x33 pattern:$0x76325410] }
  0x24   :  { %v894_v3 = vld [vmem:[#allocation3 + $0xc0] sm:$0xff] }
  0x25   :  { %v898_v4 = vld [vmem:[#allocation3 + $0xe0] sm:$0xff] }
  0x26   :  { %v886_v11 = vld [vmem:[#allocation3 + $0x80] sm:$0xff] }
  0x27   :  { %v878_v19 = vld [vmem:[#allocation3 + $0x40] sm:$0xff] }
  0x28   :  { %v882_v20 = vld [vmem:[#allocation3 + $0x60] sm:$0xff] }
  0x8e   :  { %v159_v37 = vpop.permute.xlu0 %158 }
  0x8f   :  { %vm163_vm4 = vcmp.eq.s32.totalorder %v154_v36, %v159_v37  ;;  %v5062_v38 = vpop.permute.xlu1 %5061 }
  0x90   :  { %v4757_v39 = vsel %vm163_vm4, 1.0, %v5431_v0  ;;  %v5064_v40 = vunpack.i.h.bf16 %v5062_v38  ;;  %v5063_v41 = vunpack.i.l.bf16 %v5062_v38  ;;  %v217_v38 = vld [vmem:[%s7541_s7 + $0x88] sm:$0xff] }
  0x92   :  { %v162_v42 = vpop.permute.xlu0 %161  ;;  %v182_v44 = vsel %vm169_vm5, %v5063_v41, %v4757_v39  ;;  %v918_v41 = vld [vmem:[#allocation3 + $0x180] sm:$0xff] }
  0x93   :  { %vm164_vm6 = vcmp.eq.s32.totalorder %v154_v36, %v162_v42  ;;  %v5067_v46 = vpop.permute.xlu1 %5066  ;;  %v922_v42 = vld [vmem:[#allocation3 + $0x1a0] sm:$0xff] }
  0x94   :  { %v4758_v43 = vsel %vm164_vm6, 1.0, %v5431_v0  ;;  %v5069_v48 = vunpack.i.h.bf16 %v5067_v46  ;;  %v5068_v49 = vunpack.i.l.bf16 %v5067_v46  ;;  %v230_v0 = vld [vmem:[%s7541_s7 + $0xf0] sm:$0xff]  ;;  %v5680_v46 = vcombine.low %v926_v23, %v930_v24 }
  0x95   :  { %v183_v45 = vsel %vm169_vm5, %v5064_v40, %v4758_v43  ;;  %v4804_v6 = vcombine.high %v226_v63, %v230_v0  ;;  %v4803_v13 = vcombine.low %v226_v63, %v230_v0  ;;  %v221_v40 = vld [vmem:[%s7541_s7 + $0xa8] sm:$0xff]  ;;  %v1103_v43 = vcombine.high %v5670_v31, %v5670_v31  ;;  %v227_v0 = vld [vmem:[%s7541_s7 + $0xd8] sm:$0xff] }
  0x96   :  { %v197_v53 = vsel %vm184_vm7, %v5068_v49, %v182_v44  ;;  %v198_v54 = vsel %vm184_vm7, %v5069_v48, %v183_v45  ;;  %7836 = vst [vmem:[#allocation13_spill] sm:$0xff] %v5680_v46  ;;  %v4794_v48 = vcombine.high %v217_v38, %v221_v40  ;;  %v5684_v49 = vcombine.high %v918_v41, %v922_v42 }
  0x97   :  { %v232_v55 = vpack.c.bf16 %v198_v54, %v197_v53  ;;  %v914_v53 = vld [vmem:[#allocation3 + $0x160] sm:$0xff]  ;;  %v5692_v54 = vpack.c.bf16 %v1103_v43, %v1103_v43  ;;  %v5757_v24 = vcombine.high %v878_v19, %v882_v20 }
  0x98   :  { %7837 = vst [vmem:[#allocation14_spill] sm:$0xff] %v5684_v49  ;;  %v5716_v61 = vcombine.low %v910_v52, %v914_v53 }
  0x99   :  { %4768 = vmatmul.mubr.msk.bf16.vlgmr.msra.gmra.mxu1 %vm257_vm8, %v232_v55  ;;  %4774 = vmatmul.mubr.msk.bf16.vlgmr.msra.gmra.mxu0 %vm257_vm8, %v232_v55  ;;  %7847 = vst [vmem:[#allocation24_spill] sm:$0xff] %v5757_v24 }
  0x9a   :  { %344 = vmatpush1.bf16.msra.mxu1 %v269_v56  ;;  %361 = vmatprep.mubr.bf16.mxu1 %v5433_v1  ;;  %v5702_v56 = vcombine.low %v918_v41, %v922_v42  ;;  %7840 = vst [vmem:[#allocation17_spill] sm:$0xff] %v5716_v61  ;;  %v927_v41 = vld [vmem:[#allocation3 + $0x1c8] sm:$0xff] }
  0x9b   :  { %4771 = vmatprep.subr.msk.bf16.mxu1 %vm261_vm2, %v4764_v57  ;;  %631 = vmatpush1.bf16.msra.mxu0 %v4799_v30  ;;  %v4786_v57 = vcombine.high %v209_v50, %v213_v51  ;;  %v931_v42 = vld [vmem:[#allocation3 + $0x1e8] sm:$0xff]  ;;  %v986_v50 = vld [vmem:[#allocation3 + $0x3a0] sm:$0xff] }
  0x9c   :  { %632 = vmatprep.subr.bf16.mxu0 %v4792_v58  ;;  %654 = vmatprep.mubr.bf16.mxu0 %v5433_v1  ;;  %7838 = vst [vmem:[#allocation15_spill] sm:$0xff] %v5702_v56  ;;  %v5705_v58 = vcombine.high %v910_v52, %v914_v53  ;;  %v919_v51 = vld [vmem:[#allocation3 + $0x188] sm:$0xff] }
  0x9d   :  { %v923_v52 = vld [vmem:[#allocation3 + $0x1a8] sm:$0xff] }
  0x9e   :  { %7839 = vst [vmem:[#allocation16_spill] sm:$0xff] %v5705_v58 }
  0x9f   :  { %633 = vmatpush1.bf16.msra.mxu0 %v4791_v62  ;;  %v4778_v62 = vcombine.high %v201_v59, %v205_v32 }
  0xa0   :  { %634 = vmatprep.subr.bf16.mxu0 %v4784_v2  ;;  %v231_v2 = vld [vmem:[%s7541_s7 + $0xf8] sm:$0xff] }
  0xa1   :  { %4770 = vmatmul.mubr.msk.bf16.vlgmr.msra.gmra.mxu1 %vm257_vm8, %v232_v55 }
  0xa2   :  { %387 = vmatpush1.bf16.msra.mxu1 %v275_v5  ;;  %404 = vmatprep.mubr.bf16.mxu1 %v5433_v1  ;;  %v4777_v5 = vcombine.low %v201_v59, %v205_v32  ;;  %v5789_v59 = vcombine.high %v919_v51, %v923_v52  ;;  %v974_v32 = vld [vmem:[#allocation3 + $0x340] sm:$0xff] }
  0xa3   :  { %716 = vmatprep.subr.bf16.mxu1 %v4804_v6  ;;  %635 = vmatpush1.bf16.msra.mxu0 %v4783_v7  ;;  %v4806_v7 = vcombine.high %v227_v0, %v231_v2 }
  0xa4   :  { %636 = vmatprep.subr.bf16.mxu0 %v4776_v8  ;;  %v5731_v8 = vcombine.high %v894_v3, %v898_v4  ;;  %7856 = vst [vmem:[#allocation33_spill] sm:$0xff] %v5789_v59 }
  0xa6   :  { %7843 = vst [vmem:[#allocation20_spill] sm:$0xff] %v5731_v8 }
  0xa7   :  { %637 = vmatpush1.bf16.msra.mxu0 %v4775_v9  ;;  %v219_v9 = vld [vmem:[%s7541_s7 + $0x98] sm:$0xff] }
  0xa8   :  { %673 = vmatprep.subr.bf16.mxu0 %v4802_v12  ;;  %v890_v12 = vld [vmem:[#allocation3 + $0xa0] sm:$0xff]  ;;  %v4798_v15 = vcombine.high %v219_v9, %v223_v10 }
  0xa9   :  { %4772 = vmatmul.mubr.msk.bf16.vlgmr.msra.gmra.mxu1 %vm257_vm8, %v232_v55  ;;  %v4793_v55 = vcombine.low %v217_v38, %v221_v40  ;;  %v5743_v16 = vcombine.high %v886_v11, %v890_v12  ;;  %v994_v40 = vld [vmem:[#allocation3 + $0x3e0] sm:$0xff] }
  0xaa   :  { %717 = vmatpush1.bf16.msra.mxu1 %v4803_v13  ;;  %740 = vmatprep.mubr.bf16.mxu1 %v5433_v1  ;;  %v4805_v13 = vcombine.low %v227_v0, %v231_v2  ;;  %v5797_v0 = vcombine.low %v919_v51, %v923_v52 }
  0xab   :  { %718 = vmatprep.subr.bf16.mxu1 %v4796_v14  ;;  %v5740_v14 = vcombine.low %v894_v3, %v898_v4  ;;  %7845 = vst [vmem:[#allocation22_spill] sm:$0xff] %v5743_v16  ;;  %v966_v4 = vld [vmem:[#allocation3 + $0x300] sm:$0xff] }
  0xac   :  { %7858 = vst [vmem:[#allocation35_spill] sm:$0xff] %v5797_v0 }
  0xad   :  { %7844 = vst [vmem:[#allocation21_spill] sm:$0xff] %v5740_v14 }
  0xae   :  { %719 = vmatpush1.bf16.msra.mxu1 %v4795_v17  ;;  %v211_v17 = vld [vmem:[%s7541_s7 + $0x58] sm:$0xff] }
  0xaf   :  { %720 = vmatprep.subr.bf16.mxu1 %v4788_v18  ;;  %v215_v18 = vld [vmem:[%s7541_s7 + $0x78] sm:$0xff] }
  0xb0   :  { %v4790_v23 = vcombine.high %v211_v17, %v215_v18 }
  0xb2   :  { %721 = vmatpush1.bf16.msra.mxu1 %v4787_v21  ;;  %v4797_v21 = vcombine.low %v219_v9, %v223_v10 }
  0xb3   :  { %722 = vmatprep.subr.bf16.mxu1 %v4780_v22  ;;  %v5754_v22 = vcombine.low %v886_v11, %v890_v12 }
  0xb5   :  { %7846 = vst [vmem:[#allocation23_spill] sm:$0xff] %v5754_v22 }
  0xb6   :  { %723 = vmatpush1.bf16.msra.mxu1 %v4779_v25  ;;  %v203_v25 = vld [vmem:[%s7541_s7 + $0x18] sm:$0xff] }
  0xb7   :  { %1748 = vmatprep.subr.bf16.mxu1 %v5661_v26 }
  0xe1   :  { %v144_v28 = vpop.f32.mrf.mxu0 }
  0xe2   :  { %v145_v30 = vadd.f32 %v4751_v27, %v144_v28  ;;  %v870_v28 = vld [vmem:[#allocation3] sm:$0xff] }
  0xe3   :  { %v5045_v29 = vpop.f32.mrf.mxu0 }
  0xe4   :  { %v151_v44 = vmax.f32 %v145_v30, 0.0  ;;  %v874_v29 = vld [vmem:[#allocation3 + $0x20] sm:$0xff]  ;;  %v4789_v30 = vcombine.low %v211_v17, %v215_v18  ;;  %v895_v17 = vld [vmem:[#allocation3 + $0xc8] sm:$0xff] }
  0xe5   :  { %v147_v36 = vpop.f32.mrf.mxu0  ;;  %v5770_v38 = vcombine.high %v870_v28, %v874_v29  ;;  %v5773_v43 = vcombine.low %v870_v28, %v874_v29  ;;  %v899_v18 = vld [vmem:[#allocation3 + $0xe8] sm:$0xff] }
  0xe6   :  { %v148_v37 = vadd.f32 %v4751_v27, %v147_v36  ;;  %v207_v27 = vld [vmem:[%s7541_s7 + $0x38] sm:$0xff]  ;;  %v5767_v36 = vcombine.low %v878_v19, %v882_v20  ;;  %v887_v28 = vld [vmem:[#allocation3 + $0x88] sm:$0xff] }
  0xe7   :  { %v5046_v39 = vpop.f32.mrf.mxu0  ;;  %7849 = vst [vmem:[#allocation26_spill] sm:$0xff] %v5770_v38  ;;  %7850 = vst [vmem:[#allocation27_spill] sm:$0xff] %v5773_v43  ;;  %v891_v29 = vld [vmem:[#allocation3 + $0xa8] sm:$0xff] }
  0xe8   :  { %v152_v45 = vmax.f32 %v148_v37, 0.0  ;;  %7848 = vst [vmem:[#allocation25_spill] sm:$0xff] %v5767_v36  ;;  %v4782_v37 = vcombine.high %v203_v25, %v207_v27  ;;  %v990_v39 = vld [vmem:[#allocation3 + $0x3c0] sm:$0xff]  ;;  %v5846_v51 = vcombine.low %v887_v28, %v891_v29 }
  0xe9   :  { %v5781_v53 = vcombine.low %v990_v39, %v994_v40 }
  0xea   :  { %v5682_v47 = vpack.c.bf16 %v152_v45, %v151_v44  ;;  %v5776_v44 = vcombine.high %v990_v39, %v994_v40  ;;  %v5778_v45 = vcombine.high %v927_v41, %v931_v42  ;;  %v5840_v40 = vcombine.high %v887_v28, %v891_v29  ;;  %7874 = vst [vmem:[#allocation51_spill] sm:$0xff] %v5846_v51 }
  0xeb   :  { %7853 = vst [vmem:[#allocation30_spill] sm:$0xff] %v5781_v53 }
  0xec   :  { %4807 = vmatmul.mubr.msk.bf16.vlgmr.msra.gmra.mxu0 %vm618_vm9, %v5682_v47  ;;  %4809 = vmatmul.mubr.msk.bf16.vlgmr.msra.gmra.mxu1 %vm618_vm9, %v5682_v47  ;;  %7851 = vst [vmem:[#allocation28_spill] sm:$0xff] %v5776_v44  ;;  %7852 = vst [vmem:[#allocation29_spill] sm:$0xff] %v5778_v45 }
  0xed   :  { %674 = vmatpush1.bf16.msra.mxu0 %v4801_v34  ;;  %1749 = vmatpush1.bf16.msra.mxu1 %v5680_v46  ;;  %v906_v34 = vld [vmem:[#allocation3 + $0x120] sm:$0xff]  ;;  %7872 = vst [vmem:[#allocation49_spill] sm:$0xff] %v5840_v40 }
  0xee   :  { %675 = vmatprep.subr.bf16.mxu0 %v4794_v48  ;;  %1750 = vmatprep.subr.bf16.mxu1 %v5684_v49  ;;  %v5719_v63 = vcombine.high %v902_v33, %v906_v34  ;;  %v5728_v6 = vcombine.low %v902_v33, %v906_v34  ;;  %v982_v48 = vld [vmem:[#allocation3 + $0x380] sm:$0xff]  ;;  %v911_v34 = vld [vmem:[#allocation3 + $0x148] sm:$0xff] }
  0xef   :  { %697 = vmatprep.mubr.bf16.mxu0 %v5433_v1  ;;  %1780 = vmatprep.mubr.bf16.mxu1 %v5692_v54  ;;  %v978_v33 = vld [vmem:[#allocation3 + $0x360] sm:$0xff] }
  0xf0   :  { %7841 = vst [vmem:[#allocation18_spill] sm:$0xff] %v5719_v63  ;;  %7842 = vst [vmem:[#allocation19_spill] sm:$0xff] %v5728_v6  ;;  %v5801_v2 = vcombine.high %v974_v32, %v978_v33  ;;  %v5808_v9 = vcombine.low %v974_v32, %v978_v33  ;;  %v934_v33 = vld [vmem:[#allocation3 + $0x200] sm:$0xff] }
  0xf1   :  { %676 = vmatpush1.bf16.msra.mxu0 %v4793_v55  ;;  %1751 = vmatpush1.bf16.msra.mxu1 %v5702_v56  ;;  %v5783_v55 = vcombine.low %v927_v41, %v931_v42  ;;  %v942_v41 = vld [vmem:[#allocation3 + $0x240] sm:$0xff] }
  0xf2   :  { %677 = vmatprep.subr.bf16.mxu0 %v4786_v57  ;;  %1752 = vmatprep.subr.bf16.mxu1 %v5705_v58  ;;  %v5787_v57 = vcombine.high %v982_v48, %v986_v50  ;;  %7859 = vst [vmem:[#allocation36_spill] sm:$0xff] %v5801_v2  ;;  %7861 = vst [vmem:[#allocation38_spill] sm:$0xff] %v5808_v9  ;;  %v946_v42 = vld [vmem:[#allocation3 + $0x260] sm:$0xff] }
  0xf3   :  { %7854 = vst [vmem:[#allocation31_spill] sm:$0xff] %v5783_v55  ;;  %v5850_v52 = vcombine.high %v942_v41, %v946_v42 }
  0xf4   :  { %7855 = vst [vmem:[#allocation32_spill] sm:$0xff] %v5787_v57 }
  0xf5   :  { %678 = vmatpush1.bf16.msra.mxu0 %v4785_v60  ;;  %1753 = vmatpush1.bf16.msra.mxu1 %v5716_v61  ;;  %v915_v60 = vld [vmem:[#allocation3 + $0x168] sm:$0xff]  ;;  %7875 = vst [vmem:[#allocation52_spill] sm:$0xff] %v5850_v52 }
  0xf6   :  { %679 = vmatprep.subr.bf16.mxu0 %v4778_v62  ;;  %1754 = vmatprep.subr.bf16.mxu1 %v5719_v63  ;;  %v5795_v62 = vcombine.low %v982_v48, %v986_v50  ;;  %v5803_v3 = vcombine.high %v911_v34, %v915_v60  ;;  %v5810_v10 = vcombine.low %v911_v34, %v915_v60  ;;  %v883_v48 = vld [vmem:[#allocation3 + $0x68] sm:$0xff]  ;;  %v938_v34 = vld [vmem:[#allocation3 + $0x220] sm:$0xff] }
  0xf7   :  { %v871_v60 = vld [vmem:[#allocation3 + $0x8] sm:$0xff] }
  0xf8   :  { %7857 = vst [vmem:[#allocation34_spill] sm:$0xff] %v5795_v62  ;;  %7860 = vst [vmem:[#allocation37_spill] sm:$0xff] %v5803_v3 }
  0xf9   :  { %680 = vmatpush1.bf16.msra.mxu0 %v4777_v5  ;;  %1755 = vmatpush1.bf16.msra.mxu1 %v5728_v6  ;;  %v970_v5 = vld [vmem:[#allocation3 + $0x320] sm:$0xff]  ;;  %7862 = vst [vmem:[#allocation39_spill] sm:$0xff] %v5810_v10 }
  0xfa   :  { %759 = vmatprep.subr.bf16.mxu0 %v4806_v7  ;;  %1756 = vmatprep.subr.bf16.mxu1 %v5731_v8  ;;  %v903_v7 = vld [vmem:[#allocation3 + $0x108] sm:$0xff]  ;;  %v5814_v11 = vcombine.high %v966_v4, %v970_v5  ;;  %v5820_v19 = vcombine.low %v966_v4, %v970_v5  ;;  %v5856_v5 = vcombine.low %v942_v41, %v946_v42 }
  0xfb   :  { %v875_v4 = vld [vmem:[#allocation3 + $0x28] sm:$0xff] }
  0xfc   :  { %4808 = vmatmul.mubr.msk.bf16.vlgmr.msra.gmra.mxu0 %vm618_vm9, %v5682_v47  ;;  %7863 = vst [vmem:[#allocation40_spill] sm:$0xff] %v5814_v11  ;;  %7865 = vst [vmem:[#allocation42_spill] sm:$0xff] %v5820_v19  ;;  %v5870_v28 = vcombine.low %v871_v60, %v875_v4  ;;  %v983_v42 = vld [vmem:[#allocation3 + $0x388] sm:$0xff] }
  0xfd   :  { %760 = vmatpush1.bf16.msra.mxu0 %v4805_v13  ;;  %1757 = vmatpush1.bf16.msra.mxu1 %v5740_v14  ;;  %v958_v13 = vld [vmem:[#allocation3 + $0x2c0] sm:$0xff]  ;;  %7877 = vst [vmem:[#allocation54_spill] sm:$0xff] %v5856_v5 }
  0xfe   :  { %761 = vmatprep.subr.bf16.mxu0 %v4798_v15  ;;  %1758 = vmatprep.subr.bf16.mxu1 %v5743_v16  ;;  %v962_v15 = vld [vmem:[#allocation3 + $0x2e0] sm:$0xff]  ;;  %7882 = vst [vmem:[#allocation59_spill] sm:$0xff] %v5870_v28 }
  0xff   :  { %783 = vmatprep.mubr.bf16.mxu0 %v5433_v1  ;;  %v4781_v1 = vcombine.low %v203_v25, %v207_v27  ;;  %v950_v25 = vld [vmem:[#allocation3 + $0x280] sm:$0xff] }
 0x100   :  { %v954_v27 = vld [vmem:[#allocation3 + $0x2a0] sm:$0xff] }
 0x101   :  { %762 = vmatpush1.bf16.msra.mxu0 %v4797_v21  ;;  %1759 = vmatpush1.bf16.msra.mxu1 %v5754_v22  ;;  %v5826_v21 = vcombine.high %v958_v13, %v962_v15  ;;  %v5838_v39 = vcombine.high %v950_v25, %v954_v27  ;;  %v5844_v50 = vcombine.low %v950_v25, %v954_v27  ;;  %v932_v25 = vld [vmem:[#allocation3 + $0x1f0] sm:$0xff] }
 0x102   :  { %763 = vmatprep.subr.bf16.mxu0 %v4790_v23  ;;  %1760 = vmatprep.subr.bf16.mxu1 %v5757_v24  ;;  %v5828_v23 = vcombine.high %v895_v17, %v899_v18  ;;  %v5868_v27 = vcombine.low %v934_v33, %v938_v34 }
 0x103   :  { %7867 = vst [vmem:[#allocation44_spill] sm:$0xff] %v5826_v21  ;;  %7871 = vst [vmem:[#allocation48_spill] sm:$0xff] %v5838_v39 }
 0x104   :  { %7868 = vst [vmem:[#allocation45_spill] sm:$0xff] %v5828_v23  ;;  %7873 = vst [vmem:[#allocation50_spill] sm:$0xff] %v5844_v50 }
 0x105   :  { %764 = vmatpush1.bf16.msra.mxu0 %v4789_v30  ;;  %1761 = vmatpush1.bf16.msra.mxu1 %v5767_v36  ;;  %v5832_v30 = vcombine.low %v958_v13, %v962_v15  ;;  %v5864_v13 = vcombine.high %v871_v60, %v875_v4  ;;  %v991_v15 = vld [vmem:[#allocation3 + $0x3c8] sm:$0xff]  ;;  %7881 = vst [vmem:[#allocation58_spill] sm:$0xff] %v5868_v27 }
 0x106   :  { %765 = vmatprep.subr.bf16.mxu0 %v4782_v37  ;;  %1762 = vmatprep.subr.bf16.mxu1 %v5770_v38  ;;  %v5834_v37 = vcombine.low %v895_v17, %v899_v18  ;;  %v995_v17 = vld [vmem:[#allocation3 + $0x3e8] sm:$0xff]  ;;  %v928_v18 = vld [vmem:[#allocation3 + $0x1d0] sm:$0xff] }
 0x107   :  { %7869 = vst [vmem:[#allocation46_spill] sm:$0xff] %v5832_v30  ;;  %7880 = vst [vmem:[#allocation57_spill] sm:$0xff] %v5864_v13  ;;  %v5874_v29 = vcombine.high %v991_v15, %v995_v17  ;;  %v5876_v41 = vcombine.high %v928_v18, %v932_v25 }
 0x108   :  { %7870 = vst [vmem:[#allocation47_spill] sm:$0xff] %v5834_v37 }
 0x109   :  { %766 = vmatpush1.bf16.msra.mxu0 %v4781_v1  ;;  %1763 = vmatpush1.bf16.msra.mxu1 %v5773_v43  ;;  %v879_v1 = vld [vmem:[#allocation3 + $0x48] sm:$0xff]  ;;  %7883 = vst [vmem:[#allocation60_spill] sm:$0xff] %v5874_v29  ;;  %7884 = vst [vmem:[#allocation61_spill] sm:$0xff] %v5876_v41 }
 0x10a   :  { %1764 = vmatprep.subr.bf16.mxu1 %v5776_v44  ;;  %1789 = vmatprep.subr.bf16.mxu0 %v5778_v45  ;;  %v5852_v32 = vcombine.high %v879_v1, %v883_v48 }
 0x10c   :  { %4810 = vmatmul.mubr.msk.bf16.vlgmr.msra.gmra.mxu0 %vm618_vm9, %v5682_v47  ;;  %v907_v47 = vld [vmem:[#allocation3 + $0x128] sm:$0xff]  ;;  %7876 = vst [vmem:[#allocation53_spill] sm:$0xff] %v5852_v32 }
 0x10d   :  { %1765 = vmatpush2.bf16.msra.mxu1 %v5781_v53  ;;  %1790 = vmatpush1.bf16.msra.mxu0 %v5783_v55  ;;  %v5816_v12 = vcombine.high %v903_v7, %v907_v47  ;;  %v5822_v20 = vcombine.low %v903_v7, %v907_v47  ;;  %v5858_v7 = vcombine.low %v879_v1, %v883_v48  ;;  %v987_v1 = vld [vmem:[#allocation3 + $0x3a8] sm:$0xff]  ;;  %v920_v48 = vld [vmem:[#allocation3 + $0x190] sm:$0xff] }
 0x10e   :  { %1766 = vmatprep.subr.bf16.mxu1 %v5787_v57  ;;  %1791 = vmatprep.subr.bf16.mxu0 %v5789_v59  ;;  %v5862_v47 = vcombine.high %v934_v33, %v938_v34  ;;  %v5884_v33 = vcombine.low %v991_v15, %v995_v17  ;;  %v5886_v34 = vcombine.low %v928_v18, %v932_v25 }
 0x10f   :  { %1821 = vmatprep.mubr.bf16.mxu0 %v5692_v54  ;;  %7864 = vst [vmem:[#allocation41_spill] sm:$0xff] %v5816_v12  ;;  %7866 = vst [vmem:[#allocation43_spill] sm:$0xff] %v5822_v20  ;;  %v5890_v60 = vcombine.high %v983_v42, %v987_v1  ;;  %v5892_v4 = vcombine.high %v920_v48, %v924_v35  ;;  %v5897_v15 = vcombine.low %v983_v42, %v987_v1 }
 0x110   :  { %7878 = vst [vmem:[#allocation55_spill] sm:$0xff] %v5858_v7  ;;  %7879 = vst [vmem:[#allocation56_spill] sm:$0xff] %v5862_v47  ;;  %v5899_v17 = vcombine.low %v920_v48, %v924_v35 }
 0x111   :  { %1767 = vmatpush2.bf16.msra.mxu1 %v5795_v62  ;;  %1792 = vmatpush1.bf16.msra.mxu0 %v5797_v0  ;;  %7885 = vst [vmem:[#allocation62_spill] sm:$0xff] %v5884_v33  ;;  %7886 = vst [vmem:[#allocation63_spill] sm:$0xff] %v5886_v34 }
 0x112   :  { %1768 = vmatprep.subr.bf16.mxu1 %v5801_v2  ;;  %1793 = vmatprep.subr.bf16.mxu0 %v5803_v3  ;;  %7887 = vst [vmem:[#allocation64_spill] sm:$0xff] %v5890_v60  ;;  %7888 = vst [vmem:[#allocation65_spill] sm:$0xff] %v5892_v4 }
 0x113   :  { %7889 = vst [vmem:[#allocation66_spill] sm:$0xff] %v5897_v15  ;;  %7890 = vst [vmem:[#allocation67_spill] sm:$0xff] %v5899_v17 }
 0x115   :  { %1769 = vmatpush2.bf16.msra.mxu1 %v5808_v9  ;;  %1794 = vmatpush1.bf16.msra.mxu0 %v5810_v10 }
 0x116   :  { %1770 = vmatprep.subr.bf16.mxu1 %v5814_v11  ;;  %1795 = vmatprep.subr.bf16.mxu0 %v5816_v12 }
 0x119   :  { %1771 = vmatpush2.bf16.msra.mxu1 %v5820_v19  ;;  %1796 = vmatpush1.bf16.msra.mxu0 %v5822_v20 }
 0x11a   :  { %1772 = vmatprep.subr.bf16.mxu1 %v5826_v21  ;;  %1797 = vmatprep.subr.bf16.mxu0 %v5828_v23 }
 0x11d   :  { %1773 = vmatpush2.bf16.msra.mxu1 %v5832_v30  ;;  %1798 = vmatpush1.bf16.msra.mxu0 %v5834_v37 }
 0x11e   :  { %1774 = vmatprep.subr.bf16.mxu1 %v5838_v39  ;;  %1799 = vmatprep.subr.bf16.mxu0 %v5840_v40 }
 0x121   :  { %1775 = vmatpush2.bf16.msra.mxu1 %v5844_v50  ;;  %1800 = vmatpush1.bf16.msra.mxu0 %v5846_v51 }
 0x122   :  { %1776 = vmatprep.subr.bf16.mxu1 %v5850_v52  ;;  %1801 = vmatprep.subr.bf16.mxu0 %v5852_v32 }
 0x125   :  { %1777 = vmatpush2.bf16.msra.mxu1 %v5856_v5  ;;  %1802 = vmatpush1.bf16.msra.mxu0 %v5858_v7  ;;  %v5880_v5 = vpack.c.bf16 %v5670_v31, %v5670_v31  ;;  %v912_v31 = vld [vmem:[#allocation3 + $0x150] sm:$0xff] }
 0x126   :  { %1778 = vmatprep.subr.bf16.mxu1 %v5862_v47  ;;  %1803 = vmatprep.subr.bf16.mxu0 %v5864_v13  ;;  %v975_v47 = vld [vmem:[#allocation3 + $0x348] sm:$0xff]  ;;  %v916_v7 = vld [vmem:[#allocation3 + $0x170] sm:$0xff] }
 0x127   :  { %v979_v13 = vld [vmem:[#allocation3 + $0x368] sm:$0xff]  ;;  %v5905_v25 = vcombine.high %v912_v31, %v916_v7  ;;  %v5912_v42 = vcombine.low %v912_v31, %v916_v7 }
 0x128   :  { %v5903_v18 = vcombine.high %v975_v47, %v979_v13  ;;  %v5910_v35 = vcombine.low %v975_v47, %v979_v13 }
 0x129   :  { %1779 = vmatpush2.bf16.msra.mxu1 %v5868_v27  ;;  %1804 = vmatpush1.bf16.msra.mxu0 %v5870_v28  ;;  %7892 = vst [vmem:[#allocation69_spill] sm:$0xff] %v5905_v25  ;;  %v904_v27 = vld [vmem:[#allocation3 + $0x110] sm:$0xff]  ;;  %7894 = vst [vmem:[#allocation71_spill] sm:$0xff] %v5912_v42 }
 0x12a   :  { %1805 = vmatprep.subr.bf16.mxu0 %v5874_v29  ;;  %1830 = vmatprep.subr.bf16.mxu1 %v5876_v41  ;;  %7891 = vst [vmem:[#allocation68_spill] sm:$0xff] %v5903_v18  ;;  %v967_v41 = vld [vmem:[#allocation3 + $0x308] sm:$0xff]  ;;  %v908_v28 = vld [vmem:[#allocation3 + $0x130] sm:$0xff]  ;;  %7893 = vst [vmem:[#allocation70_spill] sm:$0xff] %v5910_v35 }
 0x12b   :  { %v971_v29 = vld [vmem:[#allocation3 + $0x328] sm:$0xff]  ;;  %v5918_v48 = vcombine.high %v904_v27, %v908_v28  ;;  %v5924_v7 = vcombine.low %v904_v27, %v908_v28 }
 0x12c   :  { %1781 = vmatmul.mubr.bf16.vlgmr.msra.gmra.mxu1 %v5880_v5  ;;  %v5916_v1 = vcombine.high %v967_v41, %v971_v29  ;;  %v5922_v47 = vcombine.low %v967_v41, %v971_v29 }
 0x12d   :  { %1806 = vmatpush2.bf16.msra.mxu0 %v5884_v33  ;;  %1831 = vmatpush1.bf16.msra.mxu1 %v5886_v34  ;;  %7896 = vst [vmem:[#allocation73_spill] sm:$0xff] %v5918_v48  ;;  %v963_v34 = vld [vmem:[#allocation3 + $0x2e8] sm:$0xff]  ;;  %v900_v33 = vld [vmem:[#allocation3 + $0xf0] sm:$0xff]  ;;  %7898 = vst [vmem:[#allocation75_spill] sm:$0xff] %v5924_v7 }
 0x12e   :  { %1807 = vmatprep.subr.bf16.mxu0 %v5890_v60  ;;  %1832 = vmatprep.subr.bf16.mxu1 %v5892_v4  ;;  %7895 = vst [vmem:[#allocation72_spill] sm:$0xff] %v5916_v1  ;;  %v959_v4 = vld [vmem:[#allocation3 + $0x2c8] sm:$0xff]  ;;  %v896_v60 = vld [vmem:[#allocation3 + $0xd0] sm:$0xff]  ;;  %7897 = vst [vmem:[#allocation74_spill] sm:$0xff] %v5922_v47 }
 0x12f   :  { %1862 = vmatprep.mubr.bf16.mxu1 %v5692_v54  ;;  %v5928_v13 = vcombine.high %v959_v4, %v963_v34  ;;  %v5930_v31 = vcombine.high %v896_v60, %v900_v33  ;;  %v5934_v29 = vcombine.low %v959_v4, %v963_v34  ;;  %v5936_v27 = vcombine.low %v896_v60, %v900_v33 }
 0x131   :  { %1808 = vmatpush2.bf16.msra.mxu0 %v5897_v15  ;;  %1833 = vmatpush1.bf16.msra.mxu1 %v5899_v17  ;;  %7899 = vst [vmem:[#allocation76_spill] sm:$0xff] %v5928_v13  ;;  %7900 = vst [vmem:[#allocation77_spill] sm:$0xff] %v5930_v31  ;;  %v955_v17 = vld [vmem:[#allocation3 + $0x2a8] sm:$0xff]  ;;  %v892_v15 = vld [vmem:[#allocation3 + $0xb0] sm:$0xff] }
 0x132   :  { %1809 = vmatprep.subr.bf16.mxu0 %v5903_v18  ;;  %1834 = vmatprep.subr.bf16.mxu1 %v5905_v25  ;;  %v951_v25 = vld [vmem:[#allocation3 + $0x288] sm:$0xff]  ;;  %v888_v18 = vld [vmem:[#allocation3 + $0x90] sm:$0xff]  ;;  %7901 = vst [vmem:[#allocation78_spill] sm:$0xff] %v5934_v29  ;;  %7902 = vst [vmem:[#allocation79_spill] sm:$0xff] %v5936_v27 }
 0x133   :  { %v5940_v28 = vcombine.high %v951_v25, %v955_v17  ;;  %v5942_v41 = vcombine.high %v888_v18, %v892_v15  ;;  %v5946_v34 = vcombine.low %v951_v25, %v955_v17  ;;  %v5948_v33 = vcombine.low %v888_v18, %v892_v15 }
 0x135   :  { %1810 = vmatpush2.bf16.msra.mxu0 %v5910_v35  ;;  %1835 = vmatpush1.bf16.msra.mxu1 %v5912_v42  ;;  %7903 = vst [vmem:[#allocation80_spill] sm:$0xff] %v5940_v28  ;;  %7904 = vst [vmem:[#allocation81_spill] sm:$0xff] %v5942_v41  ;;  %v947_v42 = vld [vmem:[#allocation3 + $0x268] sm:$0xff]  ;;  %v884_v35 = vld [vmem:[#allocation3 + $0x70] sm:$0xff] }
 0x136   :  { %1811 = vmatprep.subr.bf16.mxu0 %v5916_v1  ;;  %1836 = vmatprep.subr.bf16.mxu1 %v5918_v48  ;;  %v943_v48 = vld [vmem:[#allocation3 + $0x248] sm:$0xff]  ;;  %v880_v1 = vld [vmem:[#allocation3 + $0x50] sm:$0xff]  ;;  %7905 = vst [vmem:[#allocation82_spill] sm:$0xff] %v5946_v34  ;;  %7906 = vst [vmem:[#allocation83_spill] sm:$0xff] %v5948_v33 }
 0x137   :  { %v5952_v60 = vcombine.high %v943_v48, %v947_v42  ;;  %v5954_v4 = vcombine.high %v880_v1, %v884_v35  ;;  %v5958_v17 = vcombine.low %v943_v48, %v947_v42  ;;  %v5960_v15 = vcombine.low %v880_v1, %v884_v35 }
 0x139   :  { %1812 = vmatpush2.bf16.msra.mxu0 %v5922_v47  ;;  %1837 = vmatpush1.bf16.msra.mxu1 %v5924_v7  ;;  %7907 = vst [vmem:[#allocation84_spill] sm:$0xff] %v5952_v60  ;;  %7908 = vst [vmem:[#allocation85_spill] sm:$0xff] %v5954_v4  ;;  %v939_v7 = vld [vmem:[#allocation3 + $0x228] sm:$0xff]  ;;  %v876_v47 = vld [vmem:[#allocation3 + $0x30] sm:$0xff] }
 0x13a   :  { %1813 = vmatprep.subr.bf16.mxu0 %v5928_v13  ;;  %1838 = vmatprep.subr.bf16.mxu1 %v5930_v31  ;;  %v935_v31 = vld [vmem:[#allocation3 + $0x208] sm:$0xff]  ;;  %v872_v13 = vld [vmem:[#allocation3 + $0x10] sm:$0xff]  ;;  %7909 = vst [vmem:[#allocation86_spill] sm:$0xff] %v5958_v17  ;;  %7910 = vst [vmem:[#allocation87_spill] sm:$0xff] %v5960_v15 }
 0x13b   :  { %v5964_v18 = vcombine.high %v935_v31, %v939_v7  ;;  %v5966_v25 = vcombine.high %v872_v13, %v876_v47  ;;  %v5970_v42 = vcombine.low %v935_v31, %v939_v7  ;;  %v5972_v35 = vcombine.low %v872_v13, %v876_v47 }
 0x13d   :  { %1814 = vmatpush2.bf16.msra.mxu0 %v5934_v29  ;;  %1839 = vmatpush1.bf16.msra.mxu1 %v5936_v27  ;;  %7911 = vst [vmem:[#allocation88_spill] sm:$0xff] %v5964_v18  ;;  %7912 = vst [vmem:[#allocation89_spill] sm:$0xff] %v5966_v25  ;;  %v996_v27 = vld [vmem:[#allocation3 + $0x3f0] sm:$0xff]  ;;  %v933_v29 = vld [vmem:[#allocation3 + $0x1f8] sm:$0xff] }
 0x13e   :  { %1815 = vmatprep.subr.bf16.mxu0 %v5940_v28  ;;  %1840 = vmatprep.subr.bf16.mxu1 %v5942_v41  ;;  %v992_v41 = vld [vmem:[#allocation3 + $0x3d0] sm:$0xff]  ;;  %v929_v28 = vld [vmem:[#allocation3 + $0x1d8] sm:$0xff]  ;;  %7913 = vst [vmem:[#allocation90_spill] sm:$0xff] %v5970_v42  ;;  %7914 = vst [vmem:[#allocation91_spill] sm:$0xff] %v5972_v35 }
 0x13f   :  { %v5976_v1 = vcombine.high %v992_v41, %v996_v27  ;;  %v5978_v48 = vcombine.high %v929_v28, %v933_v29  ;;  %v5982_v7 = vcombine.low %v992_v41, %v996_v27  ;;  %v5984_v47 = vcombine.low %v929_v28, %v933_v29 }
 0x141   :  { %1816 = vmatpush2.bf16.msra.mxu0 %v5946_v34  ;;  %1841 = vmatpush1.bf16.msra.mxu1 %v5948_v33  ;;  %7915 = vst [vmem:[#allocation92_spill] sm:$0xff] %v5976_v1  ;;  %7916 = vst [vmem:[#allocation93_spill] sm:$0xff] %v5978_v48  ;;  %v988_v33 = vld [vmem:[#allocation3 + $0x3b0] sm:$0xff]  ;;  %v925_v34 = vld [vmem:[#allocation3 + $0x1b8] sm:$0xff] }
 0x142   :  { %1817 = vmatprep.subr.bf16.mxu0 %v5952_v60  ;;  %1842 = vmatprep.subr.bf16.mxu1 %v5954_v4  ;;  %v984_v4 = vld [vmem:[#allocation3 + $0x390] sm:$0xff]  ;;  %v921_v60 = vld [vmem:[#allocation3 + $0x198] sm:$0xff]  ;;  %7917 = vst [vmem:[#allocation94_spill] sm:$0xff] %v5982_v7 }
 0x143   :  { %v5988_v13 = vcombine.high %v984_v4, %v988_v33  ;;  %v5990_v31 = vcombine.high %v921_v60, %v925_v34  ;;  %v5995_v29 = vcombine.low %v984_v4, %v988_v33  ;;  %v5997_v27 = vcombine.low %v921_v60, %v925_v34 }
 0x145   :  { %1818 = vmatpush2.bf16.msra.mxu0 %v5958_v17  ;;  %1843 = vmatpush1.bf16.msra.mxu1 %v5960_v15  ;;  %7918 = vst [vmem:[#allocation95_spill] sm:$0xff] %v5988_v13  ;;  %7919 = vst [vmem:[#allocation96_spill] sm:$0xff] %v5990_v31  ;;  %v980_v15 = vld [vmem:[#allocation3 + $0x370] sm:$0xff]  ;;  %v917_v17 = vld [vmem:[#allocation3 + $0x178] sm:$0xff] }
 0x146   :  { %1819 = vmatprep.subr.bf16.mxu0 %v5964_v18  ;;  %1844 = vmatprep.subr.bf16.mxu1 %v5966_v25  ;;  %v976_v25 = vld [vmem:[#allocation3 + $0x350] sm:$0xff]  ;;  %v913_v18 = vld [vmem:[#allocation3 + $0x158] sm:$0xff]  ;;  %7920 = vst [vmem:[#allocation97_spill] sm:$0xff] %v5995_v29  ;;  %7921 = vst [vmem:[#allocation98_spill] sm:$0xff] %v5997_v27 }
 0x147   :  { %v6001_v28 = vcombine.high %v976_v25, %v980_v15  ;;  %v6003_v41 = vcombine.high %v913_v18, %v917_v17  ;;  %v6008_v34 = vcombine.low %v976_v25, %v980_v15  ;;  %v6010_v33 = vcombine.low %v913_v18, %v917_v17 }
 0x149   :  { %1820 = vmatpush2.bf16.msra.mxu0 %v5970_v42  ;;  %1845 = vmatpush1.bf16.msra.mxu1 %v5972_v35  ;;  %7922 = vst [vmem:[#allocation99_spill] sm:$0xff] %v6001_v28  ;;  %7923 = vst [vmem:[#allocation100_spill] sm:$0xff] %v6003_v41  ;;  %v972_v35 = vld [vmem:[#allocation3 + $0x330] sm:$0xff]  ;;  %v909_v42 = vld [vmem:[#allocation3 + $0x138] sm:$0xff] }
 0x14a   :  { %1846 = vmatprep.subr.bf16.mxu1 %v5976_v1  ;;  %1871 = vmatprep.subr.bf16.mxu0 %v5978_v48  ;;  %v968_v1 = vld [vmem:[#allocation3 + $0x310] sm:$0xff]  ;;  %v905_v48 = vld [vmem:[#allocation3 + $0x118] sm:$0xff]  ;;  %7924 = vst [vmem:[#allocation101_spill] sm:$0xff] %v6008_v34  ;;  %7925 = vst [vmem:[#allocation102_spill] sm:$0xff] %v6010_v33 }
 0x14b   :  { %v6014_v60 = vcombine.high %v968_v1, %v972_v35  ;;  %v6016_v4 = vcombine.high %v905_v48, %v909_v42  ;;  %v6020_v15 = vcombine.low %v968_v1, %v972_v35  ;;  %v6022_v17 = vcombine.low %v905_v48, %v909_v42 }
 0x14c   :  { %1822 = vmatmul.mubr.bf16.vlgmr.msra.gmra.mxu0 %v5880_v5 }
 0x14d   :  { %1847 = vmatpush2.bf16.msra.mxu1 %v5982_v7  ;;  %1872 = vmatpush1.bf16.msra.mxu0 %v5984_v47  ;;  %7926 = vst [vmem:[#allocation103_spill] sm:$0xff] %v6014_v60  ;;  %7927 = vst [vmem:[#allocation104_spill] sm:$0xff] %v6016_v4  ;;  %v964_v7 = vld [vmem:[#allocation3 + $0x2f0] sm:$0xff] }
 0x14e   :  { %1848 = vmatprep.subr.bf16.mxu1 %v5988_v13  ;;  %1873 = vmatprep.subr.bf16.mxu0 %v5990_v31  ;;  %v960_v13 = vld [vmem:[#allocation3 + $0x2d0] sm:$0xff]  ;;  %v897_v31 = vld [vmem:[#allocation3 + $0xd8] sm:$0xff]  ;;  %7928 = vst [vmem:[#allocation105_spill] sm:$0xff] %v6020_v15  ;;  %7929 = vst [vmem:[#allocation106_spill] sm:$0xff] %v6022_v17 }
 0x14f   :  { %1903 = vmatprep.mubr.bf16.mxu0 %v5692_v54  ;;  %v901_v54 = vld [vmem:[#allocation3 + $0xf8] sm:$0xff]  ;;  %v6026_v18 = vcombine.high %v960_v13, %v964_v7  ;;  %v6032_v35 = vcombine.low %v960_v13, %v964_v7 }
 0x150   :  { %v6028_v25 = vcombine.high %v897_v31, %v901_v54  ;;  %v6034_v42 = vcombine.low %v897_v31, %v901_v54 }
 0x151   :  { %1849 = vmatpush2.bf16.msra.mxu1 %v5995_v29  ;;  %1874 = vmatpush1.bf16.msra.mxu0 %v5997_v27  ;;  %7930 = vst [vmem:[#allocation107_spill] sm:$0xff] %v6026_v18  ;;  %v956_v29 = vld [vmem:[#allocation3 + $0x2b0] sm:$0xff]  ;;  %v893_v27 = vld [vmem:[#allocation3 + $0xb8] sm:$0xff]  ;;  %7932 = vst [vmem:[#allocation109_spill] sm:$0xff] %v6032_v35 }
 0x152   :  { %1850 = vmatprep.subr.bf16.mxu1 %v6001_v28  ;;  %1875 = vmatprep.subr.bf16.mxu0 %v6003_v41  ;;  %7931 = vst [vmem:[#allocation108_spill] sm:$0xff] %v6028_v25  ;;  %v952_v28 = vld [vmem:[#allocation3 + $0x290] sm:$0xff]  ;;  %v889_v41 = vld [vmem:[#allocation3 + $0x98] sm:$0xff] }
 0x153   :  { %v6038_v1 = vcombine.high %v952_v28, %v956_v29  ;;  %v6040_v48 = vcombine.high %v889_v41, %v893_v27  ;;  %v6044_v7 = vcombine.low %v952_v28, %v956_v29  ;;  %v6046_v13 = vcombine.low %v889_v41, %v893_v27 }
 0x155   :  { %1851 = vmatpush2.bf16.msra.mxu1 %v6008_v34  ;;  %1876 = vmatpush1.bf16.msra.mxu0 %v6010_v33  ;;  %7933 = vst [vmem:[#allocation110_spill] sm:$0xff] %v6038_v1  ;;  %v948_v34 = vld [vmem:[#allocation3 + $0x270] sm:$0xff]  ;;  %v885_v33 = vld [vmem:[#allocation3 + $0x78] sm:$0xff]  ;;  %7934 = vst [vmem:[#allocation111_spill] sm:$0xff] %v6044_v7 }
 0x156   :  { %1852 = vmatprep.subr.bf16.mxu1 %v6014_v60  ;;  %1877 = vmatprep.subr.bf16.mxu0 %v6016_v4  ;;  %v944_v60 = vld [vmem:[#allocation3 + $0x250] sm:$0xff]  ;;  %v881_v4 = vld [vmem:[#allocation3 + $0x58] sm:$0xff]  ;;  %7935 = vst [vmem:[#allocation112_spill] sm:$0xff] %v6046_v13 }
 0x157   :  { %v6050_v31 = vcombine.high %v944_v60, %v948_v34  ;;  %v6052_v54 = vcombine.high %v881_v4, %v885_v33  ;;  %v6056_v29 = vcombine.low %v944_v60, %v948_v34  ;;  %v6058_v27 = vcombine.low %v881_v4, %v885_v33  ;;  %v985_v60 = vld [vmem:[#allocation3 + $0x398] sm:$0xff] }
 0x158   :  { %v989_v4 = vld [vmem:[#allocation3 + $0x3b8] sm:$0xff] }
 0x159   :  { %1853 = vmatpush2.bf16.msra.mxu1 %v6020_v15  ;;  %1878 = vmatpush1.bf16.msra.mxu0 %v6022_v17  ;;  %7936 = vst [vmem:[#allocation113_spill] sm:$0xff] %v6050_v31  ;;  %7937 = vst [vmem:[#allocation114_spill] sm:$0xff] %v6052_v54  ;;  %v940_v15 = vld [vmem:[#allocation3 + $0x230] sm:$0xff]  ;;  %v877_v17 = vld [vmem:[#allocation3 + $0x38] sm:$0xff] }
 0x15a   :  { %1854 = vmatprep.subr.bf16.mxu1 %v6026_v18  ;;  %1879 = vmatprep.subr.bf16.mxu0 %v6028_v25  ;;  %v936_v18 = vld [vmem:[#allocation3 + $0x210] sm:$0xff]  ;;  %v873_v25 = vld [vmem:[#allocation3 + $0x18] sm:$0xff]  ;;  %7938 = vst [vmem:[#allocation115_spill] sm:$0xff] %v6056_v29  ;;  %7939 = vst [vmem:[#allocation116_spill] sm:$0xff] %v6058_v27 }
 0x15b   :  { %v6062_v28 = vcombine.high %v936_v18, %v940_v15  ;;  %v6064_v41 = vcombine.high %v873_v25, %v877_v17  ;;  %v6070_v34 = vcombine.low %v873_v25, %v877_v17  ;;  %v977_v17 = vld [vmem:[#allocation3 + $0x358] sm:$0xff]  ;;  %v6086_v25 = vcombine.low %v985_v60, %v989_v4 }
 0x15d   :  { %1855 = vmatpush2.bf16.msra.mxu1 %v6032_v35  ;;  %1880 = vmatpush1.bf16.msra.mxu0 %v6034_v42  ;;  %7940 = vst [vmem:[#allocation117_spill] sm:$0xff] %v6062_v28  ;;  %7941 = vst [vmem:[#allocation118_spill] sm:$0xff] %v6064_v41  ;;  %v997_v35 = vld [vmem:[#allocation3 + $0x3f8] sm:$0xff] }
 0x15e   :  { %1856 = vmatprep.subr.bf16.mxu1 %v6038_v1  ;;  %1881 = vmatprep.subr.bf16.mxu0 %v6040_v48  ;;  %v993_v1 = vld [vmem:[#allocation3 + $0x3d8] sm:$0xff]  ;;  %7943 = vst [vmem:[#allocation120_spill] sm:$0xff] %v6070_v34  ;;  %7947 = vst [vmem:[#allocation124_spill] sm:$0xff] %v6086_v25 }
 0x15f   :  { %v6074_v33 = vcombine.high %v993_v1, %v997_v35 }
 0x161   :  { %1857 = vmatpush2.bf16.msra.mxu1 %v6044_v7  ;;  %1882 = vmatpush1.bf16.msra.mxu0 %v6046_v13  ;;  %v6068_v7 = vcombine.low %v936_v18, %v940_v15  ;;  %7944 = vst [vmem:[#allocation121_spill] sm:$0xff] %v6074_v33  ;;  %v6081_v15 = vcombine.high %v985_v60, %v989_v4  ;;  %v981_v18 = vld [vmem:[#allocation3 + $0x378] sm:$0xff] }
 0x162   :  { %1858 = vmatprep.subr.bf16.mxu1 %v6050_v31  ;;  %1883 = vmatprep.subr.bf16.mxu0 %v6052_v54  ;;  %v6078_v31 = vcombine.low %v993_v1, %v997_v35  ;;  %v6090_v35 = vcombine.high %v977_v17, %v981_v18  ;;  %v969_v1 = vld [vmem:[#allocation3 + $0x318] sm:$0xff] }
 0x163   :  { %7942 = vst [vmem:[#allocation119_spill] sm:$0xff] %v6068_v7  ;;  %7946 = vst [vmem:[#allocation123_spill] sm:$0xff] %v6081_v15  ;;  %v961_v4 = vld [vmem:[#allocation3 + $0x2d8] sm:$0xff] }
 0x164   :  { %7945 = vst [vmem:[#allocation122_spill] sm:$0xff] %v6078_v31  ;;  %7948 = vst [vmem:[#allocation125_spill] sm:$0xff] %v6090_v35 }
 0x165   :  { %1859 = vmatpush2.bf16.msra.mxu1 %v6056_v29  ;;  %1884 = vmatpush1.bf16.msra.mxu0 %v6058_v27 }
 0x166   :  { %1860 = vmatprep.subr.bf16.mxu1 %v6062_v28  ;;  %1885 = vmatprep.subr.bf16.mxu0 %v6064_v41 }
 0x169   :  { %1861 = vmatpush2.bf16.msra.mxu1 %v6068_v7  ;;  %1886 = vmatpush1.bf16.msra.mxu0 %v6070_v34  ;;  %v973_v7 = vld [vmem:[#allocation3 + $0x338] sm:$0xff] }
 0x16a   :  { %1887 = vmatprep.subr.bf16.mxu0 %v6074_v33  ;;  %2115 = vmatprep.subr.bf16.mxu1 %v5661_v26  ;;  %v6094_v26 = vcombine.low %v977_v17, %v981_v18  ;;  %v6098_v60 = vcombine.high %v969_v1, %v973_v7  ;;  %v6102_v28 = vcombine.low %v969_v1, %v973_v7  ;;  %v953_v18 = vld [vmem:[#allocation3 + $0x298] sm:$0xff] }
 0x16b   :  { %v945_v1 = vld [vmem:[#allocation3 + $0x258] sm:$0xff] }
 0x16c   :  { %1863 = vmatmul.mubr.bf16.vlgmr.msra.gmra.mxu1 %v5880_v5  ;;  %7949 = vst [vmem:[#allocation126_spill] sm:$0xff] %v6094_v26  ;;  %7950 = vst [vmem:[#allocation127_spill] sm:$0xff] %v6098_v60 }
 0x16d   :  { %1888 = vmatpush2.bf16.msra.mxu0 %v6078_v31  ;;  %2116 = vmatpush1.bf16.msra.mxu1 %v5680_v46  ;;  %v965_v46 = vld [vmem:[#allocation3 + $0x2f8] sm:$0xff]  ;;  %7951 = vst [vmem:[#allocation128_spill] sm:$0xff] %v6102_v28 }
 0x16e   :  { %1889 = vmatprep.subr.bf16.mxu0 %v6081_v15  ;;  %2117 = vmatprep.subr.bf16.mxu1 %v5684_v49  ;;  %v6106_v17 = vcombine.high %v961_v4, %v965_v46  ;;  %v6110_v49 = vcombine.low %v961_v4, %v965_v46  ;;  %v6122_v46 = vpop.f32.mrf.mxu1 }
 0x170   :  { %7952 = vst [vmem:[#allocation129_spill] sm:$0xff] %v6106_v17  ;;  %7953 = vst [vmem:[#allocation130_spill] sm:$0xff] %v6110_v49 }
 0x171   :  { %1890 = vmatpush2.bf16.msra.mxu0 %v6086_v25  ;;  %2118 = vmatpush1.bf16.msra.mxu1 %v5702_v56  ;;  %v957_v56 = vld [vmem:[#allocation3 + $0x2b8] sm:$0xff] }
 0x172   :  { %1891 = vmatprep.subr.bf16.mxu0 %v6090_v35  ;;  %2119 = vmatprep.subr.bf16.mxu1 %v5705_v58  ;;  %v6114_v7 = vcombine.high %v953_v18, %v957_v56  ;;  %v6118_v58 = vcombine.low %v953_v18, %v957_v56  ;;  %v6132_v56 = vpop.f32.mrf.mxu1 }
 0x174   :  { %7954 = vst [vmem:[#allocation131_spill] sm:$0xff] %v6114_v7  ;;  %7955 = vst [vmem:[#allocation132_spill] sm:$0xff] %v6118_v58 }
 0x175   :  { %1892 = vmatpush2.bf16.msra.mxu0 %v6094_v26  ;;  %2120 = vmatpush1.bf16.msra.mxu1 %v5716_v61  ;;  %v949_v61 = vld [vmem:[#allocation3 + $0x278] sm:$0xff] }
 0x176   :  { %1893 = vmatprep.subr.bf16.mxu0 %v6098_v60  ;;  %2121 = vmatprep.subr.bf16.mxu1 %v5719_v63  ;;  %v6124_v4 = vcombine.high %v945_v1, %v949_v61  ;;  %v941_v63 = vld [vmem:[#allocation3 + $0x238] sm:$0xff] }
 0x178   :  { %7956 = vst [vmem:[#allocation133_spill] sm:$0xff] %v6124_v4 }
 0x179   :  { %1894 = vmatpush2.bf16.msra.mxu0 %v6102_v28  ;;  %2122 = vmatpush1.bf16.msra.mxu1 %v5728_v6  ;;  %v937_v6 = vld [vmem:[#allocation3 + $0x218] sm:$0xff] }
 0x17a   :  { %1895 = vmatprep.subr.bf16.mxu0 %v6106_v17  ;;  %2123 = vmatprep.subr.bf16.mxu1 %v5731_v8  ;;  %v6128_v8 = vcombine.low %v945_v1, %v949_v61  ;;  %v6134_v18 = vcombine.high %v937_v6, %v941_v63 }
 0x17c   :  { %7957 = vst [vmem:[#allocation134_spill] sm:$0xff] %v6128_v8  ;;  %7958 = vst [vmem:[#allocation135_spill] sm:$0xff] %v6134_v18 }
 0x17d   :  { %1896 = vmatpush2.bf16.msra.mxu0 %v6110_v49  ;;  %2124 = vmatpush1.bf16.msra.mxu1 %v5740_v14  ;;  %v6138_v14 = vcombine.low %v937_v6, %v941_v63 }
 0x17e   :  { %1897 = vmatprep.subr.bf16.mxu0 %v6114_v7  ;;  %2125 = vmatprep.subr.bf16.mxu1 %v5743_v16  ;;  %v6141_v16 = vpop.f32.mrf.mxu1 }
 0x17f   :  { %7959 = vst [vmem:[#allocation136_spill] sm:$0xff] %v6138_v14 }
 0x180   :  { %v6147_v61 = vpop.f32.mrf.mxu1 }
 0x181   :  { %1898 = vmatpush2.bf16.msra.mxu0 %v6118_v58  ;;  %2126 = vmatpush1.bf16.msra.mxu1 %v5754_v22 }
 0x182   :  { %1899 = vmatprep.subr.bf16.mxu0 %v6124_v4  ;;  %2127 = vmatprep.subr.bf16.mxu1 %v5757_v24  ;;  %v6154_v63 = vpop.f32.mrf.mxu1  ;;  %v7969_v24 = vld [vmem:[#allocation60_spill] sm:$0xff] }
 0x183   :  { %v7974_v4 = vld [vmem:[#allocation68_spill] sm:$0xff] }
 0x184   :  { %v6160_v6 = vpop.f32.mrf.mxu1 }
 0x185   :  { %1900 = vmatpush2.bf16.msra.mxu0 %v6128_v8  ;;  %2128 = vmatpush1.bf16.msra.mxu1 %v5767_v36  ;;  %v7973_v8 = vld [vmem:[#allocation66_spill] sm:$0xff] }
 0x186   :  { %1901 = vmatprep.subr.bf16.mxu0 %v6134_v18  ;;  %2129 = vmatprep.subr.bf16.mxu1 %v5770_v38 }
 0x189   :  { %1902 = vmatpush2.bf16.msra.mxu0 %v6138_v14  ;;  %2130 = vmatpush1.bf16.msra.mxu1 %v5773_v43 }
 0x18a   :  { %2156 = vmatprep.subr.bf16.mxu0 %v5778_v45  ;;  %2131 = vmatprep.subr.bf16.mxu1 %v5776_v44  ;;  %v7963_v44 = vld [vmem:[#allocation57_spill] sm:$0xff] }
 0x18c   :  { %1904 = vmatmul.mubr.bf16.vlgmr.msra.gmra.mxu0 %v5880_v5  ;;  %v6166_v5 = vpop.f32.mrf.mxu1 }
 0x18d   :  { %2157 = vmatpush1.bf16.msra.mxu0 %v5783_v55  ;;  %2132 = vmatpush2.bf16.msra.mxu1 %v5781_v53 }
 0x18e   :  { %2158 = vmatprep.subr.bf16.mxu0 %v5789_v59  ;;  %2133 = vmatprep.subr.bf16.mxu1 %v5787_v57  ;;  %v6172_v1 = vpop.f32.mrf.mxu1  ;;  %v7962_v57 = vld [vmem:[#allocation54_spill] sm:$0xff] }
 0x191   :  { %2159 = vmatpush1.bf16.msra.mxu0 %v5797_v0  ;;  %2134 = vmatpush2.bf16.msra.mxu1 %v5795_v62  ;;  %v7961_v62 = vld [vmem:[#allocation55_spill] sm:$0xff] }
 0x192   :  { %2160 = vmatprep.subr.bf16.mxu0 %v5803_v3  ;;  %2135 = vmatprep.subr.bf16.mxu1 %v5801_v2  ;;  %v6178_v2 = vpop.f32.mrf.mxu0  ;;  %v7972_v3 = vld [vmem:[#allocation64_spill] sm:$0xff] }
 0x195   :  { %2161 = vmatpush1.bf16.msra.mxu0 %v5810_v10  ;;  %2136 = vmatpush2.bf16.msra.mxu1 %v5808_v9  ;;  %v406_v9 = vpop.f32.mrf.mxu1 }
 0x196   :  { %2162 = vmatprep.subr.bf16.mxu0 %v5816_v12  ;;  %2137 = vmatprep.subr.bf16.mxu1 %v5814_v11  ;;  %v6184_v11 = vpop.f32.mrf.mxu0 }
 0x199   :  { %2163 = vmatpush1.bf16.msra.mxu0 %v5822_v20  ;;  %2138 = vmatpush2.bf16.msra.mxu1 %v5820_v19  ;;  %v408_v19 = vpop.f32.mrf.mxu1 }
 0x19a   :  { %2164 = vmatprep.subr.bf16.mxu0 %v5828_v23  ;;  %2139 = vmatprep.subr.bf16.mxu1 %v5826_v21  ;;  %v7960_v21 = vlaneseq }
 0x19b   :  { %v410_v53 = vpop.f32.mrf.mxu1 }
 0x19c   :  { %vm6316_vm10 = vcmp.lt.s32.totalorder %v7960_v21, 256 }
 0x19d   :  { %2165 = vmatpush1.bf16.msra.mxu0 %v5834_v37  ;;  %2140 = vmatpush2.bf16.msra.mxu1 %v5832_v30  ;;  %v6189_v30 = vshrl.u32 %v7960_v21, 7  ;;  %v412_v36 = vpop.f32.mrf.mxu1 }
 0x19e   :  { %2166 = vmatprep.subr.bf16.mxu0 %v5840_v40  ;;  %2141 = vmatprep.subr.bf16.mxu1 %v5838_v39  ;;  %v6193_v39 = vpop.f32.mrf.mxu0 }
 0x19f   :  { %v6198_v43 = vsub.s32 0, %v6189_v30  ;;  %v6201_v38 = vsub.s32 4, %v6189_v30 }
 0x1a1   :  { %2167 = vmatpush1.bf16.msra.mxu0 %v5846_v51  ;;  %2142 = vmatpush2.bf16.msra.mxu1 %v5844_v50  ;;  %v7964_v50 = vld [vmem:[#allocation56_spill] sm:$0xff]  ;;  %7965 = vst [vmem:[#allocation137_spill] sm:$0xff] %v6198_v43  ;;  %v7970_v51 = vld [vmem:[#allocation61_spill] sm:$0xff] }
 0x1a2   :  { %2168 = vmatprep.subr.bf16.mxu0 %v5852_v32  ;;  %2143 = vmatprep.subr.bf16.mxu1 %v5850_v52  ;;  %v6206_v52 = vld [vmem:[%s7543_s9] sm:$0xff]  ;;  %v6216_v32 = vpop.f32.mrf.mxu0 }
 0x1a3   :  { %v799_v22 = vrot.slane %v6206_v52, %v6198_v43  ;;  %v815_v40 = vrot.slane %v6206_v52, %v6201_v38 }
 0x1a5   :  { %2169 = vmatpush1.bf16.msra.mxu0 %v7961_v62  ;;  %2144 = vmatpush2.bf16.msra.mxu1 %v7962_v57  ;;  %v6209_v57 = vsub.s32 1, %v6189_v30  ;;  %v6212_v62 = vsub.s32 5, %v6189_v30 }
 0x1a6   :  { %2170 = vmatprep.subr.bf16.mxu0 %v7963_v44  ;;  %2145 = vmatprep.subr.bf16.mxu1 %v7964_v50  ;;  %v7967_v44 = vld [vmem:[#allocation59_spill] sm:$0xff]  ;;  %v7968_v50 = vld [vmem:[#allocation58_spill] sm:$0xff] }
 0x1a7   :  { %7966 = vst [vmem:[#allocation138_spill] sm:$0xff] %v6209_v57  ;;  %v819_v12 = vrot.slane %v6206_v52, %v6212_v62 }
 0x1a9   :  { %2171 = vmatpush1.bf16.msra.mxu0 %v7967_v44  ;;  %2146 = vmatpush2.bf16.msra.mxu1 %v7968_v50  ;;  %v803_v50 = vrot.slane %v6206_v52, %v6209_v57 }
 0x1aa   :  { %2172 = vmatprep.subr.bf16.mxu0 %v7969_v24  ;;  %2197 = vmatprep.subr.bf16.mxu1 %v7970_v51  ;;  %v7971_v24 = vld [vmem:[#allocation62_spill] sm:$0xff] }
 0x1ac   :  { %v656_v37 = vpop.f32.mrf.mxu0  ;;  %v742_v23 = vpop.f32.mrf.mxu1 }
 0x1ad   :  { %v657_v20 = vadd.f32 %v656_v37, %v6122_v46  ;;  %v743_v44 = vadd.f32 %v742_v23, %v406_v9  ;;  %2173 = vmatpush2.bf16.msra.mxu0 %v7971_v24 }
 0x1ae   :  { %v658_v51 = vpop.f32.mrf.mxu0  ;;  %v744_v10 = vpop.f32.mrf.mxu1  ;;  %2174 = vmatprep.subr.bf16.mxu0 %v7972_v3 }
 0x1af   :  { %v836_v0 = vadd.f32 %v799_v22, %v657_v20  ;;  %v840_v59 = vadd.f32 %v815_v40, %v743_v44  ;;  %v659_v55 = vadd.f32 %v658_v51, %v6132_v56  ;;  %v745_v45 = vadd.f32 %v744_v10, %v408_v19 }
 0x1b0   :  { %v660_v14 = vpop.f32.mrf.mxu0  ;;  %v746_v37 = vpop.f32.mrf.mxu1 }
 0x1b1   :  { %852 = vst [vmem:[#allocation2] sm:$0xff] %v836_v0  ;;  %856 = vst [vmem:[#allocation2 + $0x20] sm:$0xff] %v840_v59  ;;  %v837_v9 = vadd.f32 %v803_v50, %v659_v55  ;;  %v841_v23 = vadd.f32 %v819_v12, %v745_v45  ;;  %v661_v46 = vadd.f32 %v660_v14, %v6141_v16  ;;  %2175 = vmatpush2.bf16.msra.mxu0 %v7973_v8  ;;  %v7975_v59 = vld [vmem:[#allocation70_spill] sm:$0xff]  ;;  %v7976_v14 = vld [vmem:[#allocation72_spill] sm:$0xff] }
 0x1b2   :  { %v747_v18 = vadd.f32 %v746_v37, %v410_v53  ;;  %v662_v24 = vpop.f32.mrf.mxu0  ;;  %v748_v29 = vpop.f32.mrf.mxu1  ;;  %2176 = vmatprep.subr.bf16.mxu0 %v7974_v4  ;;  %v6239_v16 = vsub.s32 2, %v6189_v30  ;;  %v6242_v53 = vsub.s32 3, %v6189_v30 }
 0x1b3   :  { %853 = vst [vmem:[#allocation2 + $0x8] sm:$0xff] %v837_v9  ;;  %857 = vst [vmem:[#allocation2 + $0x28] sm:$0xff] %v841_v23  ;;  %v844_v44 = vadd.f32 %v799_v22, %v661_v46  ;;  %v663_v10 = vadd.f32 %v662_v24, %v6147_v61  ;;  %v749_v19 = vadd.f32 %v748_v29, %v412_v36  ;;  %v7978_v22 = vld [vmem:[#allocation74_spill] sm:$0xff]  ;;  %v7979_v24 = vld [vmem:[#allocation76_spill] sm:$0xff] }
 0x1b4   :  { %v848_v20 = vadd.f32 %v815_v40, %v747_v18  ;;  %7977 = vst [vmem:[#allocation139_spill] sm:$0xff] %v6239_v16  ;;  %v807_v36 = vrot.slane %v6206_v52, %v6239_v16  ;;  %v811_v40 = vrot.slane %v6206_v52, %v6242_v53  ;;  %v7981_v29 = vld [vmem:[#allocation80_spill] sm:$0xff]  ;;  %v7982_v23 = vld [vmem:[#allocation82_spill] sm:$0xff] }
 0x1b5   :  { %860 = vst [vmem:[#allocation2 + $0x40] sm:$0xff] %v844_v44  ;;  %v845_v55 = vadd.f32 %v803_v50, %v663_v10  ;;  %v849_v45 = vadd.f32 %v819_v12, %v749_v19  ;;  %2177 = vmatpush2.bf16.msra.mxu0 %v7975_v59  ;;  %v7980_v50 = vld [vmem:[#allocation78_spill] sm:$0xff] }
 0x1b6   :  { %864 = vst [vmem:[#allocation2 + $0x60] sm:$0xff] %v848_v20  ;;  %2178 = vmatprep.subr.bf16.mxu0 %v7976_v14  ;;  %v7984_v19 = vld [vmem:[#allocation86_spill] sm:$0xff] }
 0x1b7   :  { %861 = vst [vmem:[#allocation2 + $0x48] sm:$0xff] %v845_v55  ;;  %865 = vst [vmem:[#allocation2 + $0x68] sm:$0xff] %v849_v45  ;;  %v7985_v55 = vld [vmem:[#allocation88_spill] sm:$0xff]  ;;  %v7986_v45 = vld [vmem:[#allocation90_spill] sm:$0xff] }
 0x1b9   :  { %2179 = vmatpush2.bf16.msra.mxu0 %v7978_v22 }
 0x1ba   :  { %2180 = vmatprep.subr.bf16.mxu0 %v7979_v24 }
 0x1bc   :  { %v699_v0 = vpop.f32.mrf.mxu0 }
 0x1bd   :  { %v700_v12 = vadd.f32 %v699_v0, %v6154_v63  ;;  %2181 = vmatpush2.bf16.msra.mxu0 %v7980_v50  ;;  %v7983_v63 = vld [vmem:[#allocation84_spill] sm:$0xff]  ;;  %v7987_v0 = vld [vmem:[#allocation93_spill] sm:$0xff] }
 0x1be   :  { %v701_v51 = vpop.f32.mrf.mxu0  ;;  %2182 = vmatprep.subr.bf16.mxu0 %v7981_v29 }
 0x1bf   :  { %v838_v56 = vadd.f32 %v807_v36, %v700_v12  ;;  %v702_v18 = vadd.f32 %v701_v51, %v6160_v6  ;;  %v6261_v6 = vsub.s32 6, %v6189_v30 }
 0x1c0   :  { %v703_v61 = vpop.f32.mrf.mxu0 }
 0x1c1   :  { %854 = vst [vmem:[#allocation2 + $0x10] sm:$0xff] %v838_v56  ;;  %v839_v37 = vadd.f32 %v811_v40, %v702_v18  ;;  %v704_v9 = vadd.f32 %v703_v61, %v6166_v5  ;;  %2183 = vmatpush2.bf16.msra.mxu0 %v7982_v23  ;;  %v6264_v5 = vsub.s32 7, %v6189_v30 }
 0x1c2   :  { %v705_v46 = vpop.f32.mrf.mxu0  ;;  %2184 = vmatprep.subr.bf16.mxu0 %v7983_v63 }
 0x1c3   :  { %855 = vst [vmem:[#allocation2 + $0x18] sm:$0xff] %v839_v37  ;;  %v846_v44 = vadd.f32 %v807_v36, %v704_v9  ;;  %v706_v20 = vadd.f32 %v705_v46, %v6172_v1  ;;  %v823_v1 = vrot.slane %v6206_v52, %v6261_v6 }
 0x1c5   :  { %862 = vst [vmem:[#allocation2 + $0x50] sm:$0xff] %v846_v44  ;;  %v847_v10 = vadd.f32 %v811_v40, %v706_v20  ;;  %2185 = vmatpush2.bf16.msra.mxu0 %v7984_v19  ;;  %v827_v40 = vrot.slane %v6206_v52, %v6264_v5 }
 0x1c6   :  { %2186 = vmatprep.subr.bf16.mxu0 %v7985_v55 }
 0x1c7   :  { %863 = vst [vmem:[#allocation2 + $0x58] sm:$0xff] %v847_v10 }
 0x1c9   :  { %2187 = vmatpush2.bf16.msra.mxu0 %v7986_v45 }
 0x1ca   :  { %2238 = vmatprep.subr.bf16.mxu0 %v7987_v0 }
 0x1cc   :  { %v785_v36 = vpop.f32.mrf.mxu0 }
 0x1cd   :  { %v786_v12 = vadd.f32 %v785_v36, %v6178_v2 }
 0x1ce   :  { %v787_v51 = vpop.f32.mrf.mxu0 }
 0x1cf   :  { %v842_v56 = vadd.f32 %v823_v1, %v786_v12  ;;  %v788_v18 = vadd.f32 %v787_v51, %v6184_v11 }
 0x1d0   :  { %v789_v61 = vpop.f32.mrf.mxu0 }
 0x1d1   :  { %858 = vst [vmem:[#allocation2 + $0x30] sm:$0xff] %v842_v56  ;;  %v843_v37 = vadd.f32 %v827_v40, %v788_v18  ;;  %v790_v9 = vadd.f32 %v789_v61, %v6193_v39  ;;  %v1002_v18 = vld [vmem:[#allocation2 + $0x40] ss:$8 sm:$0xf] }
 0x1d2   :  { %v791_v46 = vpop.f32.mrf.mxu0  ;;  %v998_v61 = vld [vmem:[#allocation2] ss:$8 sm:$0xf] }
 0x1d3   :  { %859 = vst [vmem:[#allocation2 + $0x38] sm:$0xff] %v843_v37  ;;  %v850_v44 = vadd.f32 %v823_v1, %v790_v9  ;;  %v792_v20 = vadd.f32 %v791_v46, %v6216_v32 }
 0x1d5   :  { %866 = vst [vmem:[#allocation2 + $0x70] sm:$0xff] %v850_v44  ;;  %v851_v10 = vadd.f32 %v827_v40, %v792_v20 }
 0x1d7   :  { %867 = vst [vmem:[#allocation2 + $0x78] sm:$0xff] %v851_v10 }
 0x1da   :  { %v999_v55 = vld [vmem:[#allocation2] ss:$8 sm:$0xf0] }
 0x1db   :  { %v1000_v37 = vor.u32 %v999_v55, %v998_v61 }
 0x1dd   :  { %v1009_v32 = vrot.slane %v1000_v37, %v6198_v43  ;;  %v1017_v46 = vrot.slane %v1000_v37, %v6239_v16  ;;  %v1013_v10 = vrot.slane %v1000_v37, %v6209_v57 }
 0x1de   :  { %v1003_v56 = vld [vmem:[#allocation2 + $0x40] ss:$8 sm:$0xf0] }
 0x1df   :  { %v1004_v39 = vor.u32 %v1003_v56, %v1002_v18 }
 0x1e1   :  { %v1050_v1 = vrot.slane %v1004_v39, %v6198_v43  ;;  %v1058_v40 = vrot.slane %v1004_v39, %v6239_v16  ;;  %v1062_v20 = vrot.slane %v1004_v39, %v6242_v53 }
 0x1e3   :  { %v1087_v9 = vsel %vm106_vm1, %v1009_v32, %v1050_v1 }
 0x1ec   :  { %v1782_v2 = vpop.f32.mrf.mxu1 }
 0x1ed   :  { %v1912_v44 = vadd.f32 %v1782_v2, %v1087_v9 }
 0x1ee   :  { %v1784_v36 = vpop.f32.mrf.mxu1 }
 0x1ef   :  { %v4940_v61 = vmul.f32 -1.442695, %v1912_v44 }
 0x1f0   :  { %v1786_v52 = vpop.f32.mrf.mxu1 }
 0x1f1   :  { %v1089_v52 = vsel %vm106_vm1, %v1017_v46, %v1058_v40  ;;  %5098 = vpow2.f32 %v4940_v61  ;;  %v1070_v46 = vrot.slane %v1004_v39, %v6212_v62  ;;  %v1033_v61 = vrot.slane %v1000_v37, %v6261_v6 }
 0x1f2   :  { %v1787_v0 = vpop.f32.mrf.mxu1 }
 0x1f3   :  { %v1054_v0 = vrot.slane %v1004_v39, %v6209_v57 }
 0x1f5   :  { %v1088_v56 = vsel %vm106_vm1, %v1013_v10, %v1054_v0  ;;  %v1025_v0 = vrot.slane %v1000_v37, %v6201_v38 }
 0x1f6   :  { %v1913_v1 = vadd.f32 %v1784_v36, %v1088_v56  ;;  %v1074_v56 = vrot.slane %v1004_v39, %v6261_v6 }
 0x1f8   :  { %v4941_v19 = vmul.f32 -1.442695, %v1913_v1  ;;  %v1078_v1 = vrot.slane %v1004_v39, %v6264_v5 }
 0x1fe   :  { %v5099_v40 = vpop.eup %5098 }
 0x1ff   :  { %v1926_v44 = vadd.f32 1.0, %v5099_v40 }
 0x20c   :  { %v1823_v12 = vpop.f32.mrf.mxu0 }
 0x20e   :  { %v1825_v45 = vpop.f32.mrf.mxu0 }
 0x210   :  { %v1827_v11 = vpop.f32.mrf.mxu0 }
 0x211   :  { %v1914_v11 = vadd.f32 %v1823_v12, %v1089_v52  ;;  %v1066_v12 = vrot.slane %v1004_v39, %v6201_v38 }
 0x212   :  { %v1828_v51 = vpop.f32.mrf.mxu0 }
 0x213   :  { %v1021_v51 = vrot.slane %v1000_v37, %v6242_v53  ;;  %v4942_v2 = vmul.f32 -1.442695, %v1914_v11 }
 0x215   :  { %v1090_v32 = vsel %vm106_vm1, %v1021_v51, %v1062_v20  ;;  %5100 = vpow2.f32 %v4942_v2  ;;  %v1037_v2 = vrot.slane %v1000_v37, %v6264_v5 }
 0x216   :  { %v1915_v43 = vadd.f32 %v1825_v45, %v1090_v32  ;;  %5102 = vpow2.f32 %v4941_v19  ;;  %v1091_v45 = vsel %vm106_vm1, %v1025_v0, %v1066_v12 }
 0x218   :  { %v4943_v57 = vmul.f32 -1.442695, %v1915_v43 }
 0x21a   :  { %5104 = vpow2.f32 %v4943_v57 }
 0x21b   :  { %5106 = vrcp.f32 %v1926_v44 }
 0x222   :  { %v5101_v36 = vpop.eup %5100 }
 0x223   :  { %v5103_v20 = vpop.eup %5102  ;;  %v1938_v43 = vadd.f32 1.0, %v5101_v36 }
 0x224   :  { %v1927_v11 = vadd.f32 1.0, %v5103_v20 }
 0x227   :  { %v5105_v52 = vpop.eup %5104 }
 0x228   :  { %v1939_v51 = vadd.f32 1.0, %v5105_v52 }
 0x22c   :  { %v1864_v55 = vpop.f32.mrf.mxu1 }
 0x22d   :  { %v1916_v10 = vadd.f32 %v1864_v55, %v1091_v45  ;;  %v1093_v55 = vsel %vm106_vm1, %v1033_v61, %v1074_v56  ;;  %v5107_v45 = vpop.eup %5106 }
 0x22e   :  { %v1866_v18 = vpop.f32.mrf.mxu1 }
 0x22f   :  { %5108 = vtanh.f32 %v1916_v10 }
 0x230   :  { %v1868_v16 = vpop.f32.mrf.mxu1  ;;  %5110 = vrcp.f32 %v1938_v43 }
 0x231   :  { %v1029_v16 = vrot.slane %v1000_v37, %v6212_v62 }
 0x232   :  { %v1869_v9 = vpop.f32.mrf.mxu1 }
 0x233   :  { %v1092_v19 = vsel %vm106_vm1, %v1029_v16, %v1070_v46  ;;  %v1094_v9 = vsel %vm106_vm1, %v1037_v2, %v1078_v1  ;;  %v4946_v16 = vld.sshfl [vmem:[%s7538_s4 + $0x4] sm:$0x33 pattern:$0x76325410] }
 0x234   :  { %v1917_v57 = vadd.f32 %v1866_v18, %v1092_v19  ;;  %v1966_v43 = vcombine.high %v4946_v16, %v4946_v16 }
 0x236   :  { %5112 = vtanh.f32 %v1917_v57 }
 0x237   :  { %5114 = vrcp.f32 %v1927_v11 }
 0x238   :  { %5116 = vrcp.f32 %v1939_v51 }
 0x23c   :  { %v5109_v39 = vpop.eup %5108 }
 0x23d   :  { %v5111_v20 = vpop.eup %5110  ;;  %v1971_v52 = vmul.f32 %v5109_v39, %v5107_v45 }
 0x23e   :  { %v1969_v57 = vmul.f32 %v5111_v20, %v4946_v16 }
 0x240   :  { %v6303_v51 = vadd.f32 %v1971_v52, %v1969_v57  ;;  %v7991_v57 = vld [vmem:[#allocation65_spill] sm:$0xff] }
 0x243   :  { %v5113_v10 = vpop.eup %5112 }
 0x244   :  { %v5115_v37 = vpop.eup %5114 }
 0x245   :  { %v5117_v19 = vpop.eup %5116  ;;  %v1972_v11 = vmul.f32 %v5115_v37, %v5113_v10 }
 0x246   :  { %v1970_v56 = vmul.f32 %v5117_v19, %v1966_v43  ;;  %v7990_v19 = vld [vmem:[#allocation63_spill] sm:$0xff] }
 0x248   :  { %v6305_v1 = vadd.f32 %v1972_v11, %v1970_v56  ;;  %v7992_v11 = vld [vmem:[#allocation96_spill] sm:$0xff]  ;;  %v7993_v56 = vld [vmem:[#allocation67_spill] sm:$0xff] }
 0x24c   :  { %v1905_v32 = vpop.f32.mrf.mxu0 }
 0x24d   :  { %v1918_v18 = vadd.f32 %v1905_v32, %v1093_v55 }
 0x24e   :  { %v1907_v12 = vpop.f32.mrf.mxu0 }
 0x24f   :  { %v4944_v40 = vmul.f32 -1.442695, %v1918_v18  ;;  %v1919_v0 = vadd.f32 %v1907_v12, %v1094_v9  ;;  %v5434_v18 = vmov 1966171168  }
 0x250   :  { %v1909_v46 = vpop.f32.mrf.mxu0  ;;  %v1983_v9 = vunpack.c.l.s4 %v5434_v18  ;;  %v7998_v18 = vld [vmem:[#allocation102_spill] sm:$0xff] }
 0x251   :  { %5118 = vpow2.f32 %v4944_v40  ;;  %v4945_v36 = vmul.f32 -1.442695, %v1919_v0 }
 0x252   :  { %v1910_v44 = vpop.f32.mrf.mxu0  ;;  %v1984_v40 = vunpack.c.0.s8 %v1983_v9  ;;  %v7999_v9 = vld [vmem:[#allocation73_spill] sm:$0xff] }
 0x253   :  { %5120 = vpow2.f32 %v4945_v36 }
 0x254   :  { %5122 = vtanh.f32 %v6303_v51  ;;  %v6310_v45 = vsub.s32 %v1984_v40, %v6189_v30  ;;  %v8001_v40 = vld [vmem:[#allocation75_spill] sm:$0xff] }
 0x25e   :  { %v5119_v61 = vpop.eup %5118 }
 0x25f   :  { %v1952_v55 = vadd.f32 1.0, %v5119_v61  ;;  %v7994_v61 = vld [vmem:[#allocation98_spill] sm:$0xff] }
 0x260   :  { %v5121_v32 = vpop.eup %5120 }
 0x261   :  { %5124 = vrcp.f32 %v1952_v55  ;;  %v1953_v2 = vadd.f32 1.0, %v5121_v32  ;;  %v5123_v12 = vpop.eup %5122  ;;  %v7995_v55 = vld [vmem:[#allocation69_spill] sm:$0xff]  ;;  %v7996_v32 = vld [vmem:[#allocation100_spill] sm:$0xff] }
 0x262   :  { %5126 = vtanh.f32 %v6305_v1 }
 0x263   :  { %5128 = vrcp.f32 %v1953_v2  ;;  %v7997_v2 = vld [vmem:[#allocation71_spill] sm:$0xff] }
 0x26e   :  { %v5125_v0 = vpop.eup %5124 }
 0x26f   :  { %v5127_v46 = vpop.eup %5126  ;;  %v1977_v44 = vmul.f32 %v5125_v0, %v5123_v12  ;;  %v8000_v12 = vld [vmem:[#allocation104_spill] sm:$0xff]  ;;  %v8002_v0 = vld [vmem:[#allocation106_spill] sm:$0xff] }
 0x270   :  { %v5129_v36 = vpop.eup %5128 }
 0x271   :  { %v1978_v39 = vmul.f32 %v5129_v36, %v5127_v46  ;;  %v6312_v10 = vpack.c.bf16 %v1977_v44, %v1977_v44  ;;  %v8003_v46 = vld [vmem:[#allocation77_spill] sm:$0xff]  ;;  %v8004_v36 = vld [vmem:[#allocation108_spill] sm:$0xff] }
 0x273   :  { %v2114_v16 = vpack.c.bf16 %v1978_v39, %v1978_v39  ;;  %v1981_v20 = vcombine.low %v1977_v44, %v1978_v39  ;;  %v8005_v44 = vld [vmem:[#allocation79_spill] sm:$0xff]  ;;  %v8006_v39 = vld [vmem:[#allocation81_spill] sm:$0xff] }
 0x275   :  { %2147 = vmatprep.mubr.bf16.mxu1 %v2114_v16  ;;  %2188 = vmatprep.mubr.bf16.mxu0 %v2114_v16  ;;  %v1988_v37 = vrot.slane %v1981_v20, %v6310_v45  ;;  %v8008_v20 = vld [vmem:[#allocation85_spill] sm:$0xff] }
 0x276   :  { %2148 = vmatmul.mubr.bf16.vlgmr.msra.gmra.mxu1 %v6312_v10  ;;  %2189 = vmatmul.mubr.bf16.vlgmr.msra.gmra.mxu0 %v6312_v10 }
 0x277   :  { %v1995_v30 = vrot.slane %v1988_v37, %v6310_v45  ;;  %v2003_v43 = vcombine.high %v1988_v37, %v1988_v37  ;;  %2198 = vmatpush1.bf16.msra.mxu1 %v7990_v19  ;;  %2239 = vmatpush1.bf16.msra.mxu0 %v5984_v47  ;;  %v8009_v37 = vld [vmem:[#allocation87_spill] sm:$0xff] }
 0x278   :  { %2229 = vmatprep.mubr.bf16.mxu1 %v2114_v16  ;;  %2270 = vmatprep.mubr.bf16.mxu0 %v2114_v16  ;;  %v8007_v16 = vld [vmem:[#allocation83_spill] sm:$0xff] }
 0x279   :  { %2001 = vst.msk [vmem:[#allocation6] ss:$8 sm:$0x3] %vm6316_vm10, %v1995_v30  ;;  %v2010_v21 = vrot.slane %v2003_v43, %v6310_v45  ;;  %2199 = vmatprep.subr.bf16.mxu1 %v7991_v57  ;;  %2240 = vmatprep.subr.bf16.mxu0 %v7992_v11  ;;  %v8010_v30 = vld [vmem:[#allocation89_spill] sm:$0xff]  ;;  %v8011_v43 = vld [vmem:[#allocation91_spill] sm:$0xff] }
 0x27b   :  { %2013 = vst.msk [vmem:[#allocation6 + $0x10] ss:$8 sm:$0x3] %vm6316_vm10, %v2010_v21  ;;  %2200 = vmatpush1.bf16.msra.mxu1 %v7993_v56  ;;  %2241 = vmatpush1.bf16.msra.mxu0 %v7994_v61  ;;  %v8012_v21 = vld [vmem:[#allocation92_spill] sm:$0xff] }
 0x27c   :  { %2201 = vmatprep.subr.bf16.mxu1 %v7995_v55  ;;  %2242 = vmatprep.subr.bf16.mxu0 %v7996_v32 }
 0x27f   :  { %2202 = vmatpush1.bf16.msra.mxu1 %v7997_v2  ;;  %2243 = vmatpush1.bf16.msra.mxu0 %v7998_v18 }
 0x280   :  { %2203 = vmatprep.subr.bf16.mxu1 %v7999_v9  ;;  %2244 = vmatprep.subr.bf16.mxu0 %v8000_v12 }
 0x283   :  { %2204 = vmatpush1.bf16.msra.mxu1 %v8001_v40  ;;  %2245 = vmatpush1.bf16.msra.mxu0 %v8002_v0 }
 0x284   :  { %2205 = vmatprep.subr.bf16.mxu1 %v8003_v46  ;;  %2246 = vmatprep.subr.bf16.mxu0 %v8004_v36 }
 0x287   :  { %2206 = vmatpush1.bf16.msra.mxu1 %v8005_v44  ;;  %2247 = vmatpush1.bf16.msra.mxu0 %v6034_v42 }
 0x288   :  { %2207 = vmatprep.subr.bf16.mxu1 %v8006_v39  ;;  %2248 = vmatprep.subr.bf16.mxu0 %v6040_v48 }
 0x28b   :  { %2208 = vmatpush1.bf16.msra.mxu1 %v8007_v16  ;;  %2249 = vmatpush1.bf16.msra.mxu0 %v6046_v13  ;;  %v8013_v13 = vld [vmem:[#allocation94_spill] sm:$0xff] }
 0x28c   :  { %2209 = vmatprep.subr.bf16.mxu1 %v8008_v20  ;;  %2250 = vmatprep.subr.bf16.mxu0 %v6052_v54  ;;  %v8014_v54 = vld [vmem:[#allocation95_spill] sm:$0xff] }
 0x28f   :  { %2210 = vmatpush1.bf16.msra.mxu1 %v8009_v37  ;;  %2251 = vmatpush1.bf16.msra.mxu0 %v6058_v27  ;;  %v8015_v27 = vld [vmem:[#allocation97_spill] sm:$0xff] }
 0x290   :  { %2211 = vmatprep.subr.bf16.mxu1 %v8010_v30  ;;  %2252 = vmatprep.subr.bf16.mxu0 %v6064_v41  ;;  %v8016_v41 = vld [vmem:[#allocation99_spill] sm:$0xff] }
 0x293   :  { %2212 = vmatpush1.bf16.msra.mxu1 %v8011_v43  ;;  %2253 = vmatpush1.bf16.msra.mxu0 %v6070_v34  ;;  %v8017_v34 = vld [vmem:[#allocation101_spill] sm:$0xff] }
 0x294   :  { %2213 = vmatprep.subr.bf16.mxu1 %v8012_v21  ;;  %2254 = vmatprep.subr.bf16.mxu0 %v6074_v33  ;;  %v8018_v33 = vld [vmem:[#allocation103_spill] sm:$0xff] }
 0x297   :  { %2214 = vmatpush2.bf16.msra.mxu1 %v8013_v13  ;;  %2255 = vmatpush2.bf16.msra.mxu0 %v6078_v31  ;;  %v8019_v31 = vld [vmem:[#allocation105_spill] sm:$0xff] }
 0x298   :  { %2215 = vmatprep.subr.bf16.mxu1 %v8014_v54  ;;  %2256 = vmatprep.subr.bf16.mxu0 %v6081_v15  ;;  %v8020_v15 = vld [vmem:[#allocation107_spill] sm:$0xff] }
 0x29b   :  { %2216 = vmatpush2.bf16.msra.mxu1 %v8015_v27  ;;  %2257 = vmatpush2.bf16.msra.mxu0 %v6086_v25  ;;  %v8021_v25 = vld [vmem:[#allocation109_spill] sm:$0xff] }
 0x29c   :  { %2217 = vmatprep.subr.bf16.mxu1 %v8016_v41  ;;  %2258 = vmatprep.subr.bf16.mxu0 %v6090_v35  ;;  %v8022_v35 = vld [vmem:[#allocation110_spill] sm:$0xff] }
 0x29f   :  { %2218 = vmatpush2.bf16.msra.mxu1 %v8017_v34  ;;  %2259 = vmatpush2.bf16.msra.mxu0 %v6094_v26  ;;  %v8023_v26 = vld [vmem:[#allocation111_spill] sm:$0xff] }
 0x2a0   :  { %2219 = vmatprep.subr.bf16.mxu1 %v8018_v33  ;;  %2260 = vmatprep.subr.bf16.mxu0 %v6098_v60  ;;  %v8024_v60 = vld [vmem:[#allocation113_spill] sm:$0xff] }
 0x2a3   :  { %2220 = vmatpush2.bf16.msra.mxu1 %v8019_v31  ;;  %2261 = vmatpush2.bf16.msra.mxu0 %v6102_v28  ;;  %v8025_v31 = vld [vmem:[#allocation133_spill] sm:$0xff]  ;;  %v8026_v28 = vld [vmem:[#allocation115_spill] sm:$0xff] }
 0x2a4   :  { %2221 = vmatprep.subr.bf16.mxu1 %v8020_v15  ;;  %2262 = vmatprep.subr.bf16.mxu0 %v6106_v17  ;;  %v8027_v15 = vld [vmem:[#allocation134_spill] sm:$0xff]  ;;  %v8028_v17 = vld [vmem:[#allocation117_spill] sm:$0xff] }
 0x2a7   :  { %2222 = vmatpush2.bf16.msra.mxu1 %v8021_v25  ;;  %2263 = vmatpush2.bf16.msra.mxu0 %v6110_v49  ;;  %v8029_v25 = vld [vmem:[#allocation135_spill] sm:$0xff] }
 0x2a8   :  { %2223 = vmatprep.subr.bf16.mxu1 %v8022_v35  ;;  %2264 = vmatprep.subr.bf16.mxu0 %v6114_v7  ;;  %v8030_v49 = vld [vmem:[#allocation119_spill] sm:$0xff]  ;;  %v8031_v35 = vld [vmem:[#allocation136_spill] sm:$0xff] }
 0x2a9   :  { %v8032_v7 = vld [vmem:[#allocation12_spill] sm:$0xff] }
 0x2ab   :  { %2224 = vmatpush2.bf16.msra.mxu1 %v8023_v26  ;;  %2265 = vmatpush2.bf16.msra.mxu0 %v6118_v58  ;;  %v8033_v26 = vld [vmem:[#allocation29_spill] sm:$0xff] }
 0x2ac   :  { %2225 = vmatprep.subr.bf16.mxu1 %v8024_v60  ;;  %2266 = vmatprep.subr.bf16.mxu0 %v8025_v31  ;;  %v8034_v31 = vld [vmem:[#allocation13_spill] sm:$0xff]  ;;  %v8043_v60 = vld [vmem:[#allocation39_spill] sm:$0xff] }
 0x2af   :  { %2226 = vmatpush2.bf16.msra.mxu1 %v8026_v28  ;;  %2267 = vmatpush2.bf16.msra.mxu0 %v8027_v15  ;;  %v8035_v28 = vld [vmem:[#allocation31_spill] sm:$0xff]  ;;  %v8036_v15 = vld [vmem:[#allocation14_spill] sm:$0xff] }
 0x2b0   :  { %2227 = vmatprep.subr.bf16.mxu1 %v8028_v17  ;;  %2268 = vmatprep.subr.bf16.mxu0 %v8029_v25  ;;  %v8037_v17 = vld [vmem:[#allocation33_spill] sm:$0xff]  ;;  %v8038_v25 = vld [vmem:[#allocation15_spill] sm:$0xff] }
 0x2b3   :  { %2228 = vmatpush2.bf16.msra.mxu1 %v8030_v49  ;;  %2269 = vmatpush2.bf16.msra.mxu0 %v8031_v35  ;;  %v8039_v49 = vld [vmem:[#allocation35_spill] sm:$0xff]  ;;  %v8040_v35 = vld [vmem:[#allocation16_spill] sm:$0xff] }
 0x2b4   :  { %2468 = vmatprep.subr.bf16.mxu1 %v8032_v7  ;;  %2509 = vmatprep.subr.bf16.mxu0 %v8033_v26  ;;  %v8041_v7 = vld [vmem:[#allocation37_spill] sm:$0xff] }
 0x2b5   :  { %v8042_v26 = vld [vmem:[#allocation17_spill] sm:$0xff] }
 0x2b6   :  { %2230 = vmatmul.mubr.bf16.vlgmr.msra.gmra.mxu1 %v6312_v10  ;;  %2271 = vmatmul.mubr.bf16.vlgmr.msra.gmra.mxu0 %v6312_v10  ;;  %v8044_v10 = vld [vmem:[#allocation18_spill] sm:$0xff] }
 0x2b7   :  { %2469 = vmatpush1.bf16.msra.mxu1 %v8034_v31  ;;  %2510 = vmatpush1.bf16.msra.mxu0 %v8035_v28  ;;  %v8045_v31 = vld [vmem:[#allocation41_spill] sm:$0xff]  ;;  %v8046_v28 = vld [vmem:[#allocation19_spill] sm:$0xff] }
 0x2b8   :  { %2470 = vmatprep.subr.bf16.mxu1 %v8036_v15  ;;  %2511 = vmatprep.subr.bf16.mxu0 %v8037_v17  ;;  %v8047_v15 = vld [vmem:[#allocation43_spill] sm:$0xff]  ;;  %v8048_v17 = vld [vmem:[#allocation20_spill] sm:$0xff] }
 0x2bb   :  { %2471 = vmatpush1.bf16.msra.mxu1 %v8038_v25  ;;  %2512 = vmatpush1.bf16.msra.mxu0 %v8039_v49  ;;  %v8049_v25 = vld [vmem:[#allocation45_spill] sm:$0xff] }
 0x2bc   :  { %2472 = vmatprep.subr.bf16.mxu1 %v8040_v35  ;;  %2513 = vmatprep.subr.bf16.mxu0 %v8041_v7  ;;  %v8050_v49 = vld [vmem:[#allocation21_spill] sm:$0xff]  ;;  %v8051_v35 = vld [vmem:[#allocation47_spill] sm:$0xff]  ;;  %v8052_v7 = vld [vmem:[#allocation22_spill] sm:$0xff] }
 0x2bf   :  { %2473 = vmatpush1.bf16.msra.mxu1 %v8042_v26  ;;  %2514 = vmatpush1.bf16.msra.mxu0 %v8043_v60  ;;  %v8053_v26 = vld [vmem:[#allocation49_spill] sm:$0xff]  ;;  %v8054_v60 = vld [vmem:[#allocation23_spill] sm:$0xff] }
 0x2c0   :  { %2474 = vmatprep.subr.bf16.mxu1 %v8044_v10  ;;  %2515 = vmatprep.subr.bf16.mxu0 %v8045_v31  ;;  %v8055_v10 = vld [vmem:[#allocation51_spill] sm:$0xff]  ;;  %v8056_v31 = vld [vmem:[#allocation24_spill] sm:$0xff] }
 0x2c3   :  { %2475 = vmatpush1.bf16.msra.mxu1 %v8046_v28  ;;  %2516 = vmatpush1.bf16.msra.mxu0 %v8047_v15  ;;  %v8057_v28 = vld [vmem:[#allocation53_spill] sm:$0xff] }
 0x2c4   :  { %2476 = vmatprep.subr.bf16.mxu1 %v8048_v17  ;;  %2517 = vmatprep.subr.bf16.mxu0 %v8049_v25  ;;  %v8058_v15 = vld [vmem:[#allocation25_spill] sm:$0xff]  ;;  %v8059_v17 = vld [vmem:[#allocation55_spill] sm:$0xff]  ;;  %v8060_v25 = vld [vmem:[#allocation26_spill] sm:$0xff] }
 0x2c7   :  { %2477 = vmatpush1.bf16.msra.mxu1 %v8050_v49  ;;  %2518 = vmatpush1.bf16.msra.mxu0 %v8051_v35  ;;  %v8061_v49 = vld [vmem:[#allocation57_spill] sm:$0xff]  ;;  %v8062_v35 = vld [vmem:[#allocation27_spill] sm:$0xff] }
 0x2c8   :  { %2478 = vmatprep.subr.bf16.mxu1 %v8052_v7  ;;  %2519 = vmatprep.subr.bf16.mxu0 %v8053_v26  ;;  %v8063_v7 = vld [vmem:[#allocation59_spill] sm:$0xff]  ;;  %v8064_v26 = vld [vmem:[#allocation28_spill] sm:$0xff] }
 0x2cb   :  { %2479 = vmatpush1.bf16.msra.mxu1 %v8054_v60  ;;  %2520 = vmatpush1.bf16.msra.mxu0 %v8055_v10  ;;  %v8065_v60 = vld [vmem:[#allocation60_spill] sm:$0xff]  ;;  %v8066_v10 = vld [vmem:[#allocation30_spill] sm:$0xff] }
 0x2cc   :  { %2480 = vmatprep.subr.bf16.mxu1 %v8056_v31  ;;  %2521 = vmatprep.subr.bf16.mxu0 %v8057_v28  ;;  %v8067_v31 = vld [vmem:[#allocation62_spill] sm:$0xff]  ;;  %v8068_v28 = vld [vmem:[#allocation32_spill] sm:$0xff] }
 0x2cf   :  { %2481 = vmatpush1.bf16.msra.mxu1 %v8058_v15  ;;  %2522 = vmatpush1.bf16.msra.mxu0 %v8059_v17  ;;  %v8069_v17 = vld [vmem:[#allocation34_spill] sm:$0xff] }
 0x2d0   :  { %2482 = vmatprep.subr.bf16.mxu1 %v8060_v25  ;;  %2523 = vmatprep.subr.bf16.mxu0 %v8061_v49  ;;  %v8070_v49 = vld [vmem:[#allocation36_spill] sm:$0xff] }
 0x2d3   :  { %2483 = vmatpush1.bf16.msra.mxu1 %v8062_v35  ;;  %2524 = vmatpush1.bf16.msra.mxu0 %v8063_v7  ;;  %v8071_v7 = vld [vmem:[#allocation38_spill] sm:$0xff] }
 0x2d4   :  { %2484 = vmatprep.subr.bf16.mxu1 %v8064_v26  ;;  %2525 = vmatprep.subr.bf16.mxu0 %v8065_v60  ;;  %v8072_v60 = vld [vmem:[#allocation40_spill] sm:$0xff]  ;;  %v8088_v26 = vld [vmem:[#allocation139_spill] sm:$0xff]  ;;  %v8089_v35 = vld [vmem:[#allocation138_spill] sm:$0xff] }
 0x2d7   :  { %2485 = vmatpush2.bf16.msra.mxu1 %v8066_v10  ;;  %2526 = vmatpush2.bf16.msra.mxu0 %v8067_v31  ;;  %v8073_v31 = vld [vmem:[#allocation42_spill] sm:$0xff]  ;;  %v8087_v10 = vld [vmem:[#allocation137_spill] sm:$0xff] }
 0x2d8   :  { %2486 = vmatprep.subr.bf16.mxu1 %v8068_v28  ;;  %2527 = vmatprep.subr.bf16.mxu0 %v7972_v3  ;;  %v8074_v3 = vld [vmem:[#allocation44_spill] sm:$0xff] }
 0x2d9   :  { %v2016_v28 = vld [vmem:[#allocation2 + $0x1] ss:$8 sm:$0xf] }
 0x2db   :  { %2487 = vmatpush2.bf16.msra.mxu1 %v8069_v17  ;;  %2528 = vmatpush2.bf16.msra.mxu0 %v7973_v8  ;;  %v8075_v8 = vld [vmem:[#allocation46_spill] sm:$0xff] }
 0x2dc   :  { %2488 = vmatprep.subr.bf16.mxu1 %v8070_v49  ;;  %2529 = vmatprep.subr.bf16.mxu0 %v7974_v4  ;;  %v8076_v4 = vld [vmem:[#allocation48_spill] sm:$0xff] }
 0x2dd   :  { %v2021_v49 = vld [vmem:[#allocation2 + $0x41] ss:$8 sm:$0xf0] }
 0x2de   :  { %v2017_v17 = vld [vmem:[#allocation2 + $0x1] ss:$8 sm:$0xf0] }
 0x2df   :  { %2489 = vmatpush2.bf16.msra.mxu1 %v8071_v7  ;;  %2530 = vmatpush2.bf16.msra.mxu0 %v7975_v59  ;;  %v8077_v59 = vld [vmem:[#allocation50_spill] sm:$0xff] }
 0x2e0   :  { %2490 = vmatprep.subr.bf16.mxu1 %v8072_v60  ;;  %2531 = vmatprep.subr.bf16.mxu0 %v7976_v14  ;;  %v8078_v14 = vld [vmem:[#allocation52_spill] sm:$0xff] }
 0x2e3   :  { %2491 = vmatpush2.bf16.msra.mxu1 %v8073_v31  ;;  %2532 = vmatpush2.bf16.msra.mxu0 %v7978_v22  ;;  %v8079_v22 = vld [vmem:[#allocation54_spill] sm:$0xff] }
 0x2e4   :  { %2492 = vmatprep.subr.bf16.mxu1 %v8074_v3  ;;  %2533 = vmatprep.subr.bf16.mxu0 %v7979_v24  ;;  %v8080_v3 = vld [vmem:[#allocation86_spill] sm:$0xff]  ;;  %v8081_v24 = vld [vmem:[#allocation56_spill] sm:$0xff] }
 0x2e7   :  { %2493 = vmatpush2.bf16.msra.mxu1 %v8075_v8  ;;  %2534 = vmatpush2.bf16.msra.mxu0 %v7980_v50  ;;  %v8082_v8 = vld [vmem:[#allocation88_spill] sm:$0xff]  ;;  %v8083_v50 = vld [vmem:[#allocation58_spill] sm:$0xff] }
 0x2e8   :  { %2494 = vmatprep.subr.bf16.mxu1 %v8076_v4  ;;  %2535 = vmatprep.subr.bf16.mxu0 %v7981_v29  ;;  %v8084_v4 = vld [vmem:[#allocation90_spill] sm:$0xff]  ;;  %v8085_v29 = vld [vmem:[#allocation61_spill] sm:$0xff] }
 0x2eb   :  { %2495 = vmatpush2.bf16.msra.mxu1 %v8077_v59  ;;  %2536 = vmatpush2.bf16.msra.mxu0 %v7982_v23  ;;  %v8086_v59 = vld [vmem:[#allocation93_spill] sm:$0xff] }
 0x2ec   :  { %2496 = vmatprep.subr.bf16.mxu1 %v8078_v14  ;;  %2537 = vmatprep.subr.bf16.mxu0 %v7983_v63 }
 0x2ef   :  { %2497 = vmatpush2.bf16.msra.mxu1 %v8079_v22  ;;  %2538 = vmatpush2.bf16.msra.mxu0 %v8080_v3 }
 0x2f0   :  { %2498 = vmatprep.subr.bf16.mxu1 %v8081_v24  ;;  %2539 = vmatprep.subr.bf16.mxu0 %v8082_v8  ;;  %v2020_v24 = vld [vmem:[#allocation2 + $0x41] ss:$8 sm:$0xf] }
 0x2f1   :  { %v2022_v8 = vor.u32 %v2021_v49, %v2020_v24 }
 0x2f3   :  { %2499 = vmatpush2.bf16.msra.mxu1 %v8083_v50  ;;  %2540 = vmatpush2.bf16.msra.mxu0 %v8084_v4  ;;  %v2018_v50 = vor.u32 %v2017_v17, %v2016_v28  ;;  %v2068_v4 = vrot.slane %v2022_v8, %v8087_v10  ;;  %v2072_v25 = vrot.slane %v2022_v8, %v8089_v35 }
 0x2f4   :  { %2550 = vmatprep.subr.bf16.mxu1 %v8085_v29  ;;  %2591 = vmatprep.subr.bf16.mxu0 %v8086_v59  ;;  %v2076_v29 = vrot.slane %v2022_v8, %v8088_v26 }
 0x2f5   :  { %v2027_v59 = vrot.slane %v2018_v50, %v8087_v10  ;;  %v2035_v15 = vrot.slane %v2018_v50, %v8088_v26  ;;  %v2039_v24 = vrot.slane %v2018_v50, %v6242_v53 }
 0x2f7   :  { %v2107_v49 = vsel %vm106_vm1, %v2035_v15, %v2076_v29  ;;  %v2092_v29 = vrot.slane %v2022_v8, %v6261_v6 }
 0x336   :  { %v2149_v23 = vpop.f32.mrf.mxu1  ;;  %v2190_v14 = vpop.f32.mrf.mxu0 }
 0x337   :  { %v2281_v28 = vadd.f32 %v2190_v14, %v2107_v49  ;;  %v2084_v14 = vrot.slane %v2022_v8, %v6201_v38 }
 0x338   :  { %v2151_v31 = vpop.f32.mrf.mxu1  ;;  %v2192_v63 = vpop.f32.mrf.mxu0 }
 0x339   :  { %v4949_v26 = vmul.f32 -1.442695, %v2281_v28  ;;  %v2055_v28 = vrot.slane %v2018_v50, %v6264_v5 }
 0x33a   :  { %v2153_v60 = vpop.f32.mrf.mxu1  ;;  %v2194_v22 = vpop.f32.mrf.mxu0 }
 0x33b   :  { %v2105_v60 = vsel %vm106_vm1, %v2027_v59, %v2068_v4 }
 0x33c   :  { %v2154_v7 = vpop.f32.mrf.mxu1  ;;  %v2195_v3 = vpop.f32.mrf.mxu0  ;;  %v2279_v22 = vadd.f32 %v2149_v23, %v2105_v60 }
 0x33d   :  { %v2031_v3 = vrot.slane %v2018_v50, %v8089_v35  ;;  %v2080_v7 = vrot.slane %v2022_v8, %v6242_v53 }
 0x33e   :  { %v4947_v33 = vmul.f32 -1.442695, %v2279_v22 }
 0x33f   :  { %v2106_v17 = vsel %vm106_vm1, %v2031_v3, %v2072_v25  ;;  %v2108_v10 = vsel %vm106_vm1, %v2039_v24, %v2080_v7  ;;  %v2043_v3 = vrot.slane %v2018_v50, %v6201_v38 }
 0x340   :  { %v2280_v58 = vadd.f32 %v2151_v31, %v2106_v17  ;;  %v2282_v34 = vadd.f32 %v2192_v63, %v2108_v10  ;;  %5130 = vpow2.f32 %v4947_v33  ;;  %v2047_v33 = vrot.slane %v2018_v50, %v6212_v62 }
 0x341   :  { %5132 = vpow2.f32 %v4949_v26  ;;  %v2096_v26 = vrot.slane %v2022_v8, %v6264_v5 }
 0x342   :  { %v4948_v41 = vmul.f32 -1.442695, %v2280_v58  ;;  %v4950_v4 = vmul.f32 -1.442695, %v2282_v34  ;;  %v2051_v58 = vrot.slane %v2018_v50, %v6261_v6  ;;  %v2088_v34 = vrot.slane %v2022_v8, %v6212_v62 }
 0x343   :  { %v2112_v8 = vsel %vm106_vm1, %v2055_v28, %v2096_v26 }
 0x344   :  { %5134 = vpow2.f32 %v4948_v41  ;;  %v2109_v41 = vsel %vm106_vm1, %v2043_v3, %v2084_v14  ;;  %v2111_v22 = vsel %vm106_vm1, %v2051_v58, %v2092_v29 }
 0x345   :  { %5136 = vpow2.f32 %v4950_v4  ;;  %v2110_v4 = vsel %vm106_vm1, %v2047_v33, %v2088_v34 }
 0x34d   :  { %v5131_v59 = vpop.eup %5130 }
 0x34e   :  { %v5133_v23 = vpop.eup %5132  ;;  %v2293_v25 = vadd.f32 1.0, %v5131_v59 }
 0x34f   :  { %v2305_v60 = vadd.f32 1.0, %v5133_v23 }
 0x350   :  { %5138 = vrcp.f32 %v2293_v25 }
 0x351   :  { %v5135_v15 = vpop.eup %5134  ;;  %5140 = vrcp.f32 %v2305_v60 }
 0x352   :  { %v5137_v31 = vpop.eup %5136  ;;  %v2294_v63 = vadd.f32 1.0, %v5135_v15 }
 0x353   :  { %v2306_v10 = vadd.f32 1.0, %v5137_v31 }
 0x354   :  { %5142 = vrcp.f32 %v2294_v63 }
 0x35d   :  { %v5139_v63 = vpop.eup %5138 }
 0x35e   :  { %v5141_v58 = vpop.eup %5140 }
 0x35f   :  { %v2325_v26 = vmul.f32 %v5141_v58, %v6303_v51 }
 0x361   :  { %v5143_v34 = vpop.eup %5142 }
 0x376   :  { %v2231_v7 = vpop.f32.mrf.mxu1  ;;  %v2272_v49 = vpop.f32.mrf.mxu0 }
 0x377   :  { %v2283_v17 = vadd.f32 %v2231_v7, %v2109_v41  ;;  %v2285_v24 = vadd.f32 %v2272_v49, %v2111_v22 }
 0x378   :  { %v2233_v59 = vpop.f32.mrf.mxu1  ;;  %v2274_v23 = vpop.f32.mrf.mxu0 }
 0x379   :  { %5144 = vtanh.f32 %v2283_v17  ;;  %v4951_v15 = vmul.f32 -1.442695, %v2285_v24  ;;  %v2284_v14 = vadd.f32 %v2233_v59, %v2110_v4  ;;  %v2286_v25 = vadd.f32 %v2274_v23, %v2112_v8 }
 0x37a   :  { %5146 = vrcp.f32 %v2306_v10  ;;  %v2235_v31 = vpop.f32.mrf.mxu1  ;;  %v2276_v29 = vpop.f32.mrf.mxu0 }
 0x37b   :  { %5148 = vpow2.f32 %v4951_v15  ;;  %v4952_v3 = vmul.f32 -1.442695, %v2286_v25 }
 0x37c   :  { %5150 = vtanh.f32 %v2284_v14  ;;  %v2236_v50 = vpop.f32.mrf.mxu1  ;;  %v2277_v60 = vpop.f32.mrf.mxu0 }
 0x37d   :  { %5152 = vpow2.f32 %v4952_v3 }
 0x386   :  { %v5145_v41 = vpop.eup %5144 }
 0x387   :  { %v5147_v33 = vpop.eup %5146  ;;  %v2327_v7 = vmul.f32 %v5145_v41, %v5139_v63  ;;  %v8091_v41 = vld [vmem:[#allocation114_spill] sm:$0xff] }
 0x388   :  { %v5149_v22 = vpop.eup %5148  ;;  %v2326_v24 = vmul.f32 %v5147_v33, %v6305_v1  ;;  %v8092_v33 = vld [vmem:[#allocation116_spill] sm:$0xff] }
 0x389   :  { %v5151_v49 = vpop.eup %5150  ;;  %v6483_v28 = vadd.f32 %v2327_v7, %v2325_v26  ;;  %v2319_v10 = vadd.f32 1.0, %v5149_v22  ;;  %v8093_v26 = vld [vmem:[#allocation118_spill] sm:$0xff]  ;;  %v8094_v7 = vld [vmem:[#allocation120_spill] sm:$0xff]  ;;  %v8095_v22 = vld [vmem:[#allocation121_spill] sm:$0xff] }
 0x38a   :  { %v5153_v17 = vpop.eup %5152  ;;  %v2328_v4 = vmul.f32 %v5151_v49, %v5143_v34  ;;  %v8090_v34 = vld [vmem:[#allocation112_spill] sm:$0xff]  ;;  %v8096_v49 = vld [vmem:[#allocation122_spill] sm:$0xff] }
 0x38b   :  { %5154 = vtanh.f32 %v6483_v28  ;;  %v2320_v59 = vadd.f32 1.0, %v5153_v17  ;;  %v8098_v17 = vld [vmem:[#allocation124_spill] sm:$0xff] }
 0x38c   :  { %5156 = vrcp.f32 %v2319_v10  ;;  %v6487_v8 = vadd.f32 %v2328_v4, %v2326_v24  ;;  %v8097_v10 = vld [vmem:[#allocation123_spill] sm:$0xff]  ;;  %v8100_v4 = vld [vmem:[#allocation125_spill] sm:$0xff] }
 0x38d   :  { %5158 = vrcp.f32 %v2320_v59  ;;  %v8099_v24 = vld [vmem:[#allocation99_spill] sm:$0xff]  ;;  %v8101_v59 = vld [vmem:[#allocation101_spill] sm:$0xff] }
 0x38e   :  { %5160 = vtanh.f32 %v6487_v8 }
 0x398   :  { %v5155_v51 = vpop.eup %5154 }
 0x399   :  { %v5157_v23 = vpop.eup %5156 }
 0x39a   :  { %v5159_v15 = vpop.eup %5158  ;;  %v2333_v25 = vmul.f32 %v5157_v23, %v5155_v51  ;;  %v8102_v51 = vld [vmem:[#allocation126_spill] sm:$0xff]  ;;  %v8103_v23 = vld [vmem:[#allocation103_spill] sm:$0xff] }
 0x39b   :  { %v5161_v14 = vpop.eup %5160 }
 0x39c   :  { %v2334_v31 = vmul.f32 %v5161_v14, %v5159_v15  ;;  %v6490_v50 = vpack.c.bf16 %v2333_v25, %v2333_v25  ;;  %v8104_v15 = vld [vmem:[#allocation127_spill] sm:$0xff]  ;;  %v8105_v14 = vld [vmem:[#allocation105_spill] sm:$0xff] }
 0x39e   :  { %v2467_v29 = vpack.c.bf16 %v2334_v31, %v2334_v31  ;;  %v2337_v3 = vcombine.low %v2333_v25, %v2334_v31  ;;  %v8106_v25 = vld [vmem:[#allocation128_spill] sm:$0xff]  ;;  %v8107_v31 = vld [vmem:[#allocation107_spill] sm:$0xff] }
 0x3a0   :  { %2500 = vmatprep.mubr.bf16.mxu1 %v2467_v29  ;;  %2541 = vmatprep.mubr.bf16.mxu0 %v2467_v29  ;;  %v2344_v1 = vrot.slane %v2337_v3, %v6310_v45  ;;  %v8109_v3 = vld [vmem:[#allocation109_spill] sm:$0xff] }
 0x3a1   :  { %2501 = vmatmul.mubr.bf16.vlgmr.msra.gmra.mxu1 %v6490_v50  ;;  %2542 = vmatmul.mubr.bf16.vlgmr.msra.gmra.mxu0 %v6490_v50 }
 0x3a2   :  { %v2351_v60 = vrot.slane %v2344_v1, %v6310_v45  ;;  %v2356_v63 = vcombine.high %v2344_v1, %v2344_v1  ;;  %2551 = vmatpush1.bf16.msra.mxu1 %v7990_v19  ;;  %2592 = vmatpush1.bf16.msra.mxu0 %v5984_v47  ;;  %v8110_v1 = vld [vmem:[#allocation130_spill] sm:$0xff] }
 0x3a3   :  { %2582 = vmatprep.mubr.bf16.mxu1 %v2467_v29  ;;  %2623 = vmatprep.mubr.bf16.mxu0 %v2467_v29  ;;  %v8108_v29 = vld [vmem:[#allocation129_spill] sm:$0xff] }
 0x3a4   :  { %2354 = vst.msk [vmem:[#allocation6 + $0x1] ss:$8 sm:$0x3] %vm6316_vm10, %v2351_v60  ;;  %v2363_v58 = vrot.slane %v2356_v63, %v6310_v45  ;;  %2552 = vmatprep.subr.bf16.mxu1 %v7991_v57  ;;  %2593 = vmatprep.subr.bf16.mxu0 %v7992_v11  ;;  %v8111_v60 = vld [vmem:[#allocation110_spill] sm:$0xff]  ;;  %v8112_v63 = vld [vmem:[#allocation131_spill] sm:$0xff] }
 0x3a6   :  { %2366 = vst.msk [vmem:[#allocation6 + $0x11] ss:$8 sm:$0x3] %vm6316_vm10, %v2363_v58  ;;  %2553 = vmatpush1.bf16.msra.mxu1 %v7993_v56  ;;  %2594 = vmatpush1.bf16.msra.mxu0 %v7994_v61  ;;  %v8113_v58 = vld [vmem:[#allocation111_spill] sm:$0xff] }
 0x3a7   :  { %2554 = vmatprep.subr.bf16.mxu1 %v7995_v55  ;;  %2595 = vmatprep.subr.bf16.mxu0 %v7996_v32 }
 0x3aa   :  { %2555 = vmatpush1.bf16.msra.mxu1 %v7997_v2  ;;  %2596 = vmatpush1.bf16.msra.mxu0 %v7998_v18 }
 0x3ab   :  { %2556 = vmatprep.subr.bf16.mxu1 %v7999_v9  ;;  %2597 = vmatprep.subr.bf16.mxu0 %v8000_v12 }
 0x3ae   :  { %2557 = vmatpush1.bf16.msra.mxu1 %v8001_v40  ;;  %2598 = vmatpush1.bf16.msra.mxu0 %v8002_v0 }
 0x3af   :  { %2558 = vmatprep.subr.bf16.mxu1 %v8003_v46  ;;  %2599 = vmatprep.subr.bf16.mxu0 %v8004_v36 }
 0x3b2   :  { %2559 = vmatpush1.bf16.msra.mxu1 %v8005_v44  ;;  %2600 = vmatpush1.bf16.msra.mxu0 %v6034_v42 }
 0x3b3   :  { %2560 = vmatprep.subr.bf16.mxu1 %v8006_v39  ;;  %2601 = vmatprep.subr.bf16.mxu0 %v6040_v48 }
 0x3b6   :  { %2561 = vmatpush1.bf16.msra.mxu1 %v8007_v16  ;;  %2602 = vmatpush1.bf16.msra.mxu0 %v8090_v34 }
 0x3b7   :  { %2562 = vmatprep.subr.bf16.mxu1 %v8008_v20  ;;  %2603 = vmatprep.subr.bf16.mxu0 %v8091_v41 }
 0x3ba   :  { %2563 = vmatpush1.bf16.msra.mxu1 %v8009_v37  ;;  %2604 = vmatpush1.bf16.msra.mxu0 %v8092_v33 }
 0x3bb   :  { %2564 = vmatprep.subr.bf16.mxu1 %v8010_v30  ;;  %2605 = vmatprep.subr.bf16.mxu0 %v8093_v26 }
 0x3be   :  { %2565 = vmatpush1.bf16.msra.mxu1 %v8011_v43  ;;  %2606 = vmatpush1.bf16.msra.mxu0 %v8094_v7 }
 0x3bf   :  { %2566 = vmatprep.subr.bf16.mxu1 %v8012_v21  ;;  %2607 = vmatprep.subr.bf16.mxu0 %v8095_v22 }
 0x3c2   :  { %2567 = vmatpush2.bf16.msra.mxu1 %v8013_v13  ;;  %2608 = vmatpush2.bf16.msra.mxu0 %v8096_v49 }
 0x3c3   :  { %2568 = vmatprep.subr.bf16.mxu1 %v8014_v54  ;;  %2609 = vmatprep.subr.bf16.mxu0 %v8097_v10  ;;  %v8190_v10 = vld [vmem:[#allocation139_spill] sm:$0xff] }
 0x3c6   :  { %2569 = vmatpush2.bf16.msra.mxu1 %v8015_v27  ;;  %2610 = vmatpush2.bf16.msra.mxu0 %v8098_v17  ;;  %v2369_v17 = vld [vmem:[#allocation2 + $0x2] ss:$8 sm:$0xf] }
 0x3c7   :  { %2570 = vmatprep.subr.bf16.mxu1 %v8099_v24  ;;  %2611 = vmatprep.subr.bf16.mxu0 %v8100_v4  ;;  %v2374_v4 = vld [vmem:[#allocation2 + $0x42] ss:$8 sm:$0xf0] }
 0x3c8   :  { %v2370_v24 = vld [vmem:[#allocation2 + $0x2] ss:$8 sm:$0xf0] }
 0x3c9   :  { %v8189_v27 = vld [vmem:[#allocation137_spill] sm:$0xff] }
 0x3ca   :  { %2571 = vmatpush2.bf16.msra.mxu1 %v8101_v59  ;;  %2612 = vmatpush2.bf16.msra.mxu0 %v8102_v51 }
 0x3cb   :  { %2572 = vmatprep.subr.bf16.mxu1 %v8103_v23  ;;  %2613 = vmatprep.subr.bf16.mxu0 %v8104_v15  ;;  %v8114_v23 = vld [vmem:[#allocation132_spill] sm:$0xff]  ;;  %v8115_v15 = vld [vmem:[#allocation113_spill] sm:$0xff] }
 0x3ce   :  { %2573 = vmatpush2.bf16.msra.mxu1 %v8105_v14  ;;  %2614 = vmatpush2.bf16.msra.mxu0 %v8106_v25  ;;  %v8116_v14 = vld [vmem:[#allocation133_spill] sm:$0xff]  ;;  %v8117_v25 = vld [vmem:[#allocation115_spill] sm:$0xff] }
 0x3cf   :  { %2574 = vmatprep.subr.bf16.mxu1 %v8107_v31  ;;  %2615 = vmatprep.subr.bf16.mxu0 %v8108_v29  ;;  %v8118_v31 = vld [vmem:[#allocation134_spill] sm:$0xff]  ;;  %v8119_v29 = vld [vmem:[#allocation117_spill] sm:$0xff] }
 0x3d2   :  { %2575 = vmatpush2.bf16.msra.mxu1 %v8109_v3  ;;  %2616 = vmatpush2.bf16.msra.mxu0 %v8110_v1  ;;  %v8120_v3 = vld [vmem:[#allocation135_spill] sm:$0xff] }
 0x3d3   :  { %2576 = vmatprep.subr.bf16.mxu1 %v8111_v60  ;;  %2617 = vmatprep.subr.bf16.mxu0 %v8112_v63  ;;  %v8121_v1 = vld [vmem:[#allocation119_spill] sm:$0xff]  ;;  %v8122_v60 = vld [vmem:[#allocation136_spill] sm:$0xff] }
 0x3d4   :  { %v8123_v63 = vld [vmem:[#allocation12_spill] sm:$0xff] }
 0x3d6   :  { %2577 = vmatpush2.bf16.msra.mxu1 %v8113_v58  ;;  %2618 = vmatpush2.bf16.msra.mxu0 %v8114_v23  ;;  %v8124_v58 = vld [vmem:[#allocation29_spill] sm:$0xff] }
 0x3d7   :  { %2578 = vmatprep.subr.bf16.mxu1 %v8115_v15  ;;  %2619 = vmatprep.subr.bf16.mxu0 %v8116_v14  ;;  %v8125_v14 = vld [vmem:[#allocation13_spill] sm:$0xff]  ;;  %v8134_v15 = vld [vmem:[#allocation39_spill] sm:$0xff] }
 0x3da   :  { %2579 = vmatpush2.bf16.msra.mxu1 %v8117_v25  ;;  %2620 = vmatpush2.bf16.msra.mxu0 %v8118_v31  ;;  %v8126_v25 = vld [vmem:[#allocation31_spill] sm:$0xff]  ;;  %v8127_v31 = vld [vmem:[#allocation14_spill] sm:$0xff] }
 0x3db   :  { %2580 = vmatprep.subr.bf16.mxu1 %v8119_v29  ;;  %2621 = vmatprep.subr.bf16.mxu0 %v8120_v3  ;;  %v8128_v29 = vld [vmem:[#allocation33_spill] sm:$0xff]  ;;  %v8129_v3 = vld [vmem:[#allocation15_spill] sm:$0xff] }
 0x3de   :  { %2581 = vmatpush2.bf16.msra.mxu1 %v8121_v1  ;;  %2622 = vmatpush2.bf16.msra.mxu0 %v8122_v60  ;;  %v8130_v1 = vld [vmem:[#allocation35_spill] sm:$0xff]  ;;  %v8131_v60 = vld [vmem:[#allocation16_spill] sm:$0xff] }
 0x3df   :  { %2821 = vmatprep.subr.bf16.mxu1 %v8123_v63  ;;  %2862 = vmatprep.subr.bf16.mxu0 %v8124_v58  ;;  %v8132_v63 = vld [vmem:[#allocation37_spill] sm:$0xff] }
 0x3e0   :  { %v8133_v58 = vld [vmem:[#allocation17_spill] sm:$0xff] }
 0x3e1   :  { %2583 = vmatmul.mubr.bf16.vlgmr.msra.gmra.mxu1 %v6490_v50  ;;  %2624 = vmatmul.mubr.bf16.vlgmr.msra.gmra.mxu0 %v6490_v50  ;;  %v8135_v50 = vld [vmem:[#allocation18_spill] sm:$0xff] }
 0x3e2   :  { %2822 = vmatpush1.bf16.msra.mxu1 %v8125_v14  ;;  %2863 = vmatpush1.bf16.msra.mxu0 %v8126_v25  ;;  %v8136_v14 = vld [vmem:[#allocation41_spill] sm:$0xff]  ;;  %v8137_v25 = vld [vmem:[#allocation19_spill] sm:$0xff] }
 0x3e3   :  { %2823 = vmatprep.subr.bf16.mxu1 %v8127_v31  ;;  %2864 = vmatprep.subr.bf16.mxu0 %v8128_v29  ;;  %v8138_v31 = vld [vmem:[#allocation43_spill] sm:$0xff]  ;;  %v8139_v29 = vld [vmem:[#allocation20_spill] sm:$0xff] }
 0x3e6   :  { %2824 = vmatpush1.bf16.msra.mxu1 %v8129_v3  ;;  %2865 = vmatpush1.bf16.msra.mxu0 %v8130_v1  ;;  %v8140_v3 = vld [vmem:[#allocation45_spill] sm:$0xff] }
 0x3e7   :  { %2825 = vmatprep.subr.bf16.mxu1 %v8131_v60  ;;  %2866 = vmatprep.subr.bf16.mxu0 %v8132_v63  ;;  %v8141_v1 = vld [vmem:[#allocation21_spill] sm:$0xff]  ;;  %v8142_v60 = vld [vmem:[#allocation47_spill] sm:$0xff]  ;;  %v8143_v63 = vld [vmem:[#allocation22_spill] sm:$0xff] }
 0x3ea   :  { %2826 = vmatpush1.bf16.msra.mxu1 %v8133_v58  ;;  %2867 = vmatpush1.bf16.msra.mxu0 %v8134_v15  ;;  %v8144_v58 = vld [vmem:[#allocation49_spill] sm:$0xff]  ;;  %v8145_v15 = vld [vmem:[#allocation23_spill] sm:$0xff] }
 0x3eb   :  { %2827 = vmatprep.subr.bf16.mxu1 %v8135_v50  ;;  %2868 = vmatprep.subr.bf16.mxu0 %v8136_v14  ;;  %v8146_v50 = vld [vmem:[#allocation51_spill] sm:$0xff]  ;;  %v8147_v14 = vld [vmem:[#allocation24_spill] sm:$0xff] }
 0x3ee   :  { %2828 = vmatpush1.bf16.msra.mxu1 %v8137_v25  ;;  %2869 = vmatpush1.bf16.msra.mxu0 %v8138_v31  ;;  %v8148_v25 = vld [vmem:[#allocation53_spill] sm:$0xff] }
 0x3ef   :  { %2829 = vmatprep.subr.bf16.mxu1 %v8139_v29  ;;  %2870 = vmatprep.subr.bf16.mxu0 %v8140_v3  ;;  %v8149_v31 = vld [vmem:[#allocation25_spill] sm:$0xff]  ;;  %v8150_v29 = vld [vmem:[#allocation55_spill] sm:$0xff]  ;;  %v8151_v3 = vld [vmem:[#allocation26_spill] sm:$0xff] }
 0x3f2   :  { %2830 = vmatpush1.bf16.msra.mxu1 %v8141_v1  ;;  %2871 = vmatpush1.bf16.msra.mxu0 %v8142_v60  ;;  %v8152_v1 = vld [vmem:[#allocation57_spill] sm:$0xff]  ;;  %v8153_v60 = vld [vmem:[#allocation27_spill] sm:$0xff] }
 0x3f3   :  { %2831 = vmatprep.subr.bf16.mxu1 %v8143_v63  ;;  %2872 = vmatprep.subr.bf16.mxu0 %v8144_v58  ;;  %v8154_v63 = vld [vmem:[#allocation59_spill] sm:$0xff]  ;;  %v8155_v58 = vld [vmem:[#allocation28_spill] sm:$0xff] }
 0x3f6   :  { %2832 = vmatpush1.bf16.msra.mxu1 %v8145_v15  ;;  %2873 = vmatpush1.bf16.msra.mxu0 %v8146_v50  ;;  %v8156_v15 = vld [vmem:[#allocation60_spill] sm:$0xff]  ;;  %v8157_v50 = vld [vmem:[#allocation30_spill] sm:$0xff] }
 0x3f7   :  { %2833 = vmatprep.subr.bf16.mxu1 %v8147_v14  ;;  %2874 = vmatprep.subr.bf16.mxu0 %v8148_v25  ;;  %v8158_v14 = vld [vmem:[#allocation62_spill] sm:$0xff]  ;;  %v8159_v25 = vld [vmem:[#allocation32_spill] sm:$0xff] }
 0x3fa   :  { %2834 = vmatpush1.bf16.msra.mxu1 %v8149_v31  ;;  %2875 = vmatpush1.bf16.msra.mxu0 %v8150_v29  ;;  %v8160_v31 = vld [vmem:[#allocation64_spill] sm:$0xff]  ;;  %v8161_v29 = vld [vmem:[#allocation34_spill] sm:$0xff] }
 0x3fb   :  { %2835 = vmatprep.subr.bf16.mxu1 %v8151_v3  ;;  %2876 = vmatprep.subr.bf16.mxu0 %v8152_v1  ;;  %v8162_v3 = vld [vmem:[#allocation66_spill] sm:$0xff]  ;;  %v8163_v1 = vld [vmem:[#allocation36_spill] sm:$0xff] }
 0x3fe   :  { %2836 = vmatpush1.bf16.msra.mxu1 %v8153_v60  ;;  %2877 = vmatpush1.bf16.msra.mxu0 %v8154_v63  ;;  %v8164_v60 = vld [vmem:[#allocation68_spill] sm:$0xff]  ;;  %v8165_v63 = vld [vmem:[#allocation38_spill] sm:$0xff] }
 0x3ff   :  { %2837 = vmatprep.subr.bf16.mxu1 %v8155_v58  ;;  %2878 = vmatprep.subr.bf16.mxu0 %v8156_v15  ;;  %v8166_v58 = vld [vmem:[#allocation70_spill] sm:$0xff]  ;;  %v8167_v15 = vld [vmem:[#allocation40_spill] sm:$0xff] }
 0x402   :  { %2838 = vmatpush2.bf16.msra.mxu1 %v8157_v50  ;;  %2879 = vmatpush2.bf16.msra.mxu0 %v8158_v14  ;;  %v8168_v50 = vld [vmem:[#allocation72_spill] sm:$0xff]  ;;  %v8169_v14 = vld [vmem:[#allocation42_spill] sm:$0xff] }
 0x403   :  { %2839 = vmatprep.subr.bf16.mxu1 %v8159_v25  ;;  %2880 = vmatprep.subr.bf16.mxu0 %v8160_v31  ;;  %v8170_v25 = vld [vmem:[#allocation74_spill] sm:$0xff]  ;;  %v8171_v31 = vld [vmem:[#allocation44_spill] sm:$0xff] }
 0x406   :  { %2840 = vmatpush2.bf16.msra.mxu1 %v8161_v29  ;;  %2881 = vmatpush2.bf16.msra.mxu0 %v8162_v3  ;;  %v8172_v29 = vld [vmem:[#allocation76_spill] sm:$0xff]  ;;  %v8173_v3 = vld [vmem:[#allocation46_spill] sm:$0xff] }
 0x407   :  { %2841 = vmatprep.subr.bf16.mxu1 %v8163_v1  ;;  %2882 = vmatprep.subr.bf16.mxu0 %v8164_v60  ;;  %v8174_v1 = vld [vmem:[#allocation78_spill] sm:$0xff]  ;;  %v8175_v60 = vld [vmem:[#allocation48_spill] sm:$0xff] }
 0x40a   :  { %2842 = vmatpush2.bf16.msra.mxu1 %v8165_v63  ;;  %2883 = vmatpush2.bf16.msra.mxu0 %v8166_v58  ;;  %v8176_v63 = vld [vmem:[#allocation80_spill] sm:$0xff]  ;;  %v8177_v58 = vld [vmem:[#allocation50_spill] sm:$0xff] }
 0x40b   :  { %2843 = vmatprep.subr.bf16.mxu1 %v8167_v15  ;;  %2884 = vmatprep.subr.bf16.mxu0 %v8168_v50  ;;  %v8178_v15 = vld [vmem:[#allocation82_spill] sm:$0xff]  ;;  %v8179_v50 = vld [vmem:[#allocation52_spill] sm:$0xff] }
 0x40e   :  { %2844 = vmatpush2.bf16.msra.mxu1 %v8169_v14  ;;  %2885 = vmatpush2.bf16.msra.mxu0 %v8170_v25  ;;  %v8180_v14 = vld [vmem:[#allocation84_spill] sm:$0xff]  ;;  %v8181_v25 = vld [vmem:[#allocation54_spill] sm:$0xff] }
 0x40f   :  { %2845 = vmatprep.subr.bf16.mxu1 %v8171_v31  ;;  %2886 = vmatprep.subr.bf16.mxu0 %v8172_v29  ;;  %v8182_v31 = vld [vmem:[#allocation86_spill] sm:$0xff]  ;;  %v8183_v29 = vld [vmem:[#allocation56_spill] sm:$0xff] }
 0x412   :  { %2846 = vmatpush2.bf16.msra.mxu1 %v8173_v3  ;;  %2887 = vmatpush2.bf16.msra.mxu0 %v8174_v1  ;;  %v8184_v3 = vld [vmem:[#allocation88_spill] sm:$0xff]  ;;  %v8185_v1 = vld [vmem:[#allocation58_spill] sm:$0xff] }
 0x413   :  { %2847 = vmatprep.subr.bf16.mxu1 %v8175_v60  ;;  %2888 = vmatprep.subr.bf16.mxu0 %v8176_v63  ;;  %v8186_v60 = vld [vmem:[#allocation90_spill] sm:$0xff]  ;;  %v8187_v63 = vld [vmem:[#allocation61_spill] sm:$0xff] }
 0x416   :  { %2848 = vmatpush2.bf16.msra.mxu1 %v8177_v58  ;;  %2889 = vmatpush2.bf16.msra.mxu0 %v8178_v15  ;;  %v8188_v58 = vld [vmem:[#allocation93_spill] sm:$0xff] }
 0x417   :  { %2849 = vmatprep.subr.bf16.mxu1 %v8179_v50  ;;  %2890 = vmatprep.subr.bf16.mxu0 %v8180_v14 }
 0x41a   :  { %2850 = vmatpush2.bf16.msra.mxu1 %v8181_v25  ;;  %2891 = vmatpush2.bf16.msra.mxu0 %v8182_v31 }
 0x41b   :  { %2851 = vmatprep.subr.bf16.mxu1 %v8183_v29  ;;  %2892 = vmatprep.subr.bf16.mxu0 %v8184_v3  ;;  %v2373_v29 = vld [vmem:[#allocation2 + $0x42] ss:$8 sm:$0xf] }
 0x41c   :  { %v2375_v3 = vor.u32 %v2374_v4, %v2373_v29 }
 0x41e   :  { %2852 = vmatpush2.bf16.msra.mxu1 %v8185_v1  ;;  %2893 = vmatpush2.bf16.msra.mxu0 %v8186_v60  ;;  %v2371_v1 = vor.u32 %v2370_v24, %v2369_v17  ;;  %v2421_v60 = vrot.slane %v2375_v3, %v8189_v27  ;;  %v2425_v54 = vrot.slane %v2375_v3, %v8089_v35 }
 0x41f   :  { %2903 = vmatprep.subr.bf16.mxu1 %v8187_v63  ;;  %2944 = vmatprep.subr.bf16.mxu0 %v8188_v58  ;;  %v2429_v63 = vrot.slane %v2375_v3, %v8190_v10 }
 0x420   :  { %v2380_v58 = vrot.slane %v2371_v1, %v8189_v27  ;;  %v2388_v49 = vrot.slane %v2371_v1, %v8190_v10  ;;  %v2392_v29 = vrot.slane %v2371_v1, %v6242_v53 }
 0x422   :  { %v2460_v4 = vsel %vm106_vm1, %v2388_v49, %v2429_v63  ;;  %v2437_v63 = vrot.slane %v2375_v3, %v6201_v38 }
 0x461   :  { %v2502_v15 = vpop.f32.mrf.mxu1  ;;  %v2543_v50 = vpop.f32.mrf.mxu0 }
 0x462   :  { %v2634_v17 = vadd.f32 %v2543_v50, %v2460_v4  ;;  %v2445_v50 = vrot.slane %v2375_v3, %v6261_v6 }
 0x463   :  { %v2504_v23 = vpop.f32.mrf.mxu1  ;;  %v2545_v14 = vpop.f32.mrf.mxu0 }
 0x464   :  { %v4955_v10 = vmul.f32 -1.442695, %v2634_v17  ;;  %v2408_v17 = vrot.slane %v2371_v1, %v6264_v5 }
 0x465   :  { %v2506_v51 = vpop.f32.mrf.mxu1  ;;  %v2547_v25 = vpop.f32.mrf.mxu0 }
 0x466   :  { %v2458_v51 = vsel %vm106_vm1, %v2380_v58, %v2421_v60  ;;  %v2433_v25 = vrot.slane %v2375_v3, %v6242_v53 }
 0x467   :  { %v2507_v59 = vpop.f32.mrf.mxu1  ;;  %v2548_v31 = vpop.f32.mrf.mxu0 }
 0x468   :  { %v2384_v59 = vrot.slane %v2371_v1, %v8089_v35  ;;  %v2632_v31 = vadd.f32 %v2502_v15, %v2458_v51  ;;  %v2461_v27 = vsel %vm106_vm1, %v2392_v29, %v2433_v25 }
 0x469   :  { %v2635_v21 = vadd.f32 %v2545_v14, %v2461_v27 }
 0x46a   :  { %v2459_v24 = vsel %vm106_vm1, %v2384_v59, %v2425_v54  ;;  %v4953_v22 = vmul.f32 -1.442695, %v2632_v31  ;;  %v2396_v59 = vrot.slane %v2371_v1, %v6201_v38 }
 0x46b   :  { %v2633_v13 = vadd.f32 %v2504_v23, %v2459_v24  ;;  %v4956_v60 = vmul.f32 -1.442695, %v2635_v21  ;;  %v2441_v21 = vrot.slane %v2375_v3, %v6212_v62 }
 0x46c   :  { %5162 = vpow2.f32 %v4953_v22  ;;  %v2462_v22 = vsel %vm106_vm1, %v2396_v59, %v2437_v63 }
 0x46d   :  { %v4954_v7 = vmul.f32 -1.442695, %v2633_v13  ;;  %5164 = vpow2.f32 %v4955_v10  ;;  %v2404_v13 = vrot.slane %v2371_v1, %v6261_v6  ;;  %v2400_v10 = vrot.slane %v2371_v1, %v6212_v62 }
 0x46f   :  { %5166 = vpow2.f32 %v4954_v7  ;;  %v2449_v7 = vrot.slane %v2375_v3, %v6264_v5  ;;  %v2464_v31 = vsel %vm106_vm1, %v2404_v13, %v2445_v50 }
 0x470   :  { %5168 = vpow2.f32 %v4956_v60  ;;  %v2463_v60 = vsel %vm106_vm1, %v2400_v10, %v2441_v21 }
 0x471   :  { %v2465_v3 = vsel %vm106_vm1, %v2408_v17, %v2449_v7 }
 0x479   :  { %v5163_v15 = vpop.eup %5162 }
 0x47a   :  { %v5165_v58 = vpop.eup %5164  ;;  %v2646_v54 = vadd.f32 1.0, %v5163_v15 }
 0x47b   :  { %v2658_v51 = vadd.f32 1.0, %v5165_v58 }
 0x47c   :  { %v5167_v49 = vpop.eup %5166  ;;  %5170 = vrcp.f32 %v2646_v54 }
 0x47d   :  { %v5169_v23 = vpop.eup %5168  ;;  %v2647_v27 = vadd.f32 1.0, %v5167_v49  ;;  %5172 = vrcp.f32 %v2658_v51 }
 0x47e   :  { %v2659_v14 = vadd.f32 1.0, %v5169_v23 }
 0x47f   :  { %5174 = vrcp.f32 %v2647_v27 }
 0x489   :  { %v5171_v27 = vpop.eup %5170 }
 0x48a   :  { %v5173_v13 = vpop.eup %5172 }
 0x48b   :  { %v2678_v7 = vmul.f32 %v5173_v13, %v6483_v28 }
 0x48c   :  { %v5175_v21 = vpop.eup %5174 }
 0x4a1   :  { %v2584_v25 = vpop.f32.mrf.mxu1  ;;  %v2625_v4 = vpop.f32.mrf.mxu0 }
 0x4a2   :  { %v2636_v24 = vadd.f32 %v2584_v25, %v2462_v22  ;;  %v2638_v29 = vadd.f32 %v2625_v4, %v2464_v31 }
 0x4a3   :  { %v2586_v15 = vpop.f32.mrf.mxu1  ;;  %v2627_v58 = vpop.f32.mrf.mxu0 }
 0x4a4   :  { %5176 = vtanh.f32 %v2636_v24  ;;  %v4957_v49 = vmul.f32 -1.442695, %v2638_v29  ;;  %v2637_v63 = vadd.f32 %v2586_v15, %v2463_v60  ;;  %v2639_v54 = vadd.f32 %v2627_v58, %v2465_v3 }
 0x4a5   :  { %5178 = vrcp.f32 %v2659_v14  ;;  %v2588_v23 = vpop.f32.mrf.mxu1  ;;  %v2629_v50 = vpop.f32.mrf.mxu0 }
 0x4a6   :  { %5180 = vpow2.f32 %v4957_v49  ;;  %v4958_v59 = vmul.f32 -1.442695, %v2639_v54 }
 0x4a7   :  { %5182 = vtanh.f32 %v2637_v63  ;;  %v2589_v1 = vpop.f32.mrf.mxu1  ;;  %v2630_v51 = vpop.f32.mrf.mxu0 }
 0x4a8   :  { %5184 = vpow2.f32 %v4958_v59 }
 0x4b1   :  { %v5177_v22 = vpop.eup %5176 }
 0x4b2   :  { %v5179_v10 = vpop.eup %5178  ;;  %v2680_v25 = vmul.f32 %v5177_v22, %v5171_v27  ;;  %v8192_v22 = vld [vmem:[#allocation92_spill] sm:$0xff] }
 0x4b3   :  { %v5181_v31 = vpop.eup %5180  ;;  %v2679_v29 = vmul.f32 %v5179_v10, %v6487_v8  ;;  %v8193_v10 = vld [vmem:[#allocation121_spill] sm:$0xff] }
 0x4b4   :  { %v5183_v4 = vpop.eup %5182  ;;  %v6656_v17 = vadd.f32 %v2680_v25, %v2678_v7  ;;  %v2672_v14 = vadd.f32 1.0, %v5181_v31  ;;  %v8194_v7 = vld [vmem:[#allocation94_spill] sm:$0xff]  ;;  %v8196_v31 = vld [vmem:[#allocation95_spill] sm:$0xff] }
 0x4b5   :  { %v5185_v24 = vpop.eup %5184  ;;  %v2681_v60 = vmul.f32 %v5183_v4, %v5175_v21  ;;  %v8191_v21 = vld [vmem:[#allocation120_spill] sm:$0xff]  ;;  %v8195_v25 = vld [vmem:[#allocation122_spill] sm:$0xff]  ;;  %v8197_v4 = vld [vmem:[#allocation123_spill] sm:$0xff] }
 0x4b6   :  { %5186 = vtanh.f32 %v6656_v17  ;;  %v2673_v15 = vadd.f32 1.0, %v5185_v24  ;;  %v8199_v24 = vld [vmem:[#allocation124_spill] sm:$0xff] }
 0x4b7   :  { %5188 = vrcp.f32 %v2672_v14  ;;  %v6660_v3 = vadd.f32 %v2681_v60, %v2679_v29  ;;  %v8198_v14 = vld [vmem:[#allocation97_spill] sm:$0xff]  ;;  %v8200_v29 = vld [vmem:[#allocation99_spill] sm:$0xff] }
 0x4b8   :  { %5190 = vrcp.f32 %v2673_v15  ;;  %v8201_v60 = vld [vmem:[#allocation125_spill] sm:$0xff] }
 0x4b9   :  { %5192 = vtanh.f32 %v6660_v3  ;;  %v8202_v15 = vld [vmem:[#allocation101_spill] sm:$0xff] }
 0x4c3   :  { %v5187_v28 = vpop.eup %5186 }
 0x4c4   :  { %v5189_v58 = vpop.eup %5188 }
 0x4c5   :  { %v5191_v49 = vpop.eup %5190  ;;  %v2686_v54 = vmul.f32 %v5189_v58, %v5187_v28  ;;  %v8203_v28 = vld [vmem:[#allocation126_spill] sm:$0xff]  ;;  %v8204_v58 = vld [vmem:[#allocation103_spill] sm:$0xff] }
 0x4c6   :  { %v5193_v63 = vpop.eup %5192 }
 0x4c7   :  { %v2687_v23 = vmul.f32 %v5193_v63, %v5191_v49  ;;  %v6663_v1 = vpack.c.bf16 %v2686_v54, %v2686_v54  ;;  %v8205_v49 = vld [vmem:[#allocation127_spill] sm:$0xff]  ;;  %v8206_v63 = vld [vmem:[#allocation105_spill] sm:$0xff] }
 0x4c9   :  { %v2820_v50 = vpack.c.bf16 %v2687_v23, %v2687_v23  ;;  %v2690_v59 = vcombine.low %v2686_v54, %v2687_v23  ;;  %v8207_v54 = vld [vmem:[#allocation128_spill] sm:$0xff]  ;;  %v8208_v23 = vld [vmem:[#allocation107_spill] sm:$0xff] }
 0x4cb   :  { %2853 = vmatprep.mubr.bf16.mxu1 %v2820_v50  ;;  %2894 = vmatprep.mubr.bf16.mxu0 %v2820_v50  ;;  %v2697_v8 = vrot.slane %v2690_v59, %v6310_v45  ;;  %v8210_v59 = vld [vmem:[#allocation109_spill] sm:$0xff] }
 0x4cc   :  { %2854 = vmatmul.mubr.bf16.vlgmr.msra.gmra.mxu1 %v6663_v1  ;;  %2895 = vmatmul.mubr.bf16.vlgmr.msra.gmra.mxu0 %v6663_v1 }
 0x4cd   :  { %v2704_v51 = vrot.slane %v2697_v8, %v6310_v45  ;;  %v2709_v27 = vcombine.high %v2697_v8, %v2697_v8  ;;  %2904 = vmatpush1.bf16.msra.mxu1 %v7990_v19  ;;  %2945 = vmatpush1.bf16.msra.mxu0 %v5984_v47  ;;  %v8211_v8 = vld [vmem:[#allocation130_spill] sm:$0xff] }
 0x4ce   :  { %2935 = vmatprep.mubr.bf16.mxu1 %v2820_v50  ;;  %2976 = vmatprep.mubr.bf16.mxu0 %v2820_v50  ;;  %v8209_v50 = vld [vmem:[#allocation129_spill] sm:$0xff] }
 0x4cf   :  { %2707 = vst.msk [vmem:[#allocation6 + $0x2] ss:$8 sm:$0x3] %vm6316_vm10, %v2704_v51  ;;  %v2716_v13 = vrot.slane %v2709_v27, %v6310_v45  ;;  %2905 = vmatprep.subr.bf16.mxu1 %v7991_v57  ;;  %2946 = vmatprep.subr.bf16.mxu0 %v7992_v11  ;;  %v8212_v51 = vld [vmem:[#allocation110_spill] sm:$0xff]  ;;  %v8213_v27 = vld [vmem:[#allocation131_spill] sm:$0xff] }
 0x4d1   :  { %2719 = vst.msk [vmem:[#allocation6 + $0x12] ss:$8 sm:$0x3] %vm6316_vm10, %v2716_v13  ;;  %2906 = vmatpush1.bf16.msra.mxu1 %v7993_v56  ;;  %2947 = vmatpush1.bf16.msra.mxu0 %v7994_v61  ;;  %v8214_v13 = vld [vmem:[#allocation111_spill] sm:$0xff] }
 0x4d2   :  { %2907 = vmatprep.subr.bf16.mxu1 %v7995_v55  ;;  %2948 = vmatprep.subr.bf16.mxu0 %v7996_v32 }
 0x4d5   :  { %2908 = vmatpush1.bf16.msra.mxu1 %v7997_v2  ;;  %2949 = vmatpush1.bf16.msra.mxu0 %v7998_v18 }
 0x4d6   :  { %2909 = vmatprep.subr.bf16.mxu1 %v7999_v9  ;;  %2950 = vmatprep.subr.bf16.mxu0 %v8000_v12 }
 0x4d9   :  { %2910 = vmatpush1.bf16.msra.mxu1 %v8001_v40  ;;  %2951 = vmatpush1.bf16.msra.mxu0 %v8002_v0 }
 0x4da   :  { %2911 = vmatprep.subr.bf16.mxu1 %v8003_v46  ;;  %2952 = vmatprep.subr.bf16.mxu0 %v8004_v36 }
 0x4dd   :  { %2912 = vmatpush1.bf16.msra.mxu1 %v8005_v44  ;;  %2953 = vmatpush1.bf16.msra.mxu0 %v6034_v42 }
 0x4de   :  { %2913 = vmatprep.subr.bf16.mxu1 %v8006_v39  ;;  %2954 = vmatprep.subr.bf16.mxu0 %v6040_v48 }
 0x4e1   :  { %2914 = vmatpush1.bf16.msra.mxu1 %v8007_v16  ;;  %2955 = vmatpush1.bf16.msra.mxu0 %v8090_v34 }
 0x4e2   :  { %2915 = vmatprep.subr.bf16.mxu1 %v8008_v20  ;;  %2956 = vmatprep.subr.bf16.mxu0 %v8091_v41 }
 0x4e5   :  { %2916 = vmatpush1.bf16.msra.mxu1 %v8009_v37  ;;  %2957 = vmatpush1.bf16.msra.mxu0 %v8092_v33 }
 0x4e6   :  { %2917 = vmatprep.subr.bf16.mxu1 %v8010_v30  ;;  %2958 = vmatprep.subr.bf16.mxu0 %v8093_v26 }
 0x4e9   :  { %2918 = vmatpush1.bf16.msra.mxu1 %v8011_v43  ;;  %2959 = vmatpush1.bf16.msra.mxu0 %v8191_v21 }
 0x4ea   :  { %2919 = vmatprep.subr.bf16.mxu1 %v8192_v22  ;;  %2960 = vmatprep.subr.bf16.mxu0 %v8193_v10 }
 0x4ed   :  { %2920 = vmatpush2.bf16.msra.mxu1 %v8194_v7  ;;  %2961 = vmatpush2.bf16.msra.mxu0 %v8195_v25 }
 0x4ee   :  { %2921 = vmatprep.subr.bf16.mxu1 %v8196_v31  ;;  %2962 = vmatprep.subr.bf16.mxu0 %v8197_v4  ;;  %v8291_v4 = vld [vmem:[#allocation139_spill] sm:$0xff] }
 0x4f1   :  { %2922 = vmatpush2.bf16.msra.mxu1 %v8198_v14  ;;  %2963 = vmatpush2.bf16.msra.mxu0 %v8199_v24  ;;  %v2722_v24 = vld [vmem:[#allocation2 + $0x3] ss:$8 sm:$0xf] }
 0x4f2   :  { %2923 = vmatprep.subr.bf16.mxu1 %v8200_v29  ;;  %2964 = vmatprep.subr.bf16.mxu0 %v8201_v60  ;;  %v2727_v60 = vld [vmem:[#allocation2 + $0x43] ss:$8 sm:$0xf0] }
 0x4f3   :  { %v2723_v29 = vld [vmem:[#allocation2 + $0x3] ss:$8 sm:$0xf0] }
 0x4f4   :  { %v8290_v14 = vld [vmem:[#allocation137_spill] sm:$0xff] }
 0x4f5   :  { %2924 = vmatpush2.bf16.msra.mxu1 %v8202_v15  ;;  %2965 = vmatpush2.bf16.msra.mxu0 %v8203_v28 }
 0x4f6   :  { %2925 = vmatprep.subr.bf16.mxu1 %v8204_v58  ;;  %2966 = vmatprep.subr.bf16.mxu0 %v8205_v49  ;;  %v8215_v58 = vld [vmem:[#allocation132_spill] sm:$0xff]  ;;  %v8216_v49 = vld [vmem:[#allocation113_spill] sm:$0xff] }
 0x4f9   :  { %2926 = vmatpush2.bf16.msra.mxu1 %v8206_v63  ;;  %2967 = vmatpush2.bf16.msra.mxu0 %v8207_v54  ;;  %v8217_v63 = vld [vmem:[#allocation133_spill] sm:$0xff]  ;;  %v8218_v54 = vld [vmem:[#allocation115_spill] sm:$0xff] }
 0x4fa   :  { %2927 = vmatprep.subr.bf16.mxu1 %v8208_v23  ;;  %2968 = vmatprep.subr.bf16.mxu0 %v8209_v50  ;;  %v8219_v23 = vld [vmem:[#allocation134_spill] sm:$0xff]  ;;  %v8220_v50 = vld [vmem:[#allocation117_spill] sm:$0xff] }
 0x4fd   :  { %2928 = vmatpush2.bf16.msra.mxu1 %v8210_v59  ;;  %2969 = vmatpush2.bf16.msra.mxu0 %v8211_v8  ;;  %v8221_v59 = vld [vmem:[#allocation135_spill] sm:$0xff] }
 0x4fe   :  { %2929 = vmatprep.subr.bf16.mxu1 %v8212_v51  ;;  %2970 = vmatprep.subr.bf16.mxu0 %v8213_v27  ;;  %v8222_v8 = vld [vmem:[#allocation119_spill] sm:$0xff]  ;;  %v8223_v51 = vld [vmem:[#allocation136_spill] sm:$0xff] }
 0x4ff   :  { %v8224_v27 = vld [vmem:[#allocation12_spill] sm:$0xff] }
 0x501   :  { %2930 = vmatpush2.bf16.msra.mxu1 %v8214_v13  ;;  %2971 = vmatpush2.bf16.msra.mxu0 %v8215_v58  ;;  %v8225_v13 = vld [vmem:[#allocation29_spill] sm:$0xff] }
 0x502   :  { %2931 = vmatprep.subr.bf16.mxu1 %v8216_v49  ;;  %2972 = vmatprep.subr.bf16.mxu0 %v8217_v63  ;;  %v8226_v63 = vld [vmem:[#allocation13_spill] sm:$0xff]  ;;  %v8235_v49 = vld [vmem:[#allocation39_spill] sm:$0xff] }
 0x505   :  { %2932 = vmatpush2.bf16.msra.mxu1 %v8218_v54  ;;  %2973 = vmatpush2.bf16.msra.mxu0 %v8219_v23  ;;  %v8227_v54 = vld [vmem:[#allocation31_spill] sm:$0xff]  ;;  %v8228_v23 = vld [vmem:[#allocation14_spill] sm:$0xff] }
 0x506   :  { %2933 = vmatprep.subr.bf16.mxu1 %v8220_v50  ;;  %2974 = vmatprep.subr.bf16.mxu0 %v8221_v59  ;;  %v8229_v50 = vld [vmem:[#allocation33_spill] sm:$0xff]  ;;  %v8230_v59 = vld [vmem:[#allocation15_spill] sm:$0xff] }
 0x509   :  { %2934 = vmatpush2.bf16.msra.mxu1 %v8222_v8  ;;  %2975 = vmatpush2.bf16.msra.mxu0 %v8223_v51  ;;  %v8231_v8 = vld [vmem:[#allocation35_spill] sm:$0xff]  ;;  %v8232_v51 = vld [vmem:[#allocation16_spill] sm:$0xff] }
 0x50a   :  { %3174 = vmatprep.subr.bf16.mxu1 %v8224_v27  ;;  %3215 = vmatprep.subr.bf16.mxu0 %v8225_v13  ;;  %v8233_v27 = vld [vmem:[#allocation37_spill] sm:$0xff] }
 0x50b   :  { %v8234_v13 = vld [vmem:[#allocation17_spill] sm:$0xff] }
 0x50c   :  { %2936 = vmatmul.mubr.bf16.vlgmr.msra.gmra.mxu1 %v6663_v1  ;;  %2977 = vmatmul.mubr.bf16.vlgmr.msra.gmra.mxu0 %v6663_v1  ;;  %v8236_v1 = vld [vmem:[#allocation18_spill] sm:$0xff] }
 0x50d   :  { %3175 = vmatpush1.bf16.msra.mxu1 %v8226_v63  ;;  %3216 = vmatpush1.bf16.msra.mxu0 %v8227_v54  ;;  %v8237_v63 = vld [vmem:[#allocation41_spill] sm:$0xff]  ;;  %v8238_v54 = vld [vmem:[#allocation19_spill] sm:$0xff] }
 0x50e   :  { %3176 = vmatprep.subr.bf16.mxu1 %v8228_v23  ;;  %3217 = vmatprep.subr.bf16.mxu0 %v8229_v50  ;;  %v8239_v23 = vld [vmem:[#allocation43_spill] sm:$0xff]  ;;  %v8240_v50 = vld [vmem:[#allocation20_spill] sm:$0xff] }
 0x511   :  { %3177 = vmatpush1.bf16.msra.mxu1 %v8230_v59  ;;  %3218 = vmatpush1.bf16.msra.mxu0 %v8231_v8  ;;  %v8241_v59 = vld [vmem:[#allocation45_spill] sm:$0xff] }
 0x512   :  { %3178 = vmatprep.subr.bf16.mxu1 %v8232_v51  ;;  %3219 = vmatprep.subr.bf16.mxu0 %v8233_v27  ;;  %v8242_v8 = vld [vmem:[#allocation21_spill] sm:$0xff]  ;;  %v8243_v51 = vld [vmem:[#allocation47_spill] sm:$0xff]  ;;  %v8244_v27 = vld [vmem:[#allocation22_spill] sm:$0xff] }
 0x515   :  { %3179 = vmatpush1.bf16.msra.mxu1 %v8234_v13  ;;  %3220 = vmatpush1.bf16.msra.mxu0 %v8235_v49  ;;  %v8245_v13 = vld [vmem:[#allocation49_spill] sm:$0xff]  ;;  %v8246_v49 = vld [vmem:[#allocation23_spill] sm:$0xff] }
 0x516   :  { %3180 = vmatprep.subr.bf16.mxu1 %v8236_v1  ;;  %3221 = vmatprep.subr.bf16.mxu0 %v8237_v63  ;;  %v8247_v1 = vld [vmem:[#allocation51_spill] sm:$0xff]  ;;  %v8248_v63 = vld [vmem:[#allocation24_spill] sm:$0xff] }
 0x519   :  { %3181 = vmatpush1.bf16.msra.mxu1 %v8238_v54  ;;  %3222 = vmatpush1.bf16.msra.mxu0 %v8239_v23  ;;  %v8249_v54 = vld [vmem:[#allocation53_spill] sm:$0xff] }
 0x51a   :  { %3182 = vmatprep.subr.bf16.mxu1 %v8240_v50  ;;  %3223 = vmatprep.subr.bf16.mxu0 %v8241_v59  ;;  %v8250_v23 = vld [vmem:[#allocation25_spill] sm:$0xff]  ;;  %v8251_v50 = vld [vmem:[#allocation55_spill] sm:$0xff]  ;;  %v8252_v59 = vld [vmem:[#allocation26_spill] sm:$0xff] }
 0x51d   :  { %3183 = vmatpush1.bf16.msra.mxu1 %v8242_v8  ;;  %3224 = vmatpush1.bf16.msra.mxu0 %v8243_v51  ;;  %v8253_v8 = vld [vmem:[#allocation57_spill] sm:$0xff]  ;;  %v8254_v51 = vld [vmem:[#allocation27_spill] sm:$0xff] }
 0x51e   :  { %3184 = vmatprep.subr.bf16.mxu1 %v8244_v27  ;;  %3225 = vmatprep.subr.bf16.mxu0 %v8245_v13  ;;  %v8255_v27 = vld [vmem:[#allocation59_spill] sm:$0xff]  ;;  %v8256_v13 = vld [vmem:[#allocation28_spill] sm:$0xff] }
 0x521   :  { %3185 = vmatpush1.bf16.msra.mxu1 %v8246_v49  ;;  %3226 = vmatpush1.bf16.msra.mxu0 %v8247_v1  ;;  %v8257_v49 = vld [vmem:[#allocation60_spill] sm:$0xff]  ;;  %v8258_v1 = vld [vmem:[#allocation30_spill] sm:$0xff] }
 0x522   :  { %3186 = vmatprep.subr.bf16.mxu1 %v8248_v63  ;;  %3227 = vmatprep.subr.bf16.mxu0 %v8249_v54  ;;  %v8259_v63 = vld [vmem:[#allocation62_spill] sm:$0xff]  ;;  %v8260_v54 = vld [vmem:[#allocation32_spill] sm:$0xff] }
 0x525   :  { %3187 = vmatpush1.bf16.msra.mxu1 %v8250_v23  ;;  %3228 = vmatpush1.bf16.msra.mxu0 %v8251_v50  ;;  %v8261_v23 = vld [vmem:[#allocation64_spill] sm:$0xff]  ;;  %v8262_v50 = vld [vmem:[#allocation34_spill] sm:$0xff] }
 0x526   :  { %3188 = vmatprep.subr.bf16.mxu1 %v8252_v59  ;;  %3229 = vmatprep.subr.bf16.mxu0 %v8253_v8  ;;  %v8263_v59 = vld [vmem:[#allocation66_spill] sm:$0xff]  ;;  %v8264_v8 = vld [vmem:[#allocation36_spill] sm:$0xff] }
 0x529   :  { %3189 = vmatpush1.bf16.msra.mxu1 %v8254_v51  ;;  %3230 = vmatpush1.bf16.msra.mxu0 %v8255_v27  ;;  %v8265_v51 = vld [vmem:[#allocation68_spill] sm:$0xff]  ;;  %v8266_v27 = vld [vmem:[#allocation38_spill] sm:$0xff] }
 0x52a   :  { %3190 = vmatprep.subr.bf16.mxu1 %v8256_v13  ;;  %3231 = vmatprep.subr.bf16.mxu0 %v8257_v49  ;;  %v8267_v13 = vld [vmem:[#allocation70_spill] sm:$0xff]  ;;  %v8268_v49 = vld [vmem:[#allocation40_spill] sm:$0xff] }
 0x52d   :  { %3191 = vmatpush2.bf16.msra.mxu1 %v8258_v1  ;;  %3232 = vmatpush2.bf16.msra.mxu0 %v8259_v63  ;;  %v8269_v1 = vld [vmem:[#allocation72_spill] sm:$0xff]  ;;  %v8270_v63 = vld [vmem:[#allocation42_spill] sm:$0xff] }
 0x52e   :  { %3192 = vmatprep.subr.bf16.mxu1 %v8260_v54  ;;  %3233 = vmatprep.subr.bf16.mxu0 %v8261_v23  ;;  %v8271_v54 = vld [vmem:[#allocation74_spill] sm:$0xff]  ;;  %v8272_v23 = vld [vmem:[#allocation44_spill] sm:$0xff] }
 0x531   :  { %3193 = vmatpush2.bf16.msra.mxu1 %v8262_v50  ;;  %3234 = vmatpush2.bf16.msra.mxu0 %v8263_v59  ;;  %v8273_v50 = vld [vmem:[#allocation76_spill] sm:$0xff]  ;;  %v8274_v59 = vld [vmem:[#allocation46_spill] sm:$0xff] }
 0x532   :  { %3194 = vmatprep.subr.bf16.mxu1 %v8264_v8  ;;  %3235 = vmatprep.subr.bf16.mxu0 %v8265_v51  ;;  %v8275_v8 = vld [vmem:[#allocation78_spill] sm:$0xff]  ;;  %v8276_v51 = vld [vmem:[#allocation48_spill] sm:$0xff] }
 0x535   :  { %3195 = vmatpush2.bf16.msra.mxu1 %v8266_v27  ;;  %3236 = vmatpush2.bf16.msra.mxu0 %v8267_v13  ;;  %v8277_v27 = vld [vmem:[#allocation80_spill] sm:$0xff]  ;;  %v8278_v13 = vld [vmem:[#allocation50_spill] sm:$0xff] }
 0x536   :  { %3196 = vmatprep.subr.bf16.mxu1 %v8268_v49  ;;  %3237 = vmatprep.subr.bf16.mxu0 %v8269_v1  ;;  %v8279_v49 = vld [vmem:[#allocation82_spill] sm:$0xff]  ;;  %v8280_v1 = vld [vmem:[#allocation52_spill] sm:$0xff] }
 0x539   :  { %3197 = vmatpush2.bf16.msra.mxu1 %v8270_v63  ;;  %3238 = vmatpush2.bf16.msra.mxu0 %v8271_v54  ;;  %v8281_v63 = vld [vmem:[#allocation84_spill] sm:$0xff]  ;;  %v8282_v54 = vld [vmem:[#allocation54_spill] sm:$0xff] }
 0x53a   :  { %3198 = vmatprep.subr.bf16.mxu1 %v8272_v23  ;;  %3239 = vmatprep.subr.bf16.mxu0 %v8273_v50  ;;  %v8283_v23 = vld [vmem:[#allocation86_spill] sm:$0xff]  ;;  %v8284_v50 = vld [vmem:[#allocation56_spill] sm:$0xff] }
 0x53d   :  { %3199 = vmatpush2.bf16.msra.mxu1 %v8274_v59  ;;  %3240 = vmatpush2.bf16.msra.mxu0 %v8275_v8  ;;  %v8285_v59 = vld [vmem:[#allocation88_spill] sm:$0xff]  ;;  %v8286_v8 = vld [vmem:[#allocation58_spill] sm:$0xff] }
 0x53e   :  { %3200 = vmatprep.subr.bf16.mxu1 %v8276_v51  ;;  %3241 = vmatprep.subr.bf16.mxu0 %v8277_v27  ;;  %v8287_v51 = vld [vmem:[#allocation90_spill] sm:$0xff]  ;;  %v8288_v27 = vld [vmem:[#allocation61_spill] sm:$0xff] }
 0x541   :  { %3201 = vmatpush2.bf16.msra.mxu1 %v8278_v13  ;;  %3242 = vmatpush2.bf16.msra.mxu0 %v8279_v49  ;;  %v8289_v13 = vld [vmem:[#allocation93_spill] sm:$0xff] }
 0x542   :  { %3202 = vmatprep.subr.bf16.mxu1 %v8280_v1  ;;  %3243 = vmatprep.subr.bf16.mxu0 %v8281_v63 }
 0x545   :  { %3203 = vmatpush2.bf16.msra.mxu1 %v8282_v54  ;;  %3244 = vmatpush2.bf16.msra.mxu0 %v8283_v23 }
 0x546   :  { %3204 = vmatprep.subr.bf16.mxu1 %v8284_v50  ;;  %3245 = vmatprep.subr.bf16.mxu0 %v8285_v59  ;;  %v2726_v50 = vld [vmem:[#allocation2 + $0x43] ss:$8 sm:$0xf] }
 0x547   :  { %v2728_v59 = vor.u32 %v2727_v60, %v2726_v50 }
 0x549   :  { %3205 = vmatpush2.bf16.msra.mxu1 %v8286_v8  ;;  %3246 = vmatpush2.bf16.msra.mxu0 %v8287_v51  ;;  %v2724_v8 = vor.u32 %v2723_v29, %v2722_v24  ;;  %v2774_v51 = vrot.slane %v2728_v59, %v8290_v14  ;;  %v2778_v31 = vrot.slane %v2728_v59, %v8089_v35 }
 0x54a   :  { %3256 = vmatprep.subr.bf16.mxu1 %v8288_v27  ;;  %3297 = vmatprep.subr.bf16.mxu0 %v8289_v13  ;;  %v2782_v27 = vrot.slane %v2728_v59, %v8291_v4 }
 0x54b   :  { %v2733_v13 = vrot.slane %v2724_v8, %v8290_v14  ;;  %v2741_v25 = vrot.slane %v2724_v8, %v8291_v4  ;;  %v2745_v50 = vrot.slane %v2724_v8, %v6242_v53 }
 0x54d   :  { %v2813_v60 = vsel %vm106_vm1, %v2741_v25, %v2782_v27  ;;  %v2790_v27 = vrot.slane %v2728_v59, %v6201_v38 }
 0x58c   :  { %v2855_v49 = vpop.f32.mrf.mxu1  ;;  %v2896_v1 = vpop.f32.mrf.mxu0 }
 0x58d   :  { %v2987_v24 = vadd.f32 %v2896_v1, %v2813_v60  ;;  %v2798_v1 = vrot.slane %v2728_v59, %v6261_v6 }
 0x58e   :  { %v2857_v58 = vpop.f32.mrf.mxu1  ;;  %v2898_v63 = vpop.f32.mrf.mxu0 }
 0x58f   :  { %v4961_v4 = vmul.f32 -1.442695, %v2987_v24  ;;  %v2761_v24 = vrot.slane %v2724_v8, %v6264_v5 }
 0x590   :  { %v2859_v28 = vpop.f32.mrf.mxu1  ;;  %v2900_v54 = vpop.f32.mrf.mxu0 }
 0x591   :  { %v2811_v28 = vsel %vm106_vm1, %v2733_v13, %v2774_v51  ;;  %v2786_v54 = vrot.slane %v2728_v59, %v6242_v53 }
 0x592   :  { %v2860_v15 = vpop.f32.mrf.mxu1  ;;  %v2901_v23 = vpop.f32.mrf.mxu0 }
 0x593   :  { %v2737_v15 = vrot.slane %v2724_v8, %v8089_v35  ;;  %v2985_v23 = vadd.f32 %v2855_v49, %v2811_v28  ;;  %v2814_v14 = vsel %vm106_vm1, %v2745_v50, %v2786_v54 }
 0x594   :  { %v2988_v22 = vadd.f32 %v2898_v63, %v2814_v14 }
 0x595   :  { %v2812_v29 = vsel %vm106_vm1, %v2737_v15, %v2778_v31  ;;  %v4959_v10 = vmul.f32 -1.442695, %v2985_v23  ;;  %v2749_v15 = vrot.slane %v2724_v8, %v6201_v38 }
 0x596   :  { %v2986_v7 = vadd.f32 %v2857_v58, %v2812_v29  ;;  %v4962_v51 = vmul.f32 -1.442695, %v2988_v22  ;;  %v2794_v22 = vrot.slane %v2728_v59, %v6212_v62 }
 0x597   :  { %5194 = vpow2.f32 %v4959_v10  ;;  %v2815_v10 = vsel %vm106_vm1, %v2749_v15, %v2790_v27 }
 0x598   :  { %v4960_v21 = vmul.f32 -1.442695, %v2986_v7  ;;  %5196 = vpow2.f32 %v4961_v4  ;;  %v2757_v7 = vrot.slane %v2724_v8, %v6261_v6  ;;  %v2753_v4 = vrot.slane %v2724_v8, %v6212_v62 }
 0x59a   :  { %5198 = vpow2.f32 %v4960_v21  ;;  %v2802_v21 = vrot.slane %v2728_v59, %v6264_v5  ;;  %v2817_v23 = vsel %vm106_vm1, %v2757_v7, %v2798_v1 }
 0x59b   :  { %5200 = vpow2.f32 %v4962_v51  ;;  %v2816_v51 = vsel %vm106_vm1, %v2753_v4, %v2794_v22 }
 0x59c   :  { %v2818_v59 = vsel %vm106_vm1, %v2761_v24, %v2802_v21 }
 0x5a4   :  { %v5195_v49 = vpop.eup %5194 }
 0x5a5   :  { %v5197_v13 = vpop.eup %5196  ;;  %v2999_v31 = vadd.f32 1.0, %v5195_v49 }
 0x5a6   :  { %v3011_v28 = vadd.f32 1.0, %v5197_v13 }
 0x5a7   :  { %v5199_v25 = vpop.eup %5198  ;;  %5202 = vrcp.f32 %v2999_v31 }
 0x5a8   :  { %v5201_v58 = vpop.eup %5200  ;;  %v3000_v14 = vadd.f32 1.0, %v5199_v25  ;;  %5204 = vrcp.f32 %v3011_v28 }
 0x5a9   :  { %v3012_v63 = vadd.f32 1.0, %v5201_v58 }
 0x5aa   :  { %5206 = vrcp.f32 %v3000_v14 }
 0x5b4   :  { %v5203_v14 = vpop.eup %5202 }
 0x5b5   :  { %v5205_v7 = vpop.eup %5204 }
 0x5b6   :  { %v3031_v21 = vmul.f32 %v5205_v7, %v6656_v17 }
 0x5b7   :  { %v5207_v22 = vpop.eup %5206 }
 0x5cc   :  { %v2937_v54 = vpop.f32.mrf.mxu1  ;;  %v2978_v60 = vpop.f32.mrf.mxu0 }
 0x5cd   :  { %v2989_v29 = vadd.f32 %v2937_v54, %v2815_v10  ;;  %v2991_v50 = vadd.f32 %v2978_v60, %v2817_v23 }
 0x5ce   :  { %v2939_v49 = vpop.f32.mrf.mxu1  ;;  %v2980_v13 = vpop.f32.mrf.mxu0 }
 0x5cf   :  { %5208 = vtanh.f32 %v2989_v29  ;;  %v4963_v25 = vmul.f32 -1.442695, %v2991_v50  ;;  %v2990_v27 = vadd.f32 %v2939_v49, %v2816_v51  ;;  %v2992_v31 = vadd.f32 %v2980_v13, %v2818_v59 }
 0x5d0   :  { %5210 = vrcp.f32 %v3012_v63  ;;  %v2941_v58 = vpop.f32.mrf.mxu1  ;;  %v2982_v1 = vpop.f32.mrf.mxu0 }
 0x5d1   :  { %5212 = vpow2.f32 %v4963_v25  ;;  %v4964_v15 = vmul.f32 -1.442695, %v2992_v31 }
 0x5d2   :  { %5214 = vtanh.f32 %v2990_v27  ;;  %v2942_v8 = vpop.f32.mrf.mxu1  ;;  %v2983_v28 = vpop.f32.mrf.mxu0 }
 0x5d3   :  { %5216 = vpow2.f32 %v4964_v15 }
 0x5dc   :  { %v5209_v10 = vpop.eup %5208 }
 0x5dd   :  { %v5211_v4 = vpop.eup %5210  ;;  %v3033_v54 = vmul.f32 %v5209_v10, %v5203_v14  ;;  %v8293_v10 = vld [vmem:[#allocation92_spill] sm:$0xff] }
 0x5de   :  { %v5213_v23 = vpop.eup %5212  ;;  %v3032_v50 = vmul.f32 %v5211_v4, %v6660_v3  ;;  %v8294_v4 = vld [vmem:[#allocation121_spill] sm:$0xff] }
 0x5df   :  { %v5215_v60 = vpop.eup %5214  ;;  %v6829_v24 = vadd.f32 %v3033_v54, %v3031_v21  ;;  %v3025_v63 = vadd.f32 1.0, %v5213_v23  ;;  %v8295_v21 = vld [vmem:[#allocation94_spill] sm:$0xff]  ;;  %v8297_v23 = vld [vmem:[#allocation95_spill] sm:$0xff] }
 0x5e0   :  { %v5217_v29 = vpop.eup %5216  ;;  %v3034_v51 = vmul.f32 %v5215_v60, %v5207_v22  ;;  %v8292_v22 = vld [vmem:[#allocation120_spill] sm:$0xff]  ;;  %v8296_v54 = vld [vmem:[#allocation122_spill] sm:$0xff]  ;;  %v8298_v60 = vld [vmem:[#allocation123_spill] sm:$0xff] }
 0x5e1   :  { %5218 = vtanh.f32 %v6829_v24  ;;  %v3026_v49 = vadd.f32 1.0, %v5217_v29  ;;  %v8300_v29 = vld [vmem:[#allocation124_spill] sm:$0xff] }
 0x5e2   :  { %5220 = vrcp.f32 %v3025_v63  ;;  %v6833_v59 = vadd.f32 %v3034_v51, %v3032_v50  ;;  %v8299_v63 = vld [vmem:[#allocation97_spill] sm:$0xff]  ;;  %v8301_v50 = vld [vmem:[#allocation99_spill] sm:$0xff] }
 0x5e3   :  { %5222 = vrcp.f32 %v3026_v49  ;;  %v8302_v51 = vld [vmem:[#allocation125_spill] sm:$0xff] }
 0x5e4   :  { %5224 = vtanh.f32 %v6833_v59  ;;  %v8303_v49 = vld [vmem:[#allocation101_spill] sm:$0xff] }
 0x5ee   :  { %v5219_v17 = vpop.eup %5218 }
 0x5ef   :  { %v5221_v13 = vpop.eup %5220 }
 0x5f0   :  { %v5223_v25 = vpop.eup %5222  ;;  %v3039_v31 = vmul.f32 %v5221_v13, %v5219_v17  ;;  %v8304_v17 = vld [vmem:[#allocation126_spill] sm:$0xff]  ;;  %v8305_v13 = vld [vmem:[#allocation103_spill] sm:$0xff] }
 0x5f1   :  { %v5225_v27 = vpop.eup %5224 }
 0x5f2   :  { %v3040_v58 = vmul.f32 %v5225_v27, %v5223_v25  ;;  %v6836_v8 = vpack.c.bf16 %v3039_v31, %v3039_v31  ;;  %v8306_v25 = vld [vmem:[#allocation127_spill] sm:$0xff]  ;;  %v8307_v27 = vld [vmem:[#allocation105_spill] sm:$0xff] }
 0x5f4   :  { %v3173_v1 = vpack.c.bf16 %v3040_v58, %v3040_v58  ;;  %v3043_v15 = vcombine.low %v3039_v31, %v3040_v58  ;;  %v8308_v31 = vld [vmem:[#allocation128_spill] sm:$0xff]  ;;  %v8309_v58 = vld [vmem:[#allocation107_spill] sm:$0xff] }
 0x5f6   :  { %3206 = vmatprep.mubr.bf16.mxu1 %v3173_v1  ;;  %3247 = vmatprep.mubr.bf16.mxu0 %v3173_v1  ;;  %v3050_v3 = vrot.slane %v3043_v15, %v6310_v45  ;;  %v8311_v15 = vld [vmem:[#allocation109_spill] sm:$0xff] }
 0x5f7   :  { %3207 = vmatmul.mubr.bf16.vlgmr.msra.gmra.mxu1 %v6836_v8  ;;  %3248 = vmatmul.mubr.bf16.vlgmr.msra.gmra.mxu0 %v6836_v8 }
 0x5f8   :  { %v3057_v28 = vrot.slane %v3050_v3, %v6310_v45  ;;  %v3062_v14 = vcombine.high %v3050_v3, %v3050_v3  ;;  %3257 = vmatpush1.bf16.msra.mxu1 %v7990_v19  ;;  %3298 = vmatpush1.bf16.msra.mxu0 %v5984_v47  ;;  %v8312_v3 = vld [vmem:[#allocation130_spill] sm:$0xff] }
 0x5f9   :  { %3288 = vmatprep.mubr.bf16.mxu1 %v3173_v1  ;;  %3329 = vmatprep.mubr.bf16.mxu0 %v3173_v1  ;;  %v8310_v1 = vld [vmem:[#allocation129_spill] sm:$0xff] }
 0x5fa   :  { %3060 = vst.msk [vmem:[#allocation6 + $0x3] ss:$8 sm:$0x3] %vm6316_vm10, %v3057_v28  ;;  %v3069_v7 = vrot.slane %v3062_v14, %v6310_v45  ;;  %3258 = vmatprep.subr.bf16.mxu1 %v7991_v57  ;;  %3299 = vmatprep.subr.bf16.mxu0 %v7992_v11  ;;  %v8313_v28 = vld [vmem:[#allocation110_spill] sm:$0xff]  ;;  %v8314_v14 = vld [vmem:[#allocation131_spill] sm:$0xff] }
 0x5fc   :  { %3072 = vst.msk [vmem:[#allocation6 + $0x13] ss:$8 sm:$0x3] %vm6316_vm10, %v3069_v7  ;;  %3259 = vmatpush1.bf16.msra.mxu1 %v7993_v56  ;;  %3300 = vmatpush1.bf16.msra.mxu0 %v7994_v61  ;;  %v8315_v7 = vld [vmem:[#allocation111_spill] sm:$0xff] }
 0x5fd   :  { %3260 = vmatprep.subr.bf16.mxu1 %v7995_v55  ;;  %3301 = vmatprep.subr.bf16.mxu0 %v7996_v32 }
 0x600   :  { %3261 = vmatpush1.bf16.msra.mxu1 %v7997_v2  ;;  %3302 = vmatpush1.bf16.msra.mxu0 %v7998_v18 }
 0x601   :  { %3262 = vmatprep.subr.bf16.mxu1 %v7999_v9  ;;  %3303 = vmatprep.subr.bf16.mxu0 %v8000_v12 }
 0x604   :  { %3263 = vmatpush1.bf16.msra.mxu1 %v8001_v40  ;;  %3304 = vmatpush1.bf16.msra.mxu0 %v8002_v0 }
 0x605   :  { %3264 = vmatprep.subr.bf16.mxu1 %v8003_v46  ;;  %3305 = vmatprep.subr.bf16.mxu0 %v8004_v36 }
 0x608   :  { %3265 = vmatpush1.bf16.msra.mxu1 %v8005_v44  ;;  %3306 = vmatpush1.bf16.msra.mxu0 %v6034_v42 }
 0x609   :  { %3266 = vmatprep.subr.bf16.mxu1 %v8006_v39  ;;  %3307 = vmatprep.subr.bf16.mxu0 %v6040_v48 }
 0x60c   :  { %3267 = vmatpush1.bf16.msra.mxu1 %v8007_v16  ;;  %3308 = vmatpush1.bf16.msra.mxu0 %v8090_v34 }
 0x60d   :  { %3268 = vmatprep.subr.bf16.mxu1 %v8008_v20  ;;  %3309 = vmatprep.subr.bf16.mxu0 %v8091_v41 }
 0x610   :  { %3269 = vmatpush1.bf16.msra.mxu1 %v8009_v37  ;;  %3310 = vmatpush1.bf16.msra.mxu0 %v8092_v33 }
 0x611   :  { %3270 = vmatprep.subr.bf16.mxu1 %v8010_v30  ;;  %3311 = vmatprep.subr.bf16.mxu0 %v8093_v26 }
 0x614   :  { %3271 = vmatpush1.bf16.msra.mxu1 %v8011_v43  ;;  %3312 = vmatpush1.bf16.msra.mxu0 %v8292_v22 }
 0x615   :  { %3272 = vmatprep.subr.bf16.mxu1 %v8293_v10  ;;  %3313 = vmatprep.subr.bf16.mxu0 %v8294_v4 }
 0x618   :  { %3273 = vmatpush2.bf16.msra.mxu1 %v8295_v21  ;;  %3314 = vmatpush2.bf16.msra.mxu0 %v8296_v54 }
 0x619   :  { %3274 = vmatprep.subr.bf16.mxu1 %v8297_v23  ;;  %3315 = vmatprep.subr.bf16.mxu0 %v8298_v60  ;;  %v8392_v60 = vld [vmem:[#allocation139_spill] sm:$0xff] }
 0x61c   :  { %3275 = vmatpush2.bf16.msra.mxu1 %v8299_v63  ;;  %3316 = vmatpush2.bf16.msra.mxu0 %v8300_v29  ;;  %v3075_v29 = vld [vmem:[#allocation2 + $0x4] ss:$8 sm:$0xf] }
 0x61d   :  { %3276 = vmatprep.subr.bf16.mxu1 %v8301_v50  ;;  %3317 = vmatprep.subr.bf16.mxu0 %v8302_v51  ;;  %v3080_v51 = vld [vmem:[#allocation2 + $0x44] ss:$8 sm:$0xf0] }
 0x61e   :  { %v3076_v50 = vld [vmem:[#allocation2 + $0x4] ss:$8 sm:$0xf0] }
 0x61f   :  { %v8391_v63 = vld [vmem:[#allocation137_spill] sm:$0xff] }
 0x620   :  { %3277 = vmatpush2.bf16.msra.mxu1 %v8303_v49  ;;  %3318 = vmatpush2.bf16.msra.mxu0 %v8304_v17 }
 0x621   :  { %3278 = vmatprep.subr.bf16.mxu1 %v8305_v13  ;;  %3319 = vmatprep.subr.bf16.mxu0 %v8306_v25  ;;  %v8316_v13 = vld [vmem:[#allocation132_spill] sm:$0xff]  ;;  %v8317_v25 = vld [vmem:[#allocation113_spill] sm:$0xff] }
 0x624   :  { %3279 = vmatpush2.bf16.msra.mxu1 %v8307_v27  ;;  %3320 = vmatpush2.bf16.msra.mxu0 %v8308_v31  ;;  %v8318_v27 = vld [vmem:[#allocation133_spill] sm:$0xff]  ;;  %v8319_v31 = vld [vmem:[#allocation115_spill] sm:$0xff] }
 0x625   :  { %3280 = vmatprep.subr.bf16.mxu1 %v8309_v58  ;;  %3321 = vmatprep.subr.bf16.mxu0 %v8310_v1  ;;  %v8320_v58 = vld [vmem:[#allocation134_spill] sm:$0xff]  ;;  %v8321_v1 = vld [vmem:[#allocation117_spill] sm:$0xff] }
 0x628   :  { %3281 = vmatpush2.bf16.msra.mxu1 %v8311_v15  ;;  %3322 = vmatpush2.bf16.msra.mxu0 %v8312_v3  ;;  %v8322_v15 = vld [vmem:[#allocation135_spill] sm:$0xff] }
 0x629   :  { %3282 = vmatprep.subr.bf16.mxu1 %v8313_v28  ;;  %3323 = vmatprep.subr.bf16.mxu0 %v8314_v14  ;;  %v8323_v3 = vld [vmem:[#allocation119_spill] sm:$0xff]  ;;  %v8324_v28 = vld [vmem:[#allocation136_spill] sm:$0xff] }
 0x62a   :  { %v8325_v14 = vld [vmem:[#allocation12_spill] sm:$0xff] }
 0x62c   :  { %3283 = vmatpush2.bf16.msra.mxu1 %v8315_v7  ;;  %3324 = vmatpush2.bf16.msra.mxu0 %v8316_v13  ;;  %v8326_v7 = vld [vmem:[#allocation29_spill] sm:$0xff] }
 0x62d   :  { %3284 = vmatprep.subr.bf16.mxu1 %v8317_v25  ;;  %3325 = vmatprep.subr.bf16.mxu0 %v8318_v27  ;;  %v8327_v27 = vld [vmem:[#allocation13_spill] sm:$0xff]  ;;  %v8336_v25 = vld [vmem:[#allocation39_spill] sm:$0xff] }
 0x630   :  { %3285 = vmatpush2.bf16.msra.mxu1 %v8319_v31  ;;  %3326 = vmatpush2.bf16.msra.mxu0 %v8320_v58  ;;  %v8328_v31 = vld [vmem:[#allocation31_spill] sm:$0xff]  ;;  %v8329_v58 = vld [vmem:[#allocation14_spill] sm:$0xff] }
 0x631   :  { %3286 = vmatprep.subr.bf16.mxu1 %v8321_v1  ;;  %3327 = vmatprep.subr.bf16.mxu0 %v8322_v15  ;;  %v8330_v1 = vld [vmem:[#allocation33_spill] sm:$0xff]  ;;  %v8331_v15 = vld [vmem:[#allocation15_spill] sm:$0xff] }
 0x634   :  { %3287 = vmatpush2.bf16.msra.mxu1 %v8323_v3  ;;  %3328 = vmatpush2.bf16.msra.mxu0 %v8324_v28  ;;  %v8332_v3 = vld [vmem:[#allocation35_spill] sm:$0xff]  ;;  %v8333_v28 = vld [vmem:[#allocation16_spill] sm:$0xff] }
 0x635   :  { %3527 = vmatprep.subr.bf16.mxu1 %v8325_v14  ;;  %3568 = vmatprep.subr.bf16.mxu0 %v8326_v7  ;;  %v8334_v14 = vld [vmem:[#allocation37_spill] sm:$0xff] }
 0x636   :  { %v8335_v7 = vld [vmem:[#allocation17_spill] sm:$0xff] }
 0x637   :  { %3289 = vmatmul.mubr.bf16.vlgmr.msra.gmra.mxu1 %v6836_v8  ;;  %3330 = vmatmul.mubr.bf16.vlgmr.msra.gmra.mxu0 %v6836_v8  ;;  %v8337_v8 = vld [vmem:[#allocation18_spill] sm:$0xff] }
 0x638   :  { %3528 = vmatpush1.bf16.msra.mxu1 %v8327_v27  ;;  %3569 = vmatpush1.bf16.msra.mxu0 %v8328_v31  ;;  %v8338_v27 = vld [vmem:[#allocation41_spill] sm:$0xff]  ;;  %v8339_v31 = vld [vmem:[#allocation19_spill] sm:$0xff] }
 0x639   :  { %3529 = vmatprep.subr.bf16.mxu1 %v8329_v58  ;;  %3570 = vmatprep.subr.bf16.mxu0 %v8330_v1  ;;  %v8340_v58 = vld [vmem:[#allocation43_spill] sm:$0xff]  ;;  %v8341_v1 = vld [vmem:[#allocation20_spill] sm:$0xff] }
 0x63c   :  { %3530 = vmatpush1.bf16.msra.mxu1 %v8331_v15  ;;  %3571 = vmatpush1.bf16.msra.mxu0 %v8332_v3  ;;  %v8342_v15 = vld [vmem:[#allocation45_spill] sm:$0xff] }
 0x63d   :  { %3531 = vmatprep.subr.bf16.mxu1 %v8333_v28  ;;  %3572 = vmatprep.subr.bf16.mxu0 %v8334_v14  ;;  %v8343_v3 = vld [vmem:[#allocation21_spill] sm:$0xff]  ;;  %v8344_v28 = vld [vmem:[#allocation47_spill] sm:$0xff]  ;;  %v8345_v14 = vld [vmem:[#allocation22_spill] sm:$0xff] }
 0x640   :  { %3532 = vmatpush1.bf16.msra.mxu1 %v8335_v7  ;;  %3573 = vmatpush1.bf16.msra.mxu0 %v8336_v25  ;;  %v8346_v7 = vld [vmem:[#allocation49_spill] sm:$0xff]  ;;  %v8347_v25 = vld [vmem:[#allocation23_spill] sm:$0xff] }
 0x641   :  { %3533 = vmatprep.subr.bf16.mxu1 %v8337_v8  ;;  %3574 = vmatprep.subr.bf16.mxu0 %v8338_v27  ;;  %v8348_v8 = vld [vmem:[#allocation51_spill] sm:$0xff]  ;;  %v8349_v27 = vld [vmem:[#allocation24_spill] sm:$0xff] }
 0x644   :  { %3534 = vmatpush1.bf16.msra.mxu1 %v8339_v31  ;;  %3575 = vmatpush1.bf16.msra.mxu0 %v8340_v58  ;;  %v8350_v31 = vld [vmem:[#allocation53_spill] sm:$0xff] }
 0x645   :  { %3535 = vmatprep.subr.bf16.mxu1 %v8341_v1  ;;  %3576 = vmatprep.subr.bf16.mxu0 %v8342_v15  ;;  %v8351_v58 = vld [vmem:[#allocation25_spill] sm:$0xff]  ;;  %v8352_v1 = vld [vmem:[#allocation55_spill] sm:$0xff]  ;;  %v8353_v15 = vld [vmem:[#allocation26_spill] sm:$0xff] }
 0x648   :  { %3536 = vmatpush1.bf16.msra.mxu1 %v8343_v3  ;;  %3577 = vmatpush1.bf16.msra.mxu0 %v8344_v28  ;;  %v8354_v3 = vld [vmem:[#allocation57_spill] sm:$0xff]  ;;  %v8355_v28 = vld [vmem:[#allocation27_spill] sm:$0xff] }
 0x649   :  { %3537 = vmatprep.subr.bf16.mxu1 %v8345_v14  ;;  %3578 = vmatprep.subr.bf16.mxu0 %v8346_v7  ;;  %v8356_v14 = vld [vmem:[#allocation59_spill] sm:$0xff]  ;;  %v8357_v7 = vld [vmem:[#allocation28_spill] sm:$0xff] }
 0x64c   :  { %3538 = vmatpush1.bf16.msra.mxu1 %v8347_v25  ;;  %3579 = vmatpush1.bf16.msra.mxu0 %v8348_v8  ;;  %v8358_v25 = vld [vmem:[#allocation60_spill] sm:$0xff]  ;;  %v8359_v8 = vld [vmem:[#allocation30_spill] sm:$0xff] }
 0x64d   :  { %3539 = vmatprep.subr.bf16.mxu1 %v8349_v27  ;;  %3580 = vmatprep.subr.bf16.mxu0 %v8350_v31  ;;  %v8360_v27 = vld [vmem:[#allocation62_spill] sm:$0xff]  ;;  %v8361_v31 = vld [vmem:[#allocation32_spill] sm:$0xff] }
 0x650   :  { %3540 = vmatpush1.bf16.msra.mxu1 %v8351_v58  ;;  %3581 = vmatpush1.bf16.msra.mxu0 %v8352_v1  ;;  %v8362_v58 = vld [vmem:[#allocation64_spill] sm:$0xff]  ;;  %v8363_v1 = vld [vmem:[#allocation34_spill] sm:$0xff] }
 0x651   :  { %3541 = vmatprep.subr.bf16.mxu1 %v8353_v15  ;;  %3582 = vmatprep.subr.bf16.mxu0 %v8354_v3  ;;  %v8364_v15 = vld [vmem:[#allocation66_spill] sm:$0xff]  ;;  %v8365_v3 = vld [vmem:[#allocation36_spill] sm:$0xff] }
 0x654   :  { %3542 = vmatpush1.bf16.msra.mxu1 %v8355_v28  ;;  %3583 = vmatpush1.bf16.msra.mxu0 %v8356_v14  ;;  %v8366_v28 = vld [vmem:[#allocation68_spill] sm:$0xff]  ;;  %v8367_v14 = vld [vmem:[#allocation38_spill] sm:$0xff] }
 0x655   :  { %3543 = vmatprep.subr.bf16.mxu1 %v8357_v7  ;;  %3584 = vmatprep.subr.bf16.mxu0 %v8358_v25  ;;  %v8368_v7 = vld [vmem:[#allocation70_spill] sm:$0xff]  ;;  %v8369_v25 = vld [vmem:[#allocation40_spill] sm:$0xff] }
 0x658   :  { %3544 = vmatpush2.bf16.msra.mxu1 %v8359_v8  ;;  %3585 = vmatpush2.bf16.msra.mxu0 %v8360_v27  ;;  %v8370_v8 = vld [vmem:[#allocation72_spill] sm:$0xff]  ;;  %v8371_v27 = vld [vmem:[#allocation42_spill] sm:$0xff] }
 0x659   :  { %3545 = vmatprep.subr.bf16.mxu1 %v8361_v31  ;;  %3586 = vmatprep.subr.bf16.mxu0 %v8362_v58  ;;  %v8372_v31 = vld [vmem:[#allocation74_spill] sm:$0xff]  ;;  %v8373_v58 = vld [vmem:[#allocation44_spill] sm:$0xff] }
 0x65c   :  { %3546 = vmatpush2.bf16.msra.mxu1 %v8363_v1  ;;  %3587 = vmatpush2.bf16.msra.mxu0 %v8364_v15  ;;  %v8374_v1 = vld [vmem:[#allocation76_spill] sm:$0xff]  ;;  %v8375_v15 = vld [vmem:[#allocation46_spill] sm:$0xff] }
 0x65d   :  { %3547 = vmatprep.subr.bf16.mxu1 %v8365_v3  ;;  %3588 = vmatprep.subr.bf16.mxu0 %v8366_v28  ;;  %v8376_v3 = vld [vmem:[#allocation78_spill] sm:$0xff]  ;;  %v8377_v28 = vld [vmem:[#allocation48_spill] sm:$0xff] }
 0x660   :  { %3548 = vmatpush2.bf16.msra.mxu1 %v8367_v14  ;;  %3589 = vmatpush2.bf16.msra.mxu0 %v8368_v7  ;;  %v8378_v14 = vld [vmem:[#allocation80_spill] sm:$0xff]  ;;  %v8379_v7 = vld [vmem:[#allocation50_spill] sm:$0xff] }
 0x661   :  { %3549 = vmatprep.subr.bf16.mxu1 %v8369_v25  ;;  %3590 = vmatprep.subr.bf16.mxu0 %v8370_v8  ;;  %v8380_v25 = vld [vmem:[#allocation82_spill] sm:$0xff]  ;;  %v8381_v8 = vld [vmem:[#allocation52_spill] sm:$0xff] }
 0x664   :  { %3550 = vmatpush2.bf16.msra.mxu1 %v8371_v27  ;;  %3591 = vmatpush2.bf16.msra.mxu0 %v8372_v31  ;;  %v8382_v27 = vld [vmem:[#allocation84_spill] sm:$0xff]  ;;  %v8383_v31 = vld [vmem:[#allocation54_spill] sm:$0xff] }
 0x665   :  { %3551 = vmatprep.subr.bf16.mxu1 %v8373_v58  ;;  %3592 = vmatprep.subr.bf16.mxu0 %v8374_v1  ;;  %v8384_v58 = vld [vmem:[#allocation86_spill] sm:$0xff]  ;;  %v8385_v1 = vld [vmem:[#allocation56_spill] sm:$0xff] }
 0x668   :  { %3552 = vmatpush2.bf16.msra.mxu1 %v8375_v15  ;;  %3593 = vmatpush2.bf16.msra.mxu0 %v8376_v3  ;;  %v8386_v15 = vld [vmem:[#allocation88_spill] sm:$0xff]  ;;  %v8387_v3 = vld [vmem:[#allocation58_spill] sm:$0xff] }
 0x669   :  { %3553 = vmatprep.subr.bf16.mxu1 %v8377_v28  ;;  %3594 = vmatprep.subr.bf16.mxu0 %v8378_v14  ;;  %v8388_v28 = vld [vmem:[#allocation90_spill] sm:$0xff]  ;;  %v8389_v14 = vld [vmem:[#allocation61_spill] sm:$0xff] }
 0x66c   :  { %3554 = vmatpush2.bf16.msra.mxu1 %v8379_v7  ;;  %3595 = vmatpush2.bf16.msra.mxu0 %v8380_v25  ;;  %v8390_v7 = vld [vmem:[#allocation93_spill] sm:$0xff] }
 0x66d   :  { %3555 = vmatprep.subr.bf16.mxu1 %v8381_v8  ;;  %3596 = vmatprep.subr.bf16.mxu0 %v8382_v27 }
 0x670   :  { %3556 = vmatpush2.bf16.msra.mxu1 %v8383_v31  ;;  %3597 = vmatpush2.bf16.msra.mxu0 %v8384_v58 }
 0x671   :  { %3557 = vmatprep.subr.bf16.mxu1 %v8385_v1  ;;  %3598 = vmatprep.subr.bf16.mxu0 %v8386_v15  ;;  %v3079_v1 = vld [vmem:[#allocation2 + $0x44] ss:$8 sm:$0xf] }
 0x672   :  { %v3081_v15 = vor.u32 %v3080_v51, %v3079_v1 }
 0x674   :  { %3558 = vmatpush2.bf16.msra.mxu1 %v8387_v3  ;;  %3599 = vmatpush2.bf16.msra.mxu0 %v8388_v28  ;;  %v3077_v3 = vor.u32 %v3076_v50, %v3075_v29  ;;  %v3127_v28 = vrot.slane %v3081_v15, %v8391_v63  ;;  %v3131_v23 = vrot.slane %v3081_v15, %v8089_v35 }
 0x675   :  { %3609 = vmatprep.subr.bf16.mxu1 %v8389_v14  ;;  %3650 = vmatprep.subr.bf16.mxu0 %v8390_v7  ;;  %v3135_v14 = vrot.slane %v3081_v15, %v8392_v60 }
 0x676   :  { %v3086_v7 = vrot.slane %v3077_v3, %v8391_v63  ;;  %v3094_v54 = vrot.slane %v3077_v3, %v8392_v60  ;;  %v3098_v1 = vrot.slane %v3077_v3, %v6242_v53 }
 0x678   :  { %v3166_v51 = vsel %vm106_vm1, %v3094_v54, %v3135_v14  ;;  %v3143_v14 = vrot.slane %v3081_v15, %v6201_v38 }
 0x6b7   :  { %v3208_v25 = vpop.f32.mrf.mxu1  ;;  %v3249_v8 = vpop.f32.mrf.mxu0 }
 0x6b8   :  { %v3340_v29 = vadd.f32 %v3249_v8, %v3166_v51  ;;  %v3151_v8 = vrot.slane %v3081_v15, %v6261_v6 }
 0x6b9   :  { %v3210_v13 = vpop.f32.mrf.mxu1  ;;  %v3251_v27 = vpop.f32.mrf.mxu0 }
 0x6ba   :  { %v4967_v60 = vmul.f32 -1.442695, %v3340_v29  ;;  %v3114_v29 = vrot.slane %v3077_v3, %v6264_v5 }
 0x6bb   :  { %v3212_v17 = vpop.f32.mrf.mxu1  ;;  %v3253_v31 = vpop.f32.mrf.mxu0 }
 0x6bc   :  { %v3164_v17 = vsel %vm106_vm1, %v3086_v7, %v3127_v28  ;;  %v3139_v31 = vrot.slane %v3081_v15, %v6242_v53 }
 0x6bd   :  { %v3213_v49 = vpop.f32.mrf.mxu1  ;;  %v3254_v58 = vpop.f32.mrf.mxu0 }
 0x6be   :  { %v3090_v49 = vrot.slane %v3077_v3, %v8089_v35  ;;  %v3338_v58 = vadd.f32 %v3208_v25, %v3164_v17  ;;  %v3167_v63 = vsel %vm106_vm1, %v3098_v1, %v3139_v31 }
 0x6bf   :  { %v3341_v10 = vadd.f32 %v3251_v27, %v3167_v63 }
 0x6c0   :  { %v3165_v50 = vsel %vm106_vm1, %v3090_v49, %v3131_v23  ;;  %v4965_v4 = vmul.f32 -1.442695, %v3338_v58  ;;  %v3102_v49 = vrot.slane %v3077_v3, %v6201_v38 }
 0x6c1   :  { %v3339_v21 = vadd.f32 %v3210_v13, %v3165_v50  ;;  %v4968_v28 = vmul.f32 -1.442695, %v3341_v10  ;;  %v3147_v10 = vrot.slane %v3081_v15, %v6212_v62 }
 0x6c2   :  { %5226 = vpow2.f32 %v4965_v4  ;;  %v3168_v4 = vsel %vm106_vm1, %v3102_v49, %v3143_v14 }
 0x6c3   :  { %v4966_v22 = vmul.f32 -1.442695, %v3339_v21  ;;  %5228 = vpow2.f32 %v4967_v60  ;;  %v3110_v21 = vrot.slane %v3077_v3, %v6261_v6  ;;  %v3106_v60 = vrot.slane %v3077_v3, %v6212_v62 }
 0x6c5   :  { %5230 = vpow2.f32 %v4966_v22  ;;  %v3155_v22 = vrot.slane %v3081_v15, %v6264_v5  ;;  %v3170_v58 = vsel %vm106_vm1, %v3110_v21, %v3151_v8 }
 0x6c6   :  { %5232 = vpow2.f32 %v4968_v28  ;;  %v3169_v28 = vsel %vm106_vm1, %v3106_v60, %v3147_v10 }
 0x6c7   :  { %v3171_v15 = vsel %vm106_vm1, %v3114_v29, %v3155_v22 }
 0x6cf   :  { %v5227_v25 = vpop.eup %5226 }
 0x6d0   :  { %v5229_v7 = vpop.eup %5228  ;;  %v3352_v23 = vadd.f32 1.0, %v5227_v25 }
 0x6d1   :  { %v3364_v17 = vadd.f32 1.0, %v5229_v7 }
 0x6d2   :  { %v5231_v54 = vpop.eup %5230  ;;  %5234 = vrcp.f32 %v3352_v23 }
 0x6d3   :  { %v5233_v13 = vpop.eup %5232  ;;  %v3353_v63 = vadd.f32 1.0, %v5231_v54  ;;  %5236 = vrcp.f32 %v3364_v17 }
 0x6d4   :  { %v3365_v27 = vadd.f32 1.0, %v5233_v13 }
 0x6d5   :  { %5238 = vrcp.f32 %v3353_v63 }
 0x6df   :  { %v5235_v63 = vpop.eup %5234 }
 0x6e0   :  { %v5237_v21 = vpop.eup %5236 }
 0x6e1   :  { %v3384_v22 = vmul.f32 %v5237_v21, %v6829_v24 }
 0x6e2   :  { %v5239_v10 = vpop.eup %5238 }
 0x6f7   :  { %v3290_v31 = vpop.f32.mrf.mxu1  ;;  %v3331_v51 = vpop.f32.mrf.mxu0 }
 0x6f8   :  { %v3342_v50 = vadd.f32 %v3290_v31, %v3168_v4  ;;  %v3344_v1 = vadd.f32 %v3331_v51, %v3170_v58 }
 0x6f9   :  { %v3292_v25 = vpop.f32.mrf.mxu1  ;;  %v3333_v7 = vpop.f32.mrf.mxu0 }
 0x6fa   :  { %5240 = vtanh.f32 %v3342_v50  ;;  %v4969_v54 = vmul.f32 -1.442695, %v3344_v1  ;;  %v3343_v14 = vadd.f32 %v3292_v25, %v3169_v28  ;;  %v3345_v23 = vadd.f32 %v3333_v7, %v3171_v15 }
 0x6fb   :  { %5242 = vrcp.f32 %v3365_v27  ;;  %v3294_v13 = vpop.f32.mrf.mxu1  ;;  %v3335_v8 = vpop.f32.mrf.mxu0 }
 0x6fc   :  { %5244 = vpow2.f32 %v4969_v54  ;;  %v4970_v49 = vmul.f32 -1.442695, %v3345_v23 }
 0x6fd   :  { %5246 = vtanh.f32 %v3343_v14  ;;  %v3295_v3 = vpop.f32.mrf.mxu1  ;;  %v3336_v17 = vpop.f32.mrf.mxu0 }
 0x6fe   :  { %5248 = vpow2.f32 %v4970_v49 }
 0x707   :  { %v5241_v4 = vpop.eup %5240 }
 0x708   :  { %v5243_v60 = vpop.eup %5242  ;;  %v3386_v31 = vmul.f32 %v5241_v4, %v5235_v63  ;;  %v8394_v4 = vld [vmem:[#allocation92_spill] sm:$0xff] }
 0x709   :  { %v5245_v58 = vpop.eup %5244  ;;  %v3385_v1 = vmul.f32 %v5243_v60, %v6833_v59  ;;  %v8395_v60 = vld [vmem:[#allocation121_spill] sm:$0xff] }
 0x70a   :  { %v5247_v51 = vpop.eup %5246  ;;  %v7002_v29 = vadd.f32 %v3386_v31, %v3384_v22  ;;  %v3378_v27 = vadd.f32 1.0, %v5245_v58  ;;  %v8396_v22 = vld [vmem:[#allocation94_spill] sm:$0xff]  ;;  %v8398_v58 = vld [vmem:[#allocation95_spill] sm:$0xff] }
 0x70b   :  { %v5249_v50 = vpop.eup %5248  ;;  %v3387_v28 = vmul.f32 %v5247_v51, %v5239_v10  ;;  %v8393_v10 = vld [vmem:[#allocation120_spill] sm:$0xff]  ;;  %v8397_v31 = vld [vmem:[#allocation122_spill] sm:$0xff]  ;;  %v8399_v51 = vld [vmem:[#allocation123_spill] sm:$0xff] }
 0x70c   :  { %5250 = vtanh.f32 %v7002_v29  ;;  %v3379_v25 = vadd.f32 1.0, %v5249_v50  ;;  %v8401_v50 = vld [vmem:[#allocation124_spill] sm:$0xff] }
 0x70d   :  { %5252 = vrcp.f32 %v3378_v27  ;;  %v7006_v15 = vadd.f32 %v3387_v28, %v3385_v1  ;;  %v8400_v27 = vld [vmem:[#allocation97_spill] sm:$0xff]  ;;  %v8402_v1 = vld [vmem:[#allocation99_spill] sm:$0xff] }
 0x70e   :  { %5254 = vrcp.f32 %v3379_v25  ;;  %v8403_v28 = vld [vmem:[#allocation125_spill] sm:$0xff] }
 0x70f   :  { %5256 = vtanh.f32 %v7006_v15  ;;  %v8404_v25 = vld [vmem:[#allocation101_spill] sm:$0xff] }
 0x719   :  { %v5251_v24 = vpop.eup %5250 }
 0x71a   :  { %v5253_v7 = vpop.eup %5252 }
 0x71b   :  { %v5255_v54 = vpop.eup %5254  ;;  %v3392_v23 = vmul.f32 %v5253_v7, %v5251_v24  ;;  %v8405_v24 = vld [vmem:[#allocation126_spill] sm:$0xff]  ;;  %v8406_v7 = vld [vmem:[#allocation103_spill] sm:$0xff] }
 0x71c   :  { %v5257_v14 = vpop.eup %5256 }
 0x71d   :  { %v3393_v13 = vmul.f32 %v5257_v14, %v5255_v54  ;;  %v7009_v3 = vpack.c.bf16 %v3392_v23, %v3392_v23  ;;  %v8407_v54 = vld [vmem:[#allocation127_spill] sm:$0xff]  ;;  %v8408_v14 = vld [vmem:[#allocation105_spill] sm:$0xff] }
 0x71f   :  { %v3526_v8 = vpack.c.bf16 %v3393_v13, %v3393_v13  ;;  %v3396_v49 = vcombine.low %v3392_v23, %v3393_v13  ;;  %v8409_v23 = vld [vmem:[#allocation128_spill] sm:$0xff]  ;;  %v8410_v13 = vld [vmem:[#allocation107_spill] sm:$0xff] }
 0x721   :  { %3559 = vmatprep.mubr.bf16.mxu1 %v3526_v8  ;;  %3600 = vmatprep.mubr.bf16.mxu0 %v3526_v8  ;;  %v3403_v59 = vrot.slane %v3396_v49, %v6310_v45  ;;  %v8412_v49 = vld [vmem:[#allocation109_spill] sm:$0xff] }
 0x722   :  { %3560 = vmatmul.mubr.bf16.vlgmr.msra.gmra.mxu1 %v7009_v3  ;;  %3601 = vmatmul.mubr.bf16.vlgmr.msra.gmra.mxu0 %v7009_v3 }
 0x723   :  { %v3410_v17 = vrot.slane %v3403_v59, %v6310_v45  ;;  %v3415_v63 = vcombine.high %v3403_v59, %v3403_v59  ;;  %3610 = vmatpush1.bf16.msra.mxu1 %v7990_v19  ;;  %3651 = vmatpush1.bf16.msra.mxu0 %v5984_v47  ;;  %v8413_v59 = vld [vmem:[#allocation130_spill] sm:$0xff] }
 0x724   :  { %3641 = vmatprep.mubr.bf16.mxu1 %v3526_v8  ;;  %3682 = vmatprep.mubr.bf16.mxu0 %v3526_v8  ;;  %v8411_v8 = vld [vmem:[#allocation129_spill] sm:$0xff] }
 0x725   :  { %3413 = vst.msk [vmem:[#allocation6 + $0x4] ss:$8 sm:$0x3] %vm6316_vm10, %v3410_v17  ;;  %v3422_v21 = vrot.slane %v3415_v63, %v6310_v45  ;;  %3611 = vmatprep.subr.bf16.mxu1 %v7991_v57  ;;  %3652 = vmatprep.subr.bf16.mxu0 %v7992_v11  ;;  %v8414_v17 = vld [vmem:[#allocation110_spill] sm:$0xff]  ;;  %v8415_v63 = vld [vmem:[#allocation131_spill] sm:$0xff] }
 0x727   :  { %3425 = vst.msk [vmem:[#allocation6 + $0x14] ss:$8 sm:$0x3] %vm6316_vm10, %v3422_v21  ;;  %3612 = vmatpush1.bf16.msra.mxu1 %v7993_v56  ;;  %3653 = vmatpush1.bf16.msra.mxu0 %v7994_v61  ;;  %v8416_v21 = vld [vmem:[#allocation111_spill] sm:$0xff] }
 0x728   :  { %3613 = vmatprep.subr.bf16.mxu1 %v7995_v55  ;;  %3654 = vmatprep.subr.bf16.mxu0 %v7996_v32 }
 0x72b   :  { %3614 = vmatpush1.bf16.msra.mxu1 %v7997_v2  ;;  %3655 = vmatpush1.bf16.msra.mxu0 %v7998_v18 }
 0x72c   :  { %3615 = vmatprep.subr.bf16.mxu1 %v7999_v9  ;;  %3656 = vmatprep.subr.bf16.mxu0 %v8000_v12 }
 0x72f   :  { %3616 = vmatpush1.bf16.msra.mxu1 %v8001_v40  ;;  %3657 = vmatpush1.bf16.msra.mxu0 %v8002_v0 }
 0x730   :  { %3617 = vmatprep.subr.bf16.mxu1 %v8003_v46  ;;  %3658 = vmatprep.subr.bf16.mxu0 %v8004_v36 }
 0x733   :  { %3618 = vmatpush1.bf16.msra.mxu1 %v8005_v44  ;;  %3659 = vmatpush1.bf16.msra.mxu0 %v6034_v42 }
 0x734   :  { %3619 = vmatprep.subr.bf16.mxu1 %v8006_v39  ;;  %3660 = vmatprep.subr.bf16.mxu0 %v6040_v48 }
 0x737   :  { %3620 = vmatpush1.bf16.msra.mxu1 %v8007_v16  ;;  %3661 = vmatpush1.bf16.msra.mxu0 %v8090_v34 }
 0x738   :  { %3621 = vmatprep.subr.bf16.mxu1 %v8008_v20  ;;  %3662 = vmatprep.subr.bf16.mxu0 %v8091_v41 }
 0x73b   :  { %3622 = vmatpush1.bf16.msra.mxu1 %v8009_v37  ;;  %3663 = vmatpush1.bf16.msra.mxu0 %v8092_v33 }
 0x73c   :  { %3623 = vmatprep.subr.bf16.mxu1 %v8010_v30  ;;  %3664 = vmatprep.subr.bf16.mxu0 %v8093_v26 }
 0x73f   :  { %3624 = vmatpush1.bf16.msra.mxu1 %v8011_v43  ;;  %3665 = vmatpush1.bf16.msra.mxu0 %v8393_v10 }
 0x740   :  { %3625 = vmatprep.subr.bf16.mxu1 %v8394_v4  ;;  %3666 = vmatprep.subr.bf16.mxu0 %v8395_v60 }
 0x743   :  { %3626 = vmatpush2.bf16.msra.mxu1 %v8396_v22  ;;  %3667 = vmatpush2.bf16.msra.mxu0 %v8397_v31 }
 0x744   :  { %3627 = vmatprep.subr.bf16.mxu1 %v8398_v58  ;;  %3668 = vmatprep.subr.bf16.mxu0 %v8399_v51  ;;  %v8493_v51 = vld [vmem:[#allocation139_spill] sm:$0xff] }
 0x747   :  { %3628 = vmatpush2.bf16.msra.mxu1 %v8400_v27  ;;  %3669 = vmatpush2.bf16.msra.mxu0 %v8401_v50  ;;  %v3428_v50 = vld [vmem:[#allocation2 + $0x5] ss:$8 sm:$0xf] }
 0x748   :  { %3629 = vmatprep.subr.bf16.mxu1 %v8402_v1  ;;  %3670 = vmatprep.subr.bf16.mxu0 %v8403_v28  ;;  %v3433_v28 = vld [vmem:[#allocation2 + $0x45] ss:$8 sm:$0xf0] }
 0x749   :  { %v3429_v1 = vld [vmem:[#allocation2 + $0x5] ss:$8 sm:$0xf0] }
 0x74a   :  { %v8492_v27 = vld [vmem:[#allocation137_spill] sm:$0xff] }
 0x74b   :  { %3630 = vmatpush2.bf16.msra.mxu1 %v8404_v25  ;;  %3671 = vmatpush2.bf16.msra.mxu0 %v8405_v24 }
 0x74c   :  { %3631 = vmatprep.subr.bf16.mxu1 %v8406_v7  ;;  %3672 = vmatprep.subr.bf16.mxu0 %v8407_v54  ;;  %v8417_v7 = vld [vmem:[#allocation132_spill] sm:$0xff]  ;;  %v8418_v54 = vld [vmem:[#allocation113_spill] sm:$0xff] }
 0x74f   :  { %3632 = vmatpush2.bf16.msra.mxu1 %v8408_v14  ;;  %3673 = vmatpush2.bf16.msra.mxu0 %v8409_v23  ;;  %v8419_v14 = vld [vmem:[#allocation133_spill] sm:$0xff]  ;;  %v8420_v23 = vld [vmem:[#allocation115_spill] sm:$0xff] }
 0x750   :  { %3633 = vmatprep.subr.bf16.mxu1 %v8410_v13  ;;  %3674 = vmatprep.subr.bf16.mxu0 %v8411_v8  ;;  %v8421_v13 = vld [vmem:[#allocation134_spill] sm:$0xff]  ;;  %v8422_v8 = vld [vmem:[#allocation117_spill] sm:$0xff] }
 0x753   :  { %3634 = vmatpush2.bf16.msra.mxu1 %v8412_v49  ;;  %3675 = vmatpush2.bf16.msra.mxu0 %v8413_v59  ;;  %v8423_v49 = vld [vmem:[#allocation135_spill] sm:$0xff] }
 0x754   :  { %3635 = vmatprep.subr.bf16.mxu1 %v8414_v17  ;;  %3676 = vmatprep.subr.bf16.mxu0 %v8415_v63  ;;  %v8424_v59 = vld [vmem:[#allocation119_spill] sm:$0xff]  ;;  %v8425_v17 = vld [vmem:[#allocation136_spill] sm:$0xff] }
 0x755   :  { %v8426_v63 = vld [vmem:[#allocation12_spill] sm:$0xff] }
 0x757   :  { %3636 = vmatpush2.bf16.msra.mxu1 %v8416_v21  ;;  %3677 = vmatpush2.bf16.msra.mxu0 %v8417_v7  ;;  %v8427_v21 = vld [vmem:[#allocation29_spill] sm:$0xff] }
 0x758   :  { %3637 = vmatprep.subr.bf16.mxu1 %v8418_v54  ;;  %3678 = vmatprep.subr.bf16.mxu0 %v8419_v14  ;;  %v8428_v14 = vld [vmem:[#allocation13_spill] sm:$0xff]  ;;  %v8437_v54 = vld [vmem:[#allocation39_spill] sm:$0xff] }
 0x75b   :  { %3638 = vmatpush2.bf16.msra.mxu1 %v8420_v23  ;;  %3679 = vmatpush2.bf16.msra.mxu0 %v8421_v13  ;;  %v8429_v23 = vld [vmem:[#allocation31_spill] sm:$0xff]  ;;  %v8430_v13 = vld [vmem:[#allocation14_spill] sm:$0xff] }
 0x75c   :  { %3639 = vmatprep.subr.bf16.mxu1 %v8422_v8  ;;  %3680 = vmatprep.subr.bf16.mxu0 %v8423_v49  ;;  %v8431_v8 = vld [vmem:[#allocation33_spill] sm:$0xff]  ;;  %v8432_v49 = vld [vmem:[#allocation15_spill] sm:$0xff] }
 0x75f   :  { %3640 = vmatpush2.bf16.msra.mxu1 %v8424_v59  ;;  %3681 = vmatpush2.bf16.msra.mxu0 %v8425_v17  ;;  %v8433_v59 = vld [vmem:[#allocation35_spill] sm:$0xff]  ;;  %v8434_v17 = vld [vmem:[#allocation16_spill] sm:$0xff] }
 0x760   :  { %3880 = vmatprep.subr.bf16.mxu1 %v8426_v63  ;;  %3921 = vmatprep.subr.bf16.mxu0 %v8427_v21  ;;  %v8435_v63 = vld [vmem:[#allocation37_spill] sm:$0xff] }
 0x761   :  { %v8436_v21 = vld [vmem:[#allocation17_spill] sm:$0xff] }
 0x762   :  { %3642 = vmatmul.mubr.bf16.vlgmr.msra.gmra.mxu1 %v7009_v3  ;;  %3683 = vmatmul.mubr.bf16.vlgmr.msra.gmra.mxu0 %v7009_v3  ;;  %v8438_v3 = vld [vmem:[#allocation18_spill] sm:$0xff] }
 0x763   :  { %3881 = vmatpush1.bf16.msra.mxu1 %v8428_v14  ;;  %3922 = vmatpush1.bf16.msra.mxu0 %v8429_v23  ;;  %v8439_v14 = vld [vmem:[#allocation41_spill] sm:$0xff]  ;;  %v8440_v23 = vld [vmem:[#allocation19_spill] sm:$0xff] }
 0x764   :  { %3882 = vmatprep.subr.bf16.mxu1 %v8430_v13  ;;  %3923 = vmatprep.subr.bf16.mxu0 %v8431_v8  ;;  %v8441_v13 = vld [vmem:[#allocation43_spill] sm:$0xff]  ;;  %v8442_v8 = vld [vmem:[#allocation20_spill] sm:$0xff] }
 0x767   :  { %3883 = vmatpush1.bf16.msra.mxu1 %v8432_v49  ;;  %3924 = vmatpush1.bf16.msra.mxu0 %v8433_v59  ;;  %v8443_v49 = vld [vmem:[#allocation45_spill] sm:$0xff] }
 0x768   :  { %3884 = vmatprep.subr.bf16.mxu1 %v8434_v17  ;;  %3925 = vmatprep.subr.bf16.mxu0 %v8435_v63  ;;  %v8444_v59 = vld [vmem:[#allocation21_spill] sm:$0xff]  ;;  %v8445_v17 = vld [vmem:[#allocation47_spill] sm:$0xff]  ;;  %v8446_v63 = vld [vmem:[#allocation22_spill] sm:$0xff] }
 0x76b   :  { %3885 = vmatpush1.bf16.msra.mxu1 %v8436_v21  ;;  %3926 = vmatpush1.bf16.msra.mxu0 %v8437_v54  ;;  %v8447_v21 = vld [vmem:[#allocation49_spill] sm:$0xff]  ;;  %v8448_v54 = vld [vmem:[#allocation23_spill] sm:$0xff] }
 0x76c   :  { %3886 = vmatprep.subr.bf16.mxu1 %v8438_v3  ;;  %3927 = vmatprep.subr.bf16.mxu0 %v8439_v14  ;;  %v8449_v3 = vld [vmem:[#allocation51_spill] sm:$0xff]  ;;  %v8450_v14 = vld [vmem:[#allocation24_spill] sm:$0xff] }
 0x76f   :  { %3887 = vmatpush1.bf16.msra.mxu1 %v8440_v23  ;;  %3928 = vmatpush1.bf16.msra.mxu0 %v8441_v13  ;;  %v8451_v23 = vld [vmem:[#allocation53_spill] sm:$0xff] }
 0x770   :  { %3888 = vmatprep.subr.bf16.mxu1 %v8442_v8  ;;  %3929 = vmatprep.subr.bf16.mxu0 %v8443_v49  ;;  %v8452_v13 = vld [vmem:[#allocation25_spill] sm:$0xff]  ;;  %v8453_v8 = vld [vmem:[#allocation55_spill] sm:$0xff]  ;;  %v8454_v49 = vld [vmem:[#allocation26_spill] sm:$0xff] }
 0x773   :  { %3889 = vmatpush1.bf16.msra.mxu1 %v8444_v59  ;;  %3930 = vmatpush1.bf16.msra.mxu0 %v8445_v17  ;;  %v8455_v59 = vld [vmem:[#allocation57_spill] sm:$0xff]  ;;  %v8456_v17 = vld [vmem:[#allocation27_spill] sm:$0xff] }
 0x774   :  { %3890 = vmatprep.subr.bf16.mxu1 %v8446_v63  ;;  %3931 = vmatprep.subr.bf16.mxu0 %v8447_v21  ;;  %v8457_v63 = vld [vmem:[#allocation59_spill] sm:$0xff]  ;;  %v8458_v21 = vld [vmem:[#allocation28_spill] sm:$0xff] }
 0x777   :  { %3891 = vmatpush1.bf16.msra.mxu1 %v8448_v54  ;;  %3932 = vmatpush1.bf16.msra.mxu0 %v8449_v3  ;;  %v8459_v54 = vld [vmem:[#allocation60_spill] sm:$0xff]  ;;  %v8460_v3 = vld [vmem:[#allocation30_spill] sm:$0xff] }
 0x778   :  { %3892 = vmatprep.subr.bf16.mxu1 %v8450_v14  ;;  %3933 = vmatprep.subr.bf16.mxu0 %v8451_v23  ;;  %v8461_v14 = vld [vmem:[#allocation62_spill] sm:$0xff]  ;;  %v8462_v23 = vld [vmem:[#allocation32_spill] sm:$0xff] }
 0x77b   :  { %3893 = vmatpush1.bf16.msra.mxu1 %v8452_v13  ;;  %3934 = vmatpush1.bf16.msra.mxu0 %v8453_v8  ;;  %v8463_v13 = vld [vmem:[#allocation64_spill] sm:$0xff]  ;;  %v8464_v8 = vld [vmem:[#allocation34_spill] sm:$0xff] }
 0x77c   :  { %3894 = vmatprep.subr.bf16.mxu1 %v8454_v49  ;;  %3935 = vmatprep.subr.bf16.mxu0 %v8455_v59  ;;  %v8465_v49 = vld [vmem:[#allocation66_spill] sm:$0xff]  ;;  %v8466_v59 = vld [vmem:[#allocation36_spill] sm:$0xff] }
 0x77f   :  { %3895 = vmatpush1.bf16.msra.mxu1 %v8456_v17  ;;  %3936 = vmatpush1.bf16.msra.mxu0 %v8457_v63  ;;  %v8467_v17 = vld [vmem:[#allocation68_spill] sm:$0xff]  ;;  %v8468_v63 = vld [vmem:[#allocation38_spill] sm:$0xff] }
 0x780   :  { %3896 = vmatprep.subr.bf16.mxu1 %v8458_v21  ;;  %3937 = vmatprep.subr.bf16.mxu0 %v8459_v54  ;;  %v8469_v21 = vld [vmem:[#allocation70_spill] sm:$0xff]  ;;  %v8470_v54 = vld [vmem:[#allocation40_spill] sm:$0xff] }
 0x783   :  { %3897 = vmatpush2.bf16.msra.mxu1 %v8460_v3  ;;  %3938 = vmatpush2.bf16.msra.mxu0 %v8461_v14  ;;  %v8471_v3 = vld [vmem:[#allocation72_spill] sm:$0xff]  ;;  %v8472_v14 = vld [vmem:[#allocation42_spill] sm:$0xff] }
 0x784   :  { %3898 = vmatprep.subr.bf16.mxu1 %v8462_v23  ;;  %3939 = vmatprep.subr.bf16.mxu0 %v8463_v13  ;;  %v8473_v23 = vld [vmem:[#allocation74_spill] sm:$0xff]  ;;  %v8474_v13 = vld [vmem:[#allocation44_spill] sm:$0xff] }
 0x787   :  { %3899 = vmatpush2.bf16.msra.mxu1 %v8464_v8  ;;  %3940 = vmatpush2.bf16.msra.mxu0 %v8465_v49  ;;  %v8475_v8 = vld [vmem:[#allocation76_spill] sm:$0xff]  ;;  %v8476_v49 = vld [vmem:[#allocation46_spill] sm:$0xff] }
 0x788   :  { %3900 = vmatprep.subr.bf16.mxu1 %v8466_v59  ;;  %3941 = vmatprep.subr.bf16.mxu0 %v8467_v17  ;;  %v8477_v59 = vld [vmem:[#allocation78_spill] sm:$0xff]  ;;  %v8478_v17 = vld [vmem:[#allocation48_spill] sm:$0xff] }
 0x78b   :  { %3901 = vmatpush2.bf16.msra.mxu1 %v8468_v63  ;;  %3942 = vmatpush2.bf16.msra.mxu0 %v8469_v21  ;;  %v8479_v63 = vld [vmem:[#allocation80_spill] sm:$0xff]  ;;  %v8480_v21 = vld [vmem:[#allocation50_spill] sm:$0xff] }
 0x78c   :  { %3902 = vmatprep.subr.bf16.mxu1 %v8470_v54  ;;  %3943 = vmatprep.subr.bf16.mxu0 %v8471_v3  ;;  %v8481_v54 = vld [vmem:[#allocation82_spill] sm:$0xff]  ;;  %v8482_v3 = vld [vmem:[#allocation52_spill] sm:$0xff] }
 0x78f   :  { %3903 = vmatpush2.bf16.msra.mxu1 %v8472_v14  ;;  %3944 = vmatpush2.bf16.msra.mxu0 %v8473_v23  ;;  %v8483_v14 = vld [vmem:[#allocation84_spill] sm:$0xff]  ;;  %v8484_v23 = vld [vmem:[#allocation54_spill] sm:$0xff] }
 0x790   :  { %3904 = vmatprep.subr.bf16.mxu1 %v8474_v13  ;;  %3945 = vmatprep.subr.bf16.mxu0 %v8475_v8  ;;  %v8485_v13 = vld [vmem:[#allocation86_spill] sm:$0xff]  ;;  %v8486_v8 = vld [vmem:[#allocation56_spill] sm:$0xff] }
 0x793   :  { %3905 = vmatpush2.bf16.msra.mxu1 %v8476_v49  ;;  %3946 = vmatpush2.bf16.msra.mxu0 %v8477_v59  ;;  %v8487_v49 = vld [vmem:[#allocation88_spill] sm:$0xff]  ;;  %v8488_v59 = vld [vmem:[#allocation58_spill] sm:$0xff] }
 0x794   :  { %3906 = vmatprep.subr.bf16.mxu1 %v8478_v17  ;;  %3947 = vmatprep.subr.bf16.mxu0 %v8479_v63  ;;  %v8489_v17 = vld [vmem:[#allocation90_spill] sm:$0xff]  ;;  %v8490_v63 = vld [vmem:[#allocation61_spill] sm:$0xff] }
 0x797   :  { %3907 = vmatpush2.bf16.msra.mxu1 %v8480_v21  ;;  %3948 = vmatpush2.bf16.msra.mxu0 %v8481_v54  ;;  %v8491_v21 = vld [vmem:[#allocation93_spill] sm:$0xff] }
 0x798   :  { %3908 = vmatprep.subr.bf16.mxu1 %v8482_v3  ;;  %3949 = vmatprep.subr.bf16.mxu0 %v8483_v14 }
 0x79b   :  { %3909 = vmatpush2.bf16.msra.mxu1 %v8484_v23  ;;  %3950 = vmatpush2.bf16.msra.mxu0 %v8485_v13 }
 0x79c   :  { %3910 = vmatprep.subr.bf16.mxu1 %v8486_v8  ;;  %3951 = vmatprep.subr.bf16.mxu0 %v8487_v49  ;;  %v3432_v8 = vld [vmem:[#allocation2 + $0x45] ss:$8 sm:$0xf] }
 0x79d   :  { %v3434_v49 = vor.u32 %v3433_v28, %v3432_v8 }
 0x79f   :  { %3911 = vmatpush2.bf16.msra.mxu1 %v8488_v59  ;;  %3952 = vmatpush2.bf16.msra.mxu0 %v8489_v17  ;;  %v3430_v59 = vor.u32 %v3429_v1, %v3428_v50  ;;  %v3480_v17 = vrot.slane %v3434_v49, %v8492_v27  ;;  %v3484_v58 = vrot.slane %v3434_v49, %v8089_v35 }
 0x7a0   :  { %3962 = vmatprep.subr.bf16.mxu1 %v8490_v63  ;;  %4003 = vmatprep.subr.bf16.mxu0 %v8491_v21  ;;  %v3488_v63 = vrot.slane %v3434_v49, %v8493_v51 }
 0x7a1   :  { %v3439_v21 = vrot.slane %v3430_v59, %v8492_v27  ;;  %v3447_v31 = vrot.slane %v3430_v59, %v8493_v51  ;;  %v3451_v8 = vrot.slane %v3430_v59, %v6242_v53 }
 0x7a3   :  { %v3519_v28 = vsel %vm106_vm1, %v3447_v31, %v3488_v63  ;;  %v3496_v63 = vrot.slane %v3434_v49, %v6201_v38 }
 0x7e2   :  { %v3561_v54 = vpop.f32.mrf.mxu1  ;;  %v3602_v3 = vpop.f32.mrf.mxu0 }
 0x7e3   :  { %v3693_v50 = vadd.f32 %v3602_v3, %v3519_v28  ;;  %v3504_v3 = vrot.slane %v3434_v49, %v6261_v6 }
 0x7e4   :  { %v3563_v7 = vpop.f32.mrf.mxu1  ;;  %v3604_v14 = vpop.f32.mrf.mxu0 }
 0x7e5   :  { %v4973_v51 = vmul.f32 -1.442695, %v3693_v50  ;;  %v3467_v50 = vrot.slane %v3430_v59, %v6264_v5 }
 0x7e6   :  { %v3565_v24 = vpop.f32.mrf.mxu1  ;;  %v3606_v23 = vpop.f32.mrf.mxu0 }
 0x7e7   :  { %v3517_v24 = vsel %vm106_vm1, %v3439_v21, %v3480_v17  ;;  %v3492_v23 = vrot.slane %v3434_v49, %v6242_v53 }
 0x7e8   :  { %v3566_v25 = vpop.f32.mrf.mxu1  ;;  %v3607_v13 = vpop.f32.mrf.mxu0 }
 0x7e9   :  { %v3443_v25 = vrot.slane %v3430_v59, %v8089_v35  ;;  %v3691_v13 = vadd.f32 %v3561_v54, %v3517_v24  ;;  %v3520_v27 = vsel %vm106_vm1, %v3451_v8, %v3492_v23 }
 0x7ea   :  { %v3694_v4 = vadd.f32 %v3604_v14, %v3520_v27 }
 0x7eb   :  { %v3518_v1 = vsel %vm106_vm1, %v3443_v25, %v3484_v58  ;;  %v4971_v60 = vmul.f32 -1.442695, %v3691_v13  ;;  %v3455_v25 = vrot.slane %v3430_v59, %v6201_v38 }
 0x7ec   :  { %v3692_v22 = vadd.f32 %v3563_v7, %v3518_v1  ;;  %v4974_v17 = vmul.f32 -1.442695, %v3694_v4  ;;  %v3500_v4 = vrot.slane %v3434_v49, %v6212_v62 }
 0x7ed   :  { %5258 = vpow2.f32 %v4971_v60  ;;  %v3521_v60 = vsel %vm106_vm1, %v3455_v25, %v3496_v63 }
 0x7ee   :  { %v4972_v10 = vmul.f32 -1.442695, %v3692_v22  ;;  %5260 = vpow2.f32 %v4973_v51  ;;  %v3463_v22 = vrot.slane %v3430_v59, %v6261_v6  ;;  %v3459_v51 = vrot.slane %v3430_v59, %v6212_v62 }
 0x7f0   :  { %5262 = vpow2.f32 %v4972_v10  ;;  %v3508_v10 = vrot.slane %v3434_v49, %v6264_v5  ;;  %v3523_v13 = vsel %vm106_vm1, %v3463_v22, %v3504_v3 }
 0x7f1   :  { %5264 = vpow2.f32 %v4974_v17  ;;  %v3522_v17 = vsel %vm106_vm1, %v3459_v51, %v3500_v4 }
 0x7f2   :  { %v3524_v49 = vsel %vm106_vm1, %v3467_v50, %v3508_v10 }
 0x7fa   :  { %v5259_v54 = vpop.eup %5258 }
 0x7fb   :  { %v5261_v21 = vpop.eup %5260  ;;  %v3705_v58 = vadd.f32 1.0, %v5259_v54 }
 0x7fc   :  { %v3717_v24 = vadd.f32 1.0, %v5261_v21 }
 0x7fd   :  { %v5263_v31 = vpop.eup %5262  ;;  %5266 = vrcp.f32 %v3705_v58 }
 0x7fe   :  { %v5265_v7 = vpop.eup %5264  ;;  %v3706_v27 = vadd.f32 1.0, %v5263_v31  ;;  %5268 = vrcp.f32 %v3717_v24 }
 0x7ff   :  { %v3718_v14 = vadd.f32 1.0, %v5265_v7 }
 0x800   :  { %5270 = vrcp.f32 %v3706_v27 }
 0x80a   :  { %v5267_v27 = vpop.eup %5266 }
 0x80b   :  { %v5269_v22 = vpop.eup %5268 }
 0x80c   :  { %v3737_v10 = vmul.f32 %v5269_v22, %v7002_v29 }
 0x80d   :  { %v5271_v4 = vpop.eup %5270 }
 0x822   :  { %v3643_v23 = vpop.f32.mrf.mxu1  ;;  %v3684_v28 = vpop.f32.mrf.mxu0 }
 0x823   :  { %v3695_v1 = vadd.f32 %v3643_v23, %v3521_v60  ;;  %v3697_v8 = vadd.f32 %v3684_v28, %v3523_v13 }
 0x824   :  { %v3645_v54 = vpop.f32.mrf.mxu1  ;;  %v3686_v21 = vpop.f32.mrf.mxu0 }
 0x825   :  { %5272 = vtanh.f32 %v3695_v1  ;;  %v4975_v31 = vmul.f32 -1.442695, %v3697_v8  ;;  %v3696_v63 = vadd.f32 %v3645_v54, %v3522_v17  ;;  %v3698_v58 = vadd.f32 %v3686_v21, %v3524_v49 }
 0x826   :  { %5274 = vrcp.f32 %v3718_v14  ;;  %v3647_v7 = vpop.f32.mrf.mxu1  ;;  %v3688_v3 = vpop.f32.mrf.mxu0 }
 0x827   :  { %5276 = vpow2.f32 %v4975_v31  ;;  %v4976_v25 = vmul.f32 -1.442695, %v3698_v58 }
 0x828   :  { %5278 = vtanh.f32 %v3696_v63  ;;  %v3648_v59 = vpop.f32.mrf.mxu1  ;;  %v3689_v24 = vpop.f32.mrf.mxu0 }
 0x829   :  { %5280 = vpow2.f32 %v4976_v25 }
 0x832   :  { %v5273_v60 = vpop.eup %5272 }
 0x833   :  { %v5275_v51 = vpop.eup %5274  ;;  %v3739_v23 = vmul.f32 %v5273_v60, %v5267_v27  ;;  %v8495_v60 = vld [vmem:[#allocation92_spill] sm:$0xff] }
 0x834   :  { %v5277_v13 = vpop.eup %5276  ;;  %v3738_v8 = vmul.f32 %v5275_v51, %v7006_v15  ;;  %v8496_v51 = vld [vmem:[#allocation121_spill] sm:$0xff] }
 0x835   :  { %v5279_v28 = vpop.eup %5278  ;;  %v7175_v50 = vadd.f32 %v3739_v23, %v3737_v10  ;;  %v3731_v14 = vadd.f32 1.0, %v5277_v13  ;;  %v8497_v10 = vld [vmem:[#allocation94_spill] sm:$0xff]  ;;  %v8499_v13 = vld [vmem:[#allocation95_spill] sm:$0xff] }
 0x836   :  { %v5281_v1 = vpop.eup %5280  ;;  %v3740_v17 = vmul.f32 %v5279_v28, %v5271_v4  ;;  %v8494_v4 = vld [vmem:[#allocation120_spill] sm:$0xff]  ;;  %v8498_v23 = vld [vmem:[#allocation122_spill] sm:$0xff]  ;;  %v8500_v28 = vld [vmem:[#allocation123_spill] sm:$0xff] }
 0x837   :  { %5282 = vtanh.f32 %v7175_v50  ;;  %v3732_v54 = vadd.f32 1.0, %v5281_v1  ;;  %v8502_v1 = vld [vmem:[#allocation124_spill] sm:$0xff] }
 0x838   :  { %5284 = vrcp.f32 %v3731_v14  ;;  %v7179_v49 = vadd.f32 %v3740_v17, %v3738_v8  ;;  %v8501_v14 = vld [vmem:[#allocation97_spill] sm:$0xff]  ;;  %v8503_v8 = vld [vmem:[#allocation99_spill] sm:$0xff] }
 0x839   :  { %5286 = vrcp.f32 %v3732_v54  ;;  %v8504_v17 = vld [vmem:[#allocation125_spill] sm:$0xff] }
 0x83a   :  { %5288 = vtanh.f32 %v7179_v49  ;;  %v8505_v54 = vld [vmem:[#allocation101_spill] sm:$0xff] }
 0x844   :  { %v5283_v29 = vpop.eup %5282 }
 0x845   :  { %v5285_v21 = vpop.eup %5284 }
 0x846   :  { %v5287_v31 = vpop.eup %5286  ;;  %v3745_v58 = vmul.f32 %v5285_v21, %v5283_v29  ;;  %v8506_v29 = vld [vmem:[#allocation126_spill] sm:$0xff]  ;;  %v8507_v21 = vld [vmem:[#allocation103_spill] sm:$0xff] }
 0x847   :  { %v5289_v63 = vpop.eup %5288 }
 0x848   :  { %v3746_v7 = vmul.f32 %v5289_v63, %v5287_v31  ;;  %v7182_v59 = vpack.c.bf16 %v3745_v58, %v3745_v58  ;;  %v8508_v31 = vld [vmem:[#allocation127_spill] sm:$0xff]  ;;  %v8509_v63 = vld [vmem:[#allocation105_spill] sm:$0xff] }
 0x84a   :  { %v3879_v3 = vpack.c.bf16 %v3746_v7, %v3746_v7  ;;  %v3749_v25 = vcombine.low %v3745_v58, %v3746_v7  ;;  %v8510_v58 = vld [vmem:[#allocation128_spill] sm:$0xff]  ;;  %v8511_v7 = vld [vmem:[#allocation107_spill] sm:$0xff] }
 0x84c   :  { %3912 = vmatprep.mubr.bf16.mxu1 %v3879_v3  ;;  %3953 = vmatprep.mubr.bf16.mxu0 %v3879_v3  ;;  %v3756_v15 = vrot.slane %v3749_v25, %v6310_v45  ;;  %v8513_v25 = vld [vmem:[#allocation109_spill] sm:$0xff] }
 0x84d   :  { %3913 = vmatmul.mubr.bf16.vlgmr.msra.gmra.mxu1 %v7182_v59  ;;  %3954 = vmatmul.mubr.bf16.vlgmr.msra.gmra.mxu0 %v7182_v59 }
 0x84e   :  { %v3763_v24 = vrot.slane %v3756_v15, %v6310_v45  ;;  %v3768_v27 = vcombine.high %v3756_v15, %v3756_v15  ;;  %3963 = vmatpush1.bf16.msra.mxu1 %v7990_v19  ;;  %4004 = vmatpush1.bf16.msra.mxu0 %v5984_v47  ;;  %v8514_v15 = vld [vmem:[#allocation130_spill] sm:$0xff] }
 0x84f   :  { %3994 = vmatprep.mubr.bf16.mxu1 %v3879_v3  ;;  %4035 = vmatprep.mubr.bf16.mxu0 %v3879_v3  ;;  %v8512_v3 = vld [vmem:[#allocation129_spill] sm:$0xff] }
 0x850   :  { %3766 = vst.msk [vmem:[#allocation6 + $0x5] ss:$8 sm:$0x3] %vm6316_vm10, %v3763_v24  ;;  %v3775_v22 = vrot.slane %v3768_v27, %v6310_v45  ;;  %3964 = vmatprep.subr.bf16.mxu1 %v7991_v57  ;;  %4005 = vmatprep.subr.bf16.mxu0 %v7992_v11  ;;  %v8515_v24 = vld [vmem:[#allocation110_spill] sm:$0xff]  ;;  %v8516_v27 = vld [vmem:[#allocation131_spill] sm:$0xff] }
 0x852   :  { %3778 = vst.msk [vmem:[#allocation6 + $0x15] ss:$8 sm:$0x3] %vm6316_vm10, %v3775_v22  ;;  %3965 = vmatpush1.bf16.msra.mxu1 %v7993_v56  ;;  %4006 = vmatpush1.bf16.msra.mxu0 %v7994_v61  ;;  %v8517_v22 = vld [vmem:[#allocation111_spill] sm:$0xff] }
 0x853   :  { %3966 = vmatprep.subr.bf16.mxu1 %v7995_v55  ;;  %4007 = vmatprep.subr.bf16.mxu0 %v7996_v32 }
 0x856   :  { %3967 = vmatpush1.bf16.msra.mxu1 %v7997_v2  ;;  %4008 = vmatpush1.bf16.msra.mxu0 %v7998_v18 }
 0x857   :  { %3968 = vmatprep.subr.bf16.mxu1 %v7999_v9  ;;  %4009 = vmatprep.subr.bf16.mxu0 %v8000_v12 }
 0x85a   :  { %3969 = vmatpush1.bf16.msra.mxu1 %v8001_v40  ;;  %4010 = vmatpush1.bf16.msra.mxu0 %v8002_v0 }
 0x85b   :  { %3970 = vmatprep.subr.bf16.mxu1 %v8003_v46  ;;  %4011 = vmatprep.subr.bf16.mxu0 %v8004_v36 }
 0x85e   :  { %3971 = vmatpush1.bf16.msra.mxu1 %v8005_v44  ;;  %4012 = vmatpush1.bf16.msra.mxu0 %v6034_v42 }
 0x85f   :  { %3972 = vmatprep.subr.bf16.mxu1 %v8006_v39  ;;  %4013 = vmatprep.subr.bf16.mxu0 %v6040_v48 }
 0x862   :  { %3973 = vmatpush1.bf16.msra.mxu1 %v8007_v16  ;;  %4014 = vmatpush1.bf16.msra.mxu0 %v8090_v34 }
 0x863   :  { %3974 = vmatprep.subr.bf16.mxu1 %v8008_v20  ;;  %4015 = vmatprep.subr.bf16.mxu0 %v8091_v41 }
 0x866   :  { %3975 = vmatpush1.bf16.msra.mxu1 %v8009_v37  ;;  %4016 = vmatpush1.bf16.msra.mxu0 %v8092_v33 }
 0x867   :  { %3976 = vmatprep.subr.bf16.mxu1 %v8010_v30  ;;  %4017 = vmatprep.subr.bf16.mxu0 %v8093_v26 }
 0x86a   :  { %3977 = vmatpush1.bf16.msra.mxu1 %v8011_v43  ;;  %4018 = vmatpush1.bf16.msra.mxu0 %v8494_v4 }
 0x86b   :  { %3978 = vmatprep.subr.bf16.mxu1 %v8495_v60  ;;  %4019 = vmatprep.subr.bf16.mxu0 %v8496_v51 }
 0x86e   :  { %3979 = vmatpush2.bf16.msra.mxu1 %v8497_v10  ;;  %4020 = vmatpush2.bf16.msra.mxu0 %v8498_v23 }
 0x86f   :  { %3980 = vmatprep.subr.bf16.mxu1 %v8499_v13  ;;  %4021 = vmatprep.subr.bf16.mxu0 %v8500_v28  ;;  %v8594_v28 = vld [vmem:[#allocation139_spill] sm:$0xff] }
 0x872   :  { %3981 = vmatpush2.bf16.msra.mxu1 %v8501_v14  ;;  %4022 = vmatpush2.bf16.msra.mxu0 %v8502_v1  ;;  %v3781_v1 = vld [vmem:[#allocation2 + $0x6] ss:$8 sm:$0xf] }
 0x873   :  { %3982 = vmatprep.subr.bf16.mxu1 %v8503_v8  ;;  %4023 = vmatprep.subr.bf16.mxu0 %v8504_v17  ;;  %v3786_v17 = vld [vmem:[#allocation2 + $0x46] ss:$8 sm:$0xf0] }
 0x874   :  { %v3782_v8 = vld [vmem:[#allocation2 + $0x6] ss:$8 sm:$0xf0] }
 0x875   :  { %v8593_v14 = vld [vmem:[#allocation137_spill] sm:$0xff] }
 0x876   :  { %3983 = vmatpush2.bf16.msra.mxu1 %v8505_v54  ;;  %4024 = vmatpush2.bf16.msra.mxu0 %v8506_v29 }
 0x877   :  { %3984 = vmatprep.subr.bf16.mxu1 %v8507_v21  ;;  %4025 = vmatprep.subr.bf16.mxu0 %v8508_v31  ;;  %v8518_v21 = vld [vmem:[#allocation132_spill] sm:$0xff]  ;;  %v8519_v31 = vld [vmem:[#allocation113_spill] sm:$0xff] }
 0x87a   :  { %3985 = vmatpush2.bf16.msra.mxu1 %v8509_v63  ;;  %4026 = vmatpush2.bf16.msra.mxu0 %v8510_v58  ;;  %v8520_v63 = vld [vmem:[#allocation133_spill] sm:$0xff]  ;;  %v8521_v58 = vld [vmem:[#allocation115_spill] sm:$0xff] }
 0x87b   :  { %3986 = vmatprep.subr.bf16.mxu1 %v8511_v7  ;;  %4027 = vmatprep.subr.bf16.mxu0 %v8512_v3  ;;  %v8522_v7 = vld [vmem:[#allocation134_spill] sm:$0xff]  ;;  %v8523_v3 = vld [vmem:[#allocation117_spill] sm:$0xff] }
 0x87e   :  { %3987 = vmatpush2.bf16.msra.mxu1 %v8513_v25  ;;  %4028 = vmatpush2.bf16.msra.mxu0 %v8514_v15  ;;  %v8524_v25 = vld [vmem:[#allocation135_spill] sm:$0xff] }
 0x87f   :  { %3988 = vmatprep.subr.bf16.mxu1 %v8515_v24  ;;  %4029 = vmatprep.subr.bf16.mxu0 %v8516_v27  ;;  %v8525_v15 = vld [vmem:[#allocation119_spill] sm:$0xff]  ;;  %v8526_v24 = vld [vmem:[#allocation136_spill] sm:$0xff] }
 0x880   :  { %v8527_v27 = vld [vmem:[#allocation12_spill] sm:$0xff] }
 0x882   :  { %3989 = vmatpush2.bf16.msra.mxu1 %v8517_v22  ;;  %4030 = vmatpush2.bf16.msra.mxu0 %v8518_v21  ;;  %v8528_v22 = vld [vmem:[#allocation29_spill] sm:$0xff] }
 0x883   :  { %3990 = vmatprep.subr.bf16.mxu1 %v8519_v31  ;;  %4031 = vmatprep.subr.bf16.mxu0 %v8520_v63  ;;  %v8529_v63 = vld [vmem:[#allocation13_spill] sm:$0xff]  ;;  %v8538_v31 = vld [vmem:[#allocation39_spill] sm:$0xff] }
 0x886   :  { %3991 = vmatpush2.bf16.msra.mxu1 %v8521_v58  ;;  %4032 = vmatpush2.bf16.msra.mxu0 %v8522_v7  ;;  %v8530_v58 = vld [vmem:[#allocation31_spill] sm:$0xff]  ;;  %v8531_v7 = vld [vmem:[#allocation14_spill] sm:$0xff] }
 0x887   :  { %3992 = vmatprep.subr.bf16.mxu1 %v8523_v3  ;;  %4033 = vmatprep.subr.bf16.mxu0 %v8524_v25  ;;  %v8532_v3 = vld [vmem:[#allocation33_spill] sm:$0xff]  ;;  %v8533_v25 = vld [vmem:[#allocation15_spill] sm:$0xff] }
 0x88a   :  { %3993 = vmatpush2.bf16.msra.mxu1 %v8525_v15  ;;  %4034 = vmatpush2.bf16.msra.mxu0 %v8526_v24  ;;  %v8534_v15 = vld [vmem:[#allocation35_spill] sm:$0xff]  ;;  %v8535_v24 = vld [vmem:[#allocation16_spill] sm:$0xff] }
 0x88b   :  { %4233 = vmatprep.subr.bf16.mxu1 %v8527_v27  ;;  %4274 = vmatprep.subr.bf16.mxu0 %v8528_v22  ;;  %v8536_v27 = vld [vmem:[#allocation37_spill] sm:$0xff] }
 0x88c   :  { %v8537_v22 = vld [vmem:[#allocation17_spill] sm:$0xff] }
 0x88d   :  { %3995 = vmatmul.mubr.bf16.vlgmr.msra.gmra.mxu1 %v7182_v59  ;;  %4036 = vmatmul.mubr.bf16.vlgmr.msra.gmra.mxu0 %v7182_v59  ;;  %v8539_v59 = vld [vmem:[#allocation18_spill] sm:$0xff] }
 0x88e   :  { %4234 = vmatpush1.bf16.msra.mxu1 %v8529_v63  ;;  %4275 = vmatpush1.bf16.msra.mxu0 %v8530_v58  ;;  %v8540_v63 = vld [vmem:[#allocation41_spill] sm:$0xff]  ;;  %v8541_v58 = vld [vmem:[#allocation19_spill] sm:$0xff] }
 0x88f   :  { %4235 = vmatprep.subr.bf16.mxu1 %v8531_v7  ;;  %4276 = vmatprep.subr.bf16.mxu0 %v8532_v3  ;;  %v8542_v7 = vld [vmem:[#allocation43_spill] sm:$0xff]  ;;  %v8543_v3 = vld [vmem:[#allocation20_spill] sm:$0xff] }
 0x892   :  { %4236 = vmatpush1.bf16.msra.mxu1 %v8533_v25  ;;  %4277 = vmatpush1.bf16.msra.mxu0 %v8534_v15  ;;  %v8544_v25 = vld [vmem:[#allocation45_spill] sm:$0xff] }
 0x893   :  { %4237 = vmatprep.subr.bf16.mxu1 %v8535_v24  ;;  %4278 = vmatprep.subr.bf16.mxu0 %v8536_v27  ;;  %v8545_v15 = vld [vmem:[#allocation21_spill] sm:$0xff]  ;;  %v8546_v24 = vld [vmem:[#allocation47_spill] sm:$0xff]  ;;  %v8547_v27 = vld [vmem:[#allocation22_spill] sm:$0xff] }
 0x896   :  { %4238 = vmatpush1.bf16.msra.mxu1 %v8537_v22  ;;  %4279 = vmatpush1.bf16.msra.mxu0 %v8538_v31  ;;  %v8548_v22 = vld [vmem:[#allocation49_spill] sm:$0xff]  ;;  %v8549_v31 = vld [vmem:[#allocation23_spill] sm:$0xff] }
 0x897   :  { %4239 = vmatprep.subr.bf16.mxu1 %v8539_v59  ;;  %4280 = vmatprep.subr.bf16.mxu0 %v8540_v63  ;;  %v8550_v59 = vld [vmem:[#allocation51_spill] sm:$0xff]  ;;  %v8551_v63 = vld [vmem:[#allocation24_spill] sm:$0xff] }
 0x89a   :  { %4240 = vmatpush1.bf16.msra.mxu1 %v8541_v58  ;;  %4281 = vmatpush1.bf16.msra.mxu0 %v8542_v7  ;;  %v8552_v58 = vld [vmem:[#allocation53_spill] sm:$0xff] }
 0x89b   :  { %4241 = vmatprep.subr.bf16.mxu1 %v8543_v3  ;;  %4282 = vmatprep.subr.bf16.mxu0 %v8544_v25  ;;  %v8553_v7 = vld [vmem:[#allocation25_spill] sm:$0xff]  ;;  %v8554_v3 = vld [vmem:[#allocation55_spill] sm:$0xff]  ;;  %v8555_v25 = vld [vmem:[#allocation26_spill] sm:$0xff] }
 0x89e   :  { %4242 = vmatpush1.bf16.msra.mxu1 %v8545_v15  ;;  %4283 = vmatpush1.bf16.msra.mxu0 %v8546_v24  ;;  %v8556_v15 = vld [vmem:[#allocation57_spill] sm:$0xff]  ;;  %v8557_v24 = vld [vmem:[#allocation27_spill] sm:$0xff] }
 0x89f   :  { %4243 = vmatprep.subr.bf16.mxu1 %v8547_v27  ;;  %4284 = vmatprep.subr.bf16.mxu0 %v8548_v22  ;;  %v8558_v27 = vld [vmem:[#allocation59_spill] sm:$0xff]  ;;  %v8559_v22 = vld [vmem:[#allocation28_spill] sm:$0xff] }
 0x8a2   :  { %4244 = vmatpush1.bf16.msra.mxu1 %v8549_v31  ;;  %4285 = vmatpush1.bf16.msra.mxu0 %v8550_v59  ;;  %v8560_v31 = vld [vmem:[#allocation60_spill] sm:$0xff]  ;;  %v8561_v59 = vld [vmem:[#allocation30_spill] sm:$0xff] }
 0x8a3   :  { %4245 = vmatprep.subr.bf16.mxu1 %v8551_v63  ;;  %4286 = vmatprep.subr.bf16.mxu0 %v8552_v58  ;;  %v8562_v63 = vld [vmem:[#allocation62_spill] sm:$0xff]  ;;  %v8563_v58 = vld [vmem:[#allocation32_spill] sm:$0xff] }
 0x8a6   :  { %4246 = vmatpush1.bf16.msra.mxu1 %v8553_v7  ;;  %4287 = vmatpush1.bf16.msra.mxu0 %v8554_v3  ;;  %v8564_v7 = vld [vmem:[#allocation64_spill] sm:$0xff]  ;;  %v8565_v3 = vld [vmem:[#allocation34_spill] sm:$0xff] }
 0x8a7   :  { %4247 = vmatprep.subr.bf16.mxu1 %v8555_v25  ;;  %4288 = vmatprep.subr.bf16.mxu0 %v8556_v15  ;;  %v8566_v25 = vld [vmem:[#allocation66_spill] sm:$0xff]  ;;  %v8567_v15 = vld [vmem:[#allocation36_spill] sm:$0xff] }
 0x8aa   :  { %4248 = vmatpush1.bf16.msra.mxu1 %v8557_v24  ;;  %4289 = vmatpush1.bf16.msra.mxu0 %v8558_v27  ;;  %v8568_v24 = vld [vmem:[#allocation68_spill] sm:$0xff]  ;;  %v8569_v27 = vld [vmem:[#allocation38_spill] sm:$0xff] }
 0x8ab   :  { %4249 = vmatprep.subr.bf16.mxu1 %v8559_v22  ;;  %4290 = vmatprep.subr.bf16.mxu0 %v8560_v31  ;;  %v8570_v22 = vld [vmem:[#allocation70_spill] sm:$0xff]  ;;  %v8571_v31 = vld [vmem:[#allocation40_spill] sm:$0xff] }
 0x8ae   :  { %4250 = vmatpush2.bf16.msra.mxu1 %v8561_v59  ;;  %4291 = vmatpush2.bf16.msra.mxu0 %v8562_v63  ;;  %v8572_v59 = vld [vmem:[#allocation72_spill] sm:$0xff]  ;;  %v8573_v63 = vld [vmem:[#allocation42_spill] sm:$0xff] }
 0x8af   :  { %4251 = vmatprep.subr.bf16.mxu1 %v8563_v58  ;;  %4292 = vmatprep.subr.bf16.mxu0 %v8564_v7  ;;  %v8574_v58 = vld [vmem:[#allocation74_spill] sm:$0xff]  ;;  %v8575_v7 = vld [vmem:[#allocation44_spill] sm:$0xff] }
 0x8b2   :  { %4252 = vmatpush2.bf16.msra.mxu1 %v8565_v3  ;;  %4293 = vmatpush2.bf16.msra.mxu0 %v8566_v25  ;;  %v8576_v3 = vld [vmem:[#allocation76_spill] sm:$0xff]  ;;  %v8577_v25 = vld [vmem:[#allocation46_spill] sm:$0xff] }
 0x8b3   :  { %4253 = vmatprep.subr.bf16.mxu1 %v8567_v15  ;;  %4294 = vmatprep.subr.bf16.mxu0 %v8568_v24  ;;  %v8578_v15 = vld [vmem:[#allocation78_spill] sm:$0xff]  ;;  %v8579_v24 = vld [vmem:[#allocation48_spill] sm:$0xff] }
 0x8b6   :  { %4254 = vmatpush2.bf16.msra.mxu1 %v8569_v27  ;;  %4295 = vmatpush2.bf16.msra.mxu0 %v8570_v22  ;;  %v8580_v27 = vld [vmem:[#allocation80_spill] sm:$0xff]  ;;  %v8581_v22 = vld [vmem:[#allocation50_spill] sm:$0xff] }
 0x8b7   :  { %4255 = vmatprep.subr.bf16.mxu1 %v8571_v31  ;;  %4296 = vmatprep.subr.bf16.mxu0 %v8572_v59  ;;  %v8582_v31 = vld [vmem:[#allocation82_spill] sm:$0xff]  ;;  %v8583_v59 = vld [vmem:[#allocation52_spill] sm:$0xff] }
 0x8ba   :  { %4256 = vmatpush2.bf16.msra.mxu1 %v8573_v63  ;;  %4297 = vmatpush2.bf16.msra.mxu0 %v8574_v58  ;;  %v8584_v63 = vld [vmem:[#allocation84_spill] sm:$0xff]  ;;  %v8585_v58 = vld [vmem:[#allocation54_spill] sm:$0xff] }
 0x8bb   :  { %4257 = vmatprep.subr.bf16.mxu1 %v8575_v7  ;;  %4298 = vmatprep.subr.bf16.mxu0 %v8576_v3  ;;  %v8586_v7 = vld [vmem:[#allocation86_spill] sm:$0xff]  ;;  %v8587_v3 = vld [vmem:[#allocation56_spill] sm:$0xff] }
 0x8be   :  { %4258 = vmatpush2.bf16.msra.mxu1 %v8577_v25  ;;  %4299 = vmatpush2.bf16.msra.mxu0 %v8578_v15  ;;  %v8588_v25 = vld [vmem:[#allocation88_spill] sm:$0xff]  ;;  %v8589_v15 = vld [vmem:[#allocation58_spill] sm:$0xff] }
 0x8bf   :  { %4259 = vmatprep.subr.bf16.mxu1 %v8579_v24  ;;  %4300 = vmatprep.subr.bf16.mxu0 %v8580_v27  ;;  %v8590_v24 = vld [vmem:[#allocation90_spill] sm:$0xff]  ;;  %v8591_v27 = vld [vmem:[#allocation61_spill] sm:$0xff] }
 0x8c2   :  { %4260 = vmatpush2.bf16.msra.mxu1 %v8581_v22  ;;  %4301 = vmatpush2.bf16.msra.mxu0 %v8582_v31  ;;  %v8592_v22 = vld [vmem:[#allocation93_spill] sm:$0xff] }
 0x8c3   :  { %4261 = vmatprep.subr.bf16.mxu1 %v8583_v59  ;;  %4302 = vmatprep.subr.bf16.mxu0 %v8584_v63 }
 0x8c6   :  { %4262 = vmatpush2.bf16.msra.mxu1 %v8585_v58  ;;  %4303 = vmatpush2.bf16.msra.mxu0 %v8586_v7 }
 0x8c7   :  { %4263 = vmatprep.subr.bf16.mxu1 %v8587_v3  ;;  %4304 = vmatprep.subr.bf16.mxu0 %v8588_v25  ;;  %v3785_v3 = vld [vmem:[#allocation2 + $0x46] ss:$8 sm:$0xf] }
 0x8c8   :  { %v3787_v25 = vor.u32 %v3786_v17, %v3785_v3 }
 0x8ca   :  { %4264 = vmatpush2.bf16.msra.mxu1 %v8589_v15  ;;  %4305 = vmatpush2.bf16.msra.mxu0 %v8590_v24  ;;  %v3783_v15 = vor.u32 %v3782_v8, %v3781_v1  ;;  %v3833_v24 = vrot.slane %v3787_v25, %v8593_v14  ;;  %v3837_v13 = vrot.slane %v3787_v25, %v8089_v35 }
 0x8cb   :  { %4315 = vmatprep.subr.bf16.mxu1 %v8591_v27  ;;  %4356 = vmatprep.subr.bf16.mxu0 %v8592_v22  ;;  %v3841_v27 = vrot.slane %v3787_v25, %v8594_v28 }
 0x8cc   :  { %v3792_v22 = vrot.slane %v3783_v15, %v8593_v14  ;;  %v3800_v23 = vrot.slane %v3783_v15, %v8594_v28  ;;  %v3804_v3 = vrot.slane %v3783_v15, %v6242_v53 }
 0x8ce   :  { %v3872_v17 = vsel %vm106_vm1, %v3800_v23, %v3841_v27  ;;  %v3857_v27 = vrot.slane %v3787_v25, %v6261_v6 }
 0x90d   :  { %v3914_v31 = vpop.f32.mrf.mxu1  ;;  %v3955_v59 = vpop.f32.mrf.mxu0 }
 0x90e   :  { %v4046_v1 = vadd.f32 %v3955_v59, %v3872_v17  ;;  %v3849_v59 = vrot.slane %v3787_v25, %v6201_v38 }
 0x90f   :  { %v3916_v21 = vpop.f32.mrf.mxu1  ;;  %v3957_v63 = vpop.f32.mrf.mxu0 }
 0x910   :  { %v4979_v28 = vmul.f32 -1.442695, %v4046_v1  ;;  %v3820_v1 = vrot.slane %v3783_v15, %v6264_v5 }
 0x911   :  { %v3918_v29 = vpop.f32.mrf.mxu1  ;;  %v3959_v58 = vpop.f32.mrf.mxu0 }
 0x912   :  { %v3870_v29 = vsel %vm106_vm1, %v3792_v22, %v3833_v24  ;;  %v3845_v58 = vrot.slane %v3787_v25, %v6242_v53 }
 0x913   :  { %v3919_v54 = vpop.f32.mrf.mxu1  ;;  %v3960_v7 = vpop.f32.mrf.mxu0 }
 0x914   :  { %v3796_v54 = vrot.slane %v3783_v15, %v8089_v35  ;;  %v4044_v7 = vadd.f32 %v3914_v31, %v3870_v29  ;;  %v3873_v14 = vsel %vm106_vm1, %v3804_v3, %v3845_v58 }
 0x915   :  { %v4047_v60 = vadd.f32 %v3957_v63, %v3873_v14 }
 0x916   :  { %v3871_v8 = vsel %vm106_vm1, %v3796_v54, %v3837_v13  ;;  %v4977_v51 = vmul.f32 -1.442695, %v4044_v7  ;;  %v3808_v54 = vrot.slane %v3783_v15, %v6201_v38 }
 0x917   :  { %v4045_v10 = vadd.f32 %v3916_v21, %v3871_v8  ;;  %v4980_v24 = vmul.f32 -1.442695, %v4047_v60  ;;  %v3853_v60 = vrot.slane %v3787_v25, %v6212_v62 }
 0x918   :  { %5290 = vpow2.f32 %v4977_v51  ;;  %v3874_v51 = vsel %vm106_vm1, %v3808_v54, %v3849_v59 }
 0x919   :  { %v4978_v4 = vmul.f32 -1.442695, %v4045_v10  ;;  %5292 = vpow2.f32 %v4979_v28  ;;  %v3816_v10 = vrot.slane %v3783_v15, %v6261_v6  ;;  %v3812_v28 = vrot.slane %v3783_v15, %v6212_v62 }
 0x91b   :  { %5294 = vpow2.f32 %v4978_v4  ;;  %v3861_v4 = vrot.slane %v3787_v25, %v6264_v5  ;;  %v3876_v7 = vsel %vm106_vm1, %v3816_v10, %v3857_v27 }
 0x91c   :  { %5296 = vpow2.f32 %v4980_v24  ;;  %v3875_v24 = vsel %vm106_vm1, %v3812_v28, %v3853_v60 }
 0x91d   :  { %v3877_v25 = vsel %vm106_vm1, %v3820_v1, %v3861_v4 }
 0x925   :  { %v5291_v31 = vpop.eup %5290 }
 0x926   :  { %v5293_v22 = vpop.eup %5292  ;;  %v4058_v13 = vadd.f32 1.0, %v5291_v31 }
 0x927   :  { %v4070_v29 = vadd.f32 1.0, %v5293_v22 }
 0x928   :  { %v5295_v23 = vpop.eup %5294  ;;  %5298 = vrcp.f32 %v4058_v13 }
 0x929   :  { %v5297_v21 = vpop.eup %5296  ;;  %v4059_v14 = vadd.f32 1.0, %v5295_v23  ;;  %5300 = vrcp.f32 %v4070_v29 }
 0x92a   :  { %v4071_v63 = vadd.f32 1.0, %v5297_v21 }
 0x92b   :  { %5302 = vrcp.f32 %v4059_v14 }
 0x935   :  { %v5299_v14 = vpop.eup %5298 }
 0x936   :  { %v5301_v10 = vpop.eup %5300 }
 0x937   :  { %v4090_v4 = vmul.f32 %v5301_v10, %v7175_v50 }
 0x938   :  { %v5303_v60 = vpop.eup %5302 }
 0x94d   :  { %v3996_v58 = vpop.f32.mrf.mxu1  ;;  %v4037_v17 = vpop.f32.mrf.mxu0 }
 0x94e   :  { %v4048_v8 = vadd.f32 %v3996_v58, %v3874_v51  ;;  %v4050_v3 = vadd.f32 %v4037_v17, %v3876_v7 }
 0x94f   :  { %v3998_v31 = vpop.f32.mrf.mxu1  ;;  %v4039_v22 = vpop.f32.mrf.mxu0 }
 0x950   :  { %5304 = vtanh.f32 %v4048_v8  ;;  %v4981_v23 = vmul.f32 -1.442695, %v4050_v3  ;;  %v4049_v59 = vadd.f32 %v3998_v31, %v3875_v24  ;;  %v4051_v13 = vadd.f32 %v4039_v22, %v3877_v25 }
 0x951   :  { %5306 = vrcp.f32 %v4071_v63  ;;  %v4000_v21 = vpop.f32.mrf.mxu1  ;;  %v4041_v27 = vpop.f32.mrf.mxu0 }
 0x952   :  { %5308 = vpow2.f32 %v4981_v23  ;;  %v4982_v54 = vmul.f32 -1.442695, %v4051_v13 }
 0x953   :  { %5310 = vtanh.f32 %v4049_v59  ;;  %v4001_v15 = vpop.f32.mrf.mxu1  ;;  %v4042_v29 = vpop.f32.mrf.mxu0 }
 0x954   :  { %5312 = vpow2.f32 %v4982_v54 }
 0x95d   :  { %v5305_v51 = vpop.eup %5304 }
 0x95e   :  { %v5307_v28 = vpop.eup %5306  ;;  %v4092_v58 = vmul.f32 %v5305_v51, %v5299_v14  ;;  %v8625_v51 = vld [vmem:[#allocation135_spill] sm:$0xff] }
 0x95f   :  { %v5309_v7 = vpop.eup %5308  ;;  %v4091_v3 = vmul.f32 %v5307_v28, %v7179_v49  ;;  %v8626_v28 = vld [vmem:[#allocation119_spill] sm:$0xff] }
 0x960   :  { %v5311_v17 = vpop.eup %5310  ;;  %v7348_v1 = vadd.f32 %v4092_v58, %v4090_v4  ;;  %v4084_v63 = vadd.f32 1.0, %v5309_v7  ;;  %v8627_v4 = vld [vmem:[#allocation136_spill] sm:$0xff]  ;;  %v5082_v58 = vld [vmem:[%s7545_s11 + $0x78] sm:$0xff]  }
 0x961   :  { %v5313_v8 = vpop.eup %5312  ;;  %v4093_v24 = vmul.f32 %v5311_v17, %v5303_v60  ;;  %v8624_v60 = vld [vmem:[#allocation117_spill] sm:$0xff]  ;;  %v5083_v7 = vld [vmem:[%s7545_s11 + $0x38] sm:$0xff]  }
 0x962   :  { %5314 = vtanh.f32 %v7348_v1  ;;  %v4085_v31 = vadd.f32 1.0, %v5313_v8  ;;  %v5084_v17 = vld [vmem:[%s7545_s11 + $0x70] sm:$0xff]   ;;  %v5086_v8 = vld [vmem:[%s7545_s11 + $0x68] sm:$0xff]  }
 0x963   :  { %5316 = vrcp.f32 %v4084_v63  ;;  %v7352_v25 = vadd.f32 %v4093_v24, %v4091_v3  ;;  %v5085_v63 = vld [vmem:[%s7545_s11 + $0x30] sm:$0xff]   ;;  %v5087_v3 = vld [vmem:[%s7545_s11 + $0x28] sm:$0xff]   ;;  %v5088_v24 = vld [vmem:[%s7545_s11 + $0x60] sm:$0xff]  }
 0x964   :  { %5318 = vrcp.f32 %v4085_v31  ;;  %v5089_v31 = vld [vmem:[%s7545_s11 + $0x20] sm:$0xff]  }
 0x965   :  { %5320 = vtanh.f32 %v7352_v25 }
 0x96f   :  { %v5315_v50 = vpop.eup %5314 }
 0x970   :  { %v5317_v22 = vpop.eup %5316 }
 0x971   :  { %v5319_v23 = vpop.eup %5318  ;;  %v4098_v13 = vmul.f32 %v5317_v22, %v5315_v50  ;;  %v5090_v50 = vld [vmem:[%s7545_s11 + $0x58] sm:$0xff]  }
 0x972   :  { %v5321_v59 = vpop.eup %5320  ;;  %v5091_v22 = vld [vmem:[%s7545_s11 + $0x18] sm:$0xff]  }
 0x973   :  { %v4099_v21 = vmul.f32 %v5321_v59, %v5319_v23  ;;  %v7355_v15 = vpack.c.bf16 %v4098_v13, %v4098_v13 }
 0x975   :  { %v4232_v27 = vpack.c.bf16 %v4099_v21, %v4099_v21  ;;  %v4102_v54 = vcombine.low %v4098_v13, %v4099_v21  ;;  %v5092_v13 = vld [vmem:[%s7545_s11 + $0x50] sm:$0xff]  }
 0x977   :  { %4265 = vmatprep.mubr.bf16.mxu1 %v4232_v27  ;;  %4306 = vmatprep.mubr.bf16.mxu0 %v4232_v27  ;;  %v4109_v49 = vrot.slane %v4102_v54, %v6310_v45  ;;  %v5093_v54 = vld [vmem:[%s7545_s11 + $0x10] sm:$0xff]  }
 0x978   :  { %4266 = vmatmul.mubr.bf16.vlgmr.msra.gmra.mxu1 %v7355_v15  ;;  %4307 = vmatmul.mubr.bf16.vlgmr.msra.gmra.mxu0 %v7355_v15 }
 0x979   :  { %v4116_v29 = vrot.slane %v4109_v49, %v6310_v45  ;;  %v4121_v14 = vcombine.high %v4109_v49, %v4109_v49  ;;  %4316 = vmatpush1.bf16.msra.mxu1 %v7990_v19  ;;  %4357 = vmatpush1.bf16.msra.mxu0 %v5984_v47  ;;  %v8595_v47 = vld [vmem:[#allocation120_spill] sm:$0xff]  ;;  %v8598_v19 = vld [vmem:[#allocation94_spill] sm:$0xff] }
 0x97a   :  { %4347 = vmatprep.mubr.bf16.mxu1 %v4232_v27  ;;  %4388 = vmatprep.mubr.bf16.mxu0 %v4232_v27 }
 0x97b   :  { %4119 = vst.msk [vmem:[#allocation6 + $0x6] ss:$8 sm:$0x3] %vm6316_vm10, %v4116_v29  ;;  %v4128_v10 = vrot.slane %v4121_v14, %v6310_v45  ;;  %4317 = vmatprep.subr.bf16.mxu1 %v7991_v57  ;;  %4358 = vmatprep.subr.bf16.mxu0 %v7992_v11  ;;  %v8599_v57 = vld [vmem:[#allocation122_spill] sm:$0xff]  ;;  %v8600_v11 = vld [vmem:[#allocation95_spill] sm:$0xff]  ;;  %v5094_v29 = vld [vmem:[%s7545_s11 + $0x48] sm:$0xff]  }
 0x97d   :  { %4131 = vst.msk [vmem:[#allocation6 + $0x16] ss:$8 sm:$0x3] %vm6316_vm10, %v4128_v10  ;;  %4318 = vmatpush1.bf16.msra.mxu1 %v7993_v56  ;;  %4359 = vmatpush1.bf16.msra.mxu0 %v7994_v61  ;;  %v8601_v56 = vld [vmem:[#allocation123_spill] sm:$0xff]  ;;  %v8602_v61 = vld [vmem:[#allocation97_spill] sm:$0xff] }
 0x97e   :  { %4319 = vmatprep.subr.bf16.mxu1 %v7995_v55  ;;  %4360 = vmatprep.subr.bf16.mxu0 %v7996_v32  ;;  %v8603_v55 = vld [vmem:[#allocation124_spill] sm:$0xff]  ;;  %v8604_v32 = vld [vmem:[#allocation99_spill] sm:$0xff] }
 0x981   :  { %4320 = vmatpush1.bf16.msra.mxu1 %v7997_v2  ;;  %4361 = vmatpush1.bf16.msra.mxu0 %v7998_v18  ;;  %v8605_v2 = vld [vmem:[#allocation125_spill] sm:$0xff] }
 0x982   :  { %4321 = vmatprep.subr.bf16.mxu1 %v7999_v9  ;;  %4362 = vmatprep.subr.bf16.mxu0 %v8000_v12  ;;  %v8606_v18 = vld [vmem:[#allocation101_spill] sm:$0xff]  ;;  %v8607_v9 = vld [vmem:[#allocation126_spill] sm:$0xff]  ;;  %v8608_v12 = vld [vmem:[#allocation103_spill] sm:$0xff] }
 0x985   :  { %4322 = vmatpush1.bf16.msra.mxu1 %v8001_v40  ;;  %4363 = vmatpush1.bf16.msra.mxu0 %v8002_v0  ;;  %v8609_v40 = vld [vmem:[#allocation127_spill] sm:$0xff]  ;;  %v8610_v0 = vld [vmem:[#allocation105_spill] sm:$0xff] }
 0x986   :  { %4323 = vmatprep.subr.bf16.mxu1 %v8003_v46  ;;  %4364 = vmatprep.subr.bf16.mxu0 %v8004_v36  ;;  %v8611_v46 = vld [vmem:[#allocation128_spill] sm:$0xff]  ;;  %v8612_v36 = vld [vmem:[#allocation107_spill] sm:$0xff] }
 0x989   :  { %4324 = vmatpush1.bf16.msra.mxu1 %v8005_v44  ;;  %4365 = vmatpush1.bf16.msra.mxu0 %v6034_v42  ;;  %v8596_v42 = vld [vmem:[#allocation92_spill] sm:$0xff]  ;;  %v8613_v44 = vld [vmem:[#allocation129_spill] sm:$0xff] }
 0x98a   :  { %4325 = vmatprep.subr.bf16.mxu1 %v8006_v39  ;;  %4366 = vmatprep.subr.bf16.mxu0 %v6040_v48  ;;  %v8597_v48 = vld [vmem:[#allocation121_spill] sm:$0xff] }
 0x98b   :  { %v8614_v39 = vld [vmem:[#allocation109_spill] sm:$0xff] }
 0x98d   :  { %4326 = vmatpush1.bf16.msra.mxu1 %v8007_v16  ;;  %4367 = vmatpush1.bf16.msra.mxu0 %v8090_v34  ;;  %v8615_v16 = vld [vmem:[#allocation130_spill] sm:$0xff]  ;;  %v8620_v34 = vld [vmem:[#allocation113_spill] sm:$0xff] }
 0x98e   :  { %4327 = vmatprep.subr.bf16.mxu1 %v8008_v20  ;;  %4368 = vmatprep.subr.bf16.mxu0 %v8091_v41  ;;  %v8616_v20 = vld [vmem:[#allocation110_spill] sm:$0xff]  ;;  %v8621_v41 = vld [vmem:[#allocation133_spill] sm:$0xff] }
 0x991   :  { %4328 = vmatpush1.bf16.msra.mxu1 %v8009_v37  ;;  %4369 = vmatpush1.bf16.msra.mxu0 %v8092_v33  ;;  %v8617_v37 = vld [vmem:[#allocation131_spill] sm:$0xff] }
 0x992   :  { %4329 = vmatprep.subr.bf16.mxu1 %v8010_v30  ;;  %4370 = vmatprep.subr.bf16.mxu0 %v8093_v26  ;;  %v8618_v30 = vld [vmem:[#allocation111_spill] sm:$0xff]  ;;  %v8623_v26 = vld [vmem:[#allocation134_spill] sm:$0xff] }
 0x993   :  { %v8622_v33 = vld [vmem:[#allocation115_spill] sm:$0xff] }
 0x995   :  { %4330 = vmatpush1.bf16.msra.mxu1 %v8011_v43  ;;  %4371 = vmatpush1.bf16.msra.mxu0 %v8595_v47  ;;  %v8619_v43 = vld [vmem:[#allocation132_spill] sm:$0xff] }
 0x996   :  { %4331 = vmatprep.subr.bf16.mxu1 %v8596_v42  ;;  %4372 = vmatprep.subr.bf16.mxu0 %v8597_v48  ;;  %v5095_v47 = vld [vmem:[%s7545_s11 + $0x8] sm:$0xff]   ;;  %v5096_v42 = vld [vmem:[%s7545_s11 + $0x40] sm:$0xff]  }
 0x997   :  { %v5097_v48 = vld [vmem:[%s7545_s11] sm:$0xff]  }
 0x999   :  { %4332 = vmatpush2.bf16.msra.mxu1 %v8598_v19  ;;  %4373 = vmatpush2.bf16.msra.mxu0 %v8599_v57  ;;  %v4139_v19 = vld [vmem:[#allocation2 + $0x47] ss:$8 sm:$0xf0] }
 0x99a   :  { %4333 = vmatprep.subr.bf16.mxu1 %v8600_v11  ;;  %4374 = vmatprep.subr.bf16.mxu0 %v8601_v56  ;;  %v4138_v57 = vld [vmem:[#allocation2 + $0x47] ss:$8 sm:$0xf] }
 0x99b   :  { %v4135_v11 = vld [vmem:[#allocation2 + $0x7] ss:$8 sm:$0xf0]  ;;  %v4140_v56 = vor.u32 %v4139_v19, %v4138_v57 }
 0x99d   :  { %4334 = vmatpush2.bf16.msra.mxu1 %v8602_v61  ;;  %4375 = vmatpush2.bf16.msra.mxu0 %v8603_v55  ;;  %v4134_v61 = vld [vmem:[#allocation2 + $0x7] ss:$8 sm:$0xf] }
 0x99e   :  { %4335 = vmatprep.subr.bf16.mxu1 %v8604_v32  ;;  %4376 = vmatprep.subr.bf16.mxu0 %v8605_v2  ;;  %v4136_v55 = vor.u32 %v4135_v11, %v4134_v61  ;;  %v8628_v32 = vld [vmem:[#allocation137_spill] sm:$0xff] }
 0x99f   :  { %v4186_v2 = vrot.slane %v4140_v56, %v8628_v32 }
 0x9a1   :  { %4336 = vmatpush2.bf16.msra.mxu1 %v8606_v18  ;;  %4377 = vmatpush2.bf16.msra.mxu0 %v8607_v9  ;;  %v8629_v18 = vld [vmem:[#allocation139_spill] sm:$0xff] }
 0x9a2   :  { %4337 = vmatprep.subr.bf16.mxu1 %v8608_v12  ;;  %4378 = vmatprep.subr.bf16.mxu0 %v8609_v40  ;;  %v4194_v9 = vrot.slane %v4140_v56, %v8629_v18  ;;  %v4145_v12 = vrot.slane %v4136_v55, %v8628_v32  ;;  %v4190_v40 = vrot.slane %v4140_v56, %v8089_v35 }
 0x9a5   :  { %4338 = vmatpush2.bf16.msra.mxu1 %v8610_v0  ;;  %4379 = vmatpush2.bf16.msra.mxu0 %v8611_v46  ;;  %v4153_v0 = vrot.slane %v4136_v55, %v8629_v18  ;;  %v4223_v46 = vsel %vm106_vm1, %v4145_v12, %v4186_v2 }
 0x9a6   :  { %4339 = vmatprep.subr.bf16.mxu1 %v8612_v36  ;;  %4380 = vmatprep.subr.bf16.mxu0 %v8613_v44  ;;  %v4149_v36 = vrot.slane %v4136_v55, %v8089_v35  ;;  %v4198_v44 = vrot.slane %v4140_v56, %v6242_v53 }
 0x9a9   :  { %4340 = vmatpush2.bf16.msra.mxu1 %v8614_v39  ;;  %4381 = vmatpush2.bf16.msra.mxu0 %v8615_v16  ;;  %v4225_v16 = vsel %vm106_vm1, %v4153_v0, %v4194_v9 }
 0x9aa   :  { %4341 = vmatprep.subr.bf16.mxu1 %v8616_v20  ;;  %4382 = vmatprep.subr.bf16.mxu0 %v8617_v37  ;;  %v4224_v37 = vsel %vm106_vm1, %v4149_v36, %v4190_v40 }
 0x9ad   :  { %4342 = vmatpush2.bf16.msra.mxu1 %v8618_v30  ;;  %4383 = vmatpush2.bf16.msra.mxu0 %v8619_v43  ;;  %v4157_v30 = vrot.slane %v4136_v55, %v6242_v53  ;;  %v4210_v53 = vrot.slane %v4140_v56, %v6261_v6 }
 0x9ae   :  { %4343 = vmatprep.subr.bf16.mxu1 %v8620_v34  ;;  %4384 = vmatprep.subr.bf16.mxu0 %v8621_v41 }
 0x9af   :  { %v4226_v34 = vsel %vm106_vm1, %v4157_v30, %v4198_v44 }
 0x9b1   :  { %4344 = vmatpush2.bf16.msra.mxu1 %v8622_v33  ;;  %4385 = vmatpush2.bf16.msra.mxu0 %v8623_v26 }
 0x9b2   :  { %4345 = vmatprep.subr.bf16.mxu1 %v8624_v60  ;;  %4386 = vmatprep.subr.bf16.mxu0 %v8625_v51 }
 0x9b5   :  { %4346 = vmatpush2.bf16.msra.mxu1 %v8626_v28  ;;  %4387 = vmatpush2.bf16.msra.mxu0 %v8627_v4 }
 0x9b6   :  { %5013 = vmatprep.subr.bf16.mxu1 %v5082_v58  ;;  %v4202_v58 = vrot.slane %v4140_v56, %v6201_v38 }
 0x9b8   :  { %4348 = vmatmul.mubr.bf16.vlgmr.msra.gmra.mxu1 %v7355_v15  ;;  %4389 = vmatmul.mubr.bf16.vlgmr.msra.gmra.mxu0 %v7355_v15 }
 0x9b9   :  { %5014 = vmatpush3.bf16.msra.mxu1 %v5083_v7 }
 0x9ba   :  { %5015 = vmatprep.subr.bf16.mxu1 %v5084_v17 }
 0x9bd   :  { %5016 = vmatpush3.bf16.msra.mxu1 %v5085_v63 }
 0x9be   :  { %5017 = vmatprep.subr.bf16.mxu1 %v5086_v8  ;;  %v4161_v8 = vrot.slane %v4136_v55, %v6201_v38 }
 0x9c1   :  { %5018 = vmatpush3.bf16.msra.mxu1 %v5087_v3 }
 0x9c2   :  { %5019 = vmatprep.subr.bf16.mxu1 %v5088_v24  ;;  %v4169_v24 = vrot.slane %v4136_v55, %v6261_v6 }
 0x9c5   :  { %5020 = vmatpush3.bf16.msra.mxu1 %v5089_v31  ;;  %v4206_v31 = vrot.slane %v4140_v56, %v6212_v62 }
 0x9c6   :  { %5021 = vmatprep.subr.bf16.mxu1 %v5090_v50  ;;  %v4214_v50 = vrot.slane %v4140_v56, %v6264_v5 }
 0x9c9   :  { %5022 = vmatpush3.bf16.msra.mxu1 %v5091_v22  ;;  %v4227_v22 = vsel %vm106_vm1, %v4161_v8, %v4202_v58 }
 0x9ca   :  { %5023 = vmatprep.subr.bf16.mxu1 %v5092_v13 }
 0x9cd   :  { %5024 = vmatpush3.bf16.msra.mxu1 %v5093_v54  ;;  %v4173_v54 = vrot.slane %v4136_v55, %v6264_v5 }
 0x9ce   :  { %5025 = vmatprep.subr.bf16.mxu1 %v5094_v29 }
 0x9cf   :  { %v4230_v29 = vsel %vm106_vm1, %v4173_v54, %v4214_v50 }
 0x9d1   :  { %5026 = vmatpush3.bf16.msra.mxu1 %v5095_v47 }
 0x9d2   :  { %5027 = vmatprep.subr.bf16.mxu1 %v5096_v42 }
 0x9d5   :  { %5028 = vmatpush3.bf16.msra.mxu1 %v5097_v48 }
 0xa38   :  { %v4267_v23 = vpop.f32.mrf.mxu1  ;;  %v4308_v59 = vpop.f32.mrf.mxu0 }
 0xa39   :  { %v4397_v39 = vadd.f32 %v4267_v23, %v4223_v46  ;;  %v4399_v20 = vadd.f32 %v4308_v59, %v4225_v16  ;;  %v4165_v23 = vrot.slane %v4136_v55, %v6212_v62 }
 0xa3a   :  { %v4269_v21 = vpop.f32.mrf.mxu1  ;;  %v4310_v27 = vpop.f32.mrf.mxu0 }
 0xa3b   :  { %v4398_v43 = vadd.f32 %v4269_v21, %v4224_v37  ;;  %v4983_v41 = vmul.f32 -1.442695, %v4397_v39  ;;  %v4400_v33 = vadd.f32 %v4310_v27, %v4226_v34  ;;  %v4985_v26 = vmul.f32 -1.442695, %v4399_v20 }
 0xa3c   :  { %v4271_v15 = vpop.f32.mrf.mxu1  ;;  %v4312_v49 = vpop.f32.mrf.mxu0  ;;  %v4229_v21 = vsel %vm106_vm1, %v4169_v24, %v4210_v53  ;;  %v4228_v6 = vsel %vm106_vm1, %v4165_v23, %v4206_v31 }
 0xa3d   :  { %v4984_v60 = vmul.f32 -1.442695, %v4398_v43  ;;  %5322 = vpow2.f32 %v4983_v41  ;;  %v4986_v51 = vmul.f32 -1.442695, %v4400_v33 }
 0xa3e   :  { %v4272_v14 = vpop.f32.mrf.mxu1  ;;  %v4313_v10 = vpop.f32.mrf.mxu0  ;;  %5324 = vpow2.f32 %v4985_v26 }
 0xa3f   :  { %5326 = vpow2.f32 %v4984_v60 }
 0xa40   :  { %5328 = vpow2.f32 %v4986_v51 }
 0xa4a   :  { %v5323_v35 = vpop.eup %5322 }
 0xa4b   :  { %v5325_v28 = vpop.eup %5324  ;;  %v4411_v7 = vadd.f32 1.0, %v5323_v35 }
 0xa4c   :  { %v5327_v4 = vpop.eup %5326  ;;  %v4423_v63 = vadd.f32 1.0, %v5325_v28 }
 0xa4d   :  { %v5329_v17 = vpop.eup %5328  ;;  %v4412_v3 = vadd.f32 1.0, %v5327_v4  ;;  %5330 = vrcp.f32 %v4411_v7 }
 0xa4e   :  { %v4424_v59 = vadd.f32 1.0, %v5329_v17  ;;  %5332 = vrcp.f32 %v4423_v63  ;;  %v4991_v63 = vld [vmem:[%s7546_s12] ss:$0 sm:$0xff]  ;;  %s5435_s12 = smov [#allocation6]  }
 0xa4f   :  { %5334 = vrcp.f32 %v4412_v3  ;;  %s4721_s1 = sshll.u32 %s5435_s12, 4  ;;  %s4722_s1 = int_to_ptr.vmem [resolvable:$true] %s4721_s1 }
 0xa50   :  { %s5382_s10 = scalar_lea.vmem %s4722_s1, 512  ;;  %p5387_p6 = scmp.lt.s32.totalorder %s4722_s1, %s4722_s1 }
 0xa51   :  { %p5383_p5 = scmp.ne.s32.totalorder %s4722_s1, %s5382_s10  ;;  %p5388_p7 = scmp.lt.s32.totalorder %s5382_s10, %s5382_s10 }
 0xa53   :  { %p5389_p8 = por %p5388_p7, %p5387_p6 }
 0xa55   :  { %p5390_p9 = pnand %p5389_p8, %p5383_p5 }
 0xa5a   :  { %v5331_v11 = vpop.eup %5330 }
 0xa5b   :  { %v5333_v56 = vpop.eup %5332 }
 0xa5c   :  { %v5335_v61 = vpop.eup %5334  ;;  %v4443_v2 = vmul.f32 %v5333_v56, %v7348_v1 }
 0xa78   :  { %v4349_v13 = vpop.f32.mrf.mxu1  ;;  %v4390_v27 = vpop.f32.mrf.mxu0 }
 0xa79   :  { %v4401_v38 = vadd.f32 %v4349_v13, %v4227_v22  ;;  %v4403_v15 = vadd.f32 %v4390_v27, %v4229_v21 }
 0xa7a   :  { %v4351_v49 = vpop.f32.mrf.mxu1  ;;  %v4392_v14 = vpop.f32.mrf.mxu0 }
 0xa7b   :  { %5336 = vtanh.f32 %v4401_v38  ;;  %v4987_v62 = vmul.f32 -1.442695, %v4403_v15  ;;  %v4402_v10 = vadd.f32 %v4351_v49, %v4228_v6  ;;  %v4404_v47 = vadd.f32 %v4392_v14, %v4230_v29 }
 0xa7c   :  { %5338 = vrcp.f32 %v4424_v59  ;;  %v4353_v42 = vpop.f32.mrf.mxu1  ;;  %v4394_v48 = vpop.f32.mrf.mxu0 }
 0xa7d   :  { %5340 = vpow2.f32 %v4987_v62  ;;  %v4988_v19 = vmul.f32 -1.442695, %v4404_v47 }
 0xa7e   :  { %5342 = vtanh.f32 %v4402_v10  ;;  %v4354_v5 = vpop.f32.mrf.mxu1  ;;  %v4395_v57 = vpop.f32.mrf.mxu0 }
 0xa7f   :  { %5344 = vpow2.f32 %v4988_v19 }
 0xa88   :  { %v5337_v55 = vpop.eup %5336 }
 0xa89   :  { %v5339_v32 = vpop.eup %5338  ;;  %v4445_v18 = vmul.f32 %v5337_v55, %v5331_v11 }
 0xa8a   :  { %v5341_v9 = vpop.eup %5340  ;;  %v4444_v36 = vmul.f32 %v5339_v32, %v7352_v25 }
 0xa8b   :  { %v5343_v12 = vpop.eup %5342  ;;  %v4447_v40 = vadd.f32 %v4445_v18, %v4443_v2  ;;  %v4437_v0 = vadd.f32 1.0, %v5341_v9 }
 0xa8c   :  { %v5345_v46 = vpop.eup %5344  ;;  %v4446_v44 = vmul.f32 %v5343_v12, %v5335_v61 }
 0xa8d   :  { %5346 = vtanh.f32 %v4447_v40  ;;  %v4438_v39 = vadd.f32 1.0, %v5345_v46 }
 0xa8e   :  { %5348 = vrcp.f32 %v4437_v0  ;;  %v4448_v16 = vadd.f32 %v4446_v44, %v4444_v36 }
 0xa8f   :  { %5350 = vrcp.f32 %v4438_v39 }
 0xa90   :  { %5352 = vtanh.f32 %v4448_v16  ;;  %v4497_v20 = vcombine.low %v4447_v40, %v4448_v16 }
 0xa92   :  { %4990 = vst.sshfl [vmem:[#allocation7 + $0x4] sm:$0x33 pattern:$0x76325410] %v4497_v20 }
 0xa9a   :  { %v5347_v37 = vpop.eup %5346 }
 0xa9b   :  { %v5349_v30 = vpop.eup %5348 }
 0xa9c   :  { %v5351_v1 = vpop.eup %5350  ;;  %v4451_v34 = vmul.f32 %v5349_v30, %v5347_v37 }
 0xa9d   :  { %v5353_v43 = vpop.eup %5352 }
 0xa9e   :  { %v4452_v41 = vmul.f32 %v5353_v43, %v5351_v1 }
 0xaa0   :  { %v4455_v33 = vcombine.low %v4451_v34, %v4452_v41 }
 0xaa2   :  { %v4462_v26 = vrot.slane %v4455_v33, %v6310_v45  ;;  %4989 = vst.sshfl [vmem:[#allocation7] sm:$0x33 pattern:$0x76325410] %v4455_v33 }
 0xaa4   :  { %v4469_v25 = vrot.slane %v4462_v26, %v6310_v45  ;;  %v4474_v60 = vcombine.high %v4462_v26, %v4462_v26 }
 0xaa6   :  { %4472 = vst.msk [vmem:[#allocation6 + $0x7] ss:$8 sm:$0x3] %vm6316_vm10, %v4469_v25  ;;  %v4481_v51 = vrot.slane %v4474_v60, %v6310_v45 }
 0xaa8   :  { %4484 = vst.msk [vmem:[#allocation6 + $0x17] ss:$8 sm:$0x3] %vm6316_vm10, %v4481_v51 }
 0xaad   :  { %v4508_v35 = vld [vmem:[#allocation6 + $0x8] sm:$0xff]  ;;  %v4507_v4 = vld [vmem:[#allocation6] sm:$0xff] }
 0xaaf   :  { %v4510_v28 = vld [vmem:[#allocation6 + $0x18] sm:$0xff]  ;;  %v4509_v58 = vld [vmem:[#allocation6 + $0x10] sm:$0xff] }
 0xab0   :  { %v4512_v7 = vpack.c.bf16 %v4510_v28, %v4508_v35  ;;  %v4511_v53 = vpack.c.bf16 %v4509_v58, %v4507_v4 }
 0xab2   :  { %4680 = vmatprep.mubr.bf16.mxu1 %v4512_v7 }
 0xab3   :  { %4681 = vmatmul.mubr.bf16.vlgmr.msra.gmra.mxu1 %v4511_v53 }
 0xb73   :  { %v5029_v17 = vpop.f32.mrf.mxu1 }
 0xb75   :  { %v5030_v8 = vpop.f32.mrf.mxu1 }
 0xb76   :  { %v5031_v3 = vadd.f32 %v5030_v8, %v5029_v17 }
 0xb77   :  { %v5032_v24 = vpop.f32.mrf.mxu1 }
 0xb78   :  { %v4683_v45 = vadd.f32 %v5031_v3, %v4991_v63 }
 0xb79   :  { %v5033_v52 = vpop.f32.mrf.mxu1 }
 0xb7a   :  { %v5034_v31 = vadd.f32 %v5033_v52, %v5032_v24  ;;  %v4690_v50 = vsel %vm4689_vm11, %v4683_v45, -inf }
 0xb7b   :  { %4691 = vmax.xlane.f32.xlu0 %v4690_v50 }
 0xb7c   :  { %v4686_v22 = vadd.f32 %v5034_v31, %v4991_v63 }
 0xb7e   :  { %v4693_v23 = vsel %vm4689_vm11, %v4686_v22, -inf }
 0xb7f   :  { %4694 = vmax.xlane.f32.xlu1 %v4693_v23 }
 0xc04   :  { %v4692_v59 = vpop.xlane.xlu0 %4691 }
 0xc05   :  { %v4696_v13 = vsub.f32 %v4683_v45, %v4692_v59 }
 0xc07   :  { %v4698_v21 = vmul.f32 1.442695, %v4696_v13 }
 0xc08   :  { %v4695_v27 = vpop.xlane.xlu1 %4694 }
 0xc09   :  { %5354 = vpow2.f32 %v4698_v21  ;;  %v4697_v54 = vsub.f32 %v4686_v22, %v4695_v27 }
 0xc0b   :  { %v4700_v38 = vmul.f32 1.442695, %v4697_v54 }
 0xc0d   :  { %5356 = vpow2.f32 %v4700_v38 }
 0xc16   :  { %v5355_v15 = vpop.eup %5354 }
 0xc17   :  { %v4702_v6 = vsel %vm4689_vm11, %v5355_v15, 0.0 }
 0xc18   :  { %4703 = vadd.xlane.f32.xlu0 %v4702_v6 }
 0xc1a   :  { %v5357_v49 = vpop.eup %5356 }
 0xc1b   :  { %v4705_v29 = vsel %vm4689_vm11, %v5357_v49, 0.0 }
 0xc1c   :  { %4706 = vadd.xlane.f32.xlu0 %v4705_v29 }
 0xc1d   :  { %5393 = shalt.err (!%p5390_p9)
}
 0xc1e   :  { %s5436_s27 = smov 256   ;;  %s5437_s3 = smov 16  }
 0xc1f   :  { %4727 = dma.vmem_to_hbm [thread:$0]  %s4722_s1, 512, %s7547_s13, [#allocation5], %s5436_s27, %s5436_s27, %s5437_s3  }
 0xc20   :  { %s5438_s29 = smov [#allocation7]  }
 0xc21   :  { %s4734_s30 = sshll.u32 %s5438_s29, 4  ;;  %s4735_s30 = int_to_ptr.vmem [resolvable:$true] %s4734_s30 }
 0xc22   :  { %s5402_s5 = scalar_lea.vmem %s4735_s30, 128  ;;  %p5407_p11 = scmp.lt.s32.totalorder %s4735_s30, %s4735_s30 }
 0xc23   :  { %p5403_p10 = scmp.ne.s32.totalorder %s4735_s30, %s5402_s5  ;;  %p5408_p12 = scmp.lt.s32.totalorder %s5402_s5, %s5402_s5 }
 0xc25   :  { %p5409_p13 = por %p5408_p12, %p5407_p11 }
 0xc27   :  { %p5410_p0 = pnand %p5409_p13, %p5403_p10 }
 0xc29   :  { %5413 = shalt.err (!%p5410_p0)
}
 0xc2a   :  { %4737 = dma.vmem_to_hbm [thread:$0]  %s4735_s30, 128, %s7548_s14, [#allocation8]  }
 0xca1   :  { %v4704_v14 = vpop.xlane.xlu0 %4703 }
 0xca2   :  { %5358 = vrcp.f32 %v4704_v14 }
 0xca5   :  { %v4707_v62 = vpop.xlane.xlu0 %4706 }
 0xca6   :  { %5360 = vrcp.f32 %v4707_v62 }
 0xcaf   :  { %v5359_v10 = vpop.eup %5358 }
 0xcb0   :  { %v4710_v47 = vmul.f32 %v5359_v10, %v5355_v15 }
 0xcb2   :  { %v4712_v42 = vsel %vm4689_vm11, %v4710_v47, %v4683_v45 }
 0xcb3   :  { %v5361_v48 = vpop.eup %5360  ;;  %4714 = vst.msk [vmem:[%s7549_s15] sm:$0xff] %vm257_vm8, %v4712_v42 }
 0xcb4   :  { %v4711_v19 = vmul.f32 %v5361_v48, %v5357_v49 }
 0xcb6   :  { %v4713_v5 = vsel %vm4689_vm11, %v4711_v19, %v4686_v22 }
 0xcb7   :  { %4715 = vst.msk [vmem:[%s7549_s15 + $0x8] sm:$0xff] %vm257_vm8, %v4713_v5 }
 0xcb8   :  { %5424 = dma.done.wait [#allocation5], 512  }
 0xcb9   :  { %5425 = vsyncadd [#allocation5], 4294966784 }
 0xcba   :  { %5426 = dma.done.wait [#allocation8], 128  }
 0xcbb   :  { %5427 = vsyncadd [#allocation8], 4294967168 }
 0xcbc   :  { %4748 = vsyncpa [#allocation4], 1 }
 0xcbd   :  { %4749 = vsyncpa [#allocation5], 1 }
 0xcbe   :  { %4750 = vsyncpa [#allocation8], 1 }

</bundles_post_ra>
